<compile_context>
chip_gen: v7x
topology: tpu7x:2x2x1
jax: 0.10.0
libtpu: 0.0.40
codegen_flags: <defaults>
</compile_context>

<pallas_src>
import functools

import jax
import jax.numpy as jnp
from jax.experimental import pallas as pl
from jax.experimental.pallas import tpu as pltpu

BN_EPS = 1e-5
EXPANSION = 4


# ----------------------------------------------------------------------------
# Fused Bottleneck kernel (one image per grid step).
# ----------------------------------------------------------------------------
def _bottleneck_kernel(x_ref, w1_ref, sb1_ref, w2_ref, sb2_ref, w3_ref, sb3_ref,
                       o_ref, *, H, W):
    """conv1x1+bn1+relu -> conv3x3(im2col)+bn2+relu -> conv1x1+bn3 -> +x -> relu.

    x_ref  : [Cin, H*W]     f32  (native NCHW layout, lane-dense load)
    w1_ref : [Cin, Cp]      bf16
    sb1_ref: [2, Cp]        f32  (row 0 = bn1 scale, row 1 = bn1 bias)
    w2_ref : [9*Cp, Cp]     bf16 ((ky, kx, cin) major -> cout)
    sb2_ref: [2, Cp]        f32
    w3_ref : [Cp, Cout]     bf16
    sb3_ref: [2, Cout]      f32
    o_ref  : [Cout, H*W]    f32  (native NCHW layout, lane-dense store)
    Cp = width zero-padded up to a multiple of 128.
    """
    HW = H * W
    Cp = w1_ref.shape[1]

    x = x_ref[...]                                  # [Cin, HW] f32
    x_t = x.T                                       # [HW, Cin] f32 (XLU transpose)

    # --- conv1 (1x1) + bn1 + relu: single MXU matmul, K = Cin ----------------
    h1 = jnp.dot(x_t.astype(jnp.bfloat16), w1_ref[...],
                 preferred_element_type=jnp.float32)
    h1 = jnp.maximum(h1 * sb1_ref[0:1, :] + sb1_ref[1:2, :], 0.0)   # [HW, Cp]

    # --- conv2 (3x3, stride 1, pad 1) + bn2 + relu ---------------------------
    # Build the [HW, 9*Cp] im2col matrix from value-domain shifted windows:
    # pad the flattened image by W+1 zero rows on each side (covers all y
    # shifts), take 9 static slices, and mask the column-wrap rows for x shifts.
    zpad = jnp.zeros((W + 1, Cp), jnp.float32)
    padded = jnp.concatenate([zpad, h1, zpad], axis=0)      # [HW + 2W + 2, Cp]
    w_id = jax.lax.broadcasted_iota(jnp.int32, (HW, 1), 0) % W
    not_left = w_id > 0                                     # valid for dx = -1
    not_right = w_id < (W - 1)                              # valid for dx = +1

    cols = []
    for dy in (-1, 0, 1):
        for dx in (-1, 0, 1):
            off = (W + 1) + dy * W + dx
            win = padded[off:off + HW, :]                   # [HW, Cp] f32
            if dx == -1:
                win = jnp.where(not_left, win, 0.0)
            elif dx == 1:
                win = jnp.where(not_right, win, 0.0)
            cols.append(win.astype(jnp.bfloat16))
    patches = jnp.concatenate(cols, axis=1)                 # [HW, 9*Cp] bf16

    h2 = jnp.dot(patches, w2_ref[...], preferred_element_type=jnp.float32)
    h2 = jnp.maximum(h2 * sb2_ref[0:1, :] + sb2_ref[1:2, :], 0.0)   # [HW, Cp]

    # --- conv3 (1x1) + bn3 + residual add + relu -----------------------------
    out = jnp.dot(h2.astype(jnp.bfloat16), w3_ref[...],
                  preferred_element_type=jnp.float32)
    out = out * sb3_ref[0:1, :] + sb3_ref[1:2, :]           # [HW, Cout] f32
    out = jnp.maximum(out + x_t, 0.0)                       # residual in f32
    o_ref[...] = out.T                                      # [Cout, HW] lane-dense


# ----------------------------------------------------------------------------
# Trace-time helpers (lane padding, BN affine) and the host wrapper.
# ----------------------------------------------------------------------------
def _round_up_128(n):
    return max(128, ((n + 127) // 128) * 128)


def _bn_scale_bias(bn, c_pad):
    """Inference BN as f32 (scale, bias) rows, zero-padded to c_pad channels."""
    scale = bn["gamma"] * jax.lax.rsqrt(bn["var"] + BN_EPS)
    bias = bn["beta"] - bn["mean"] * scale
    c = scale.shape[0]
    sb = jnp.zeros((2, c_pad), jnp.float32)
    sb = sb.at[0, :c].set(scale.astype(jnp.float32))
    sb = sb.at[1, :c].set(bias.astype(jnp.float32))
    return sb


def _pad2d_bf16(w, rows, cols):
    out = jnp.zeros((rows, cols), jnp.bfloat16)
    return out.at[: w.shape[0], : w.shape[1]].set(w.astype(jnp.bfloat16))


def bottleneck_forward(params, x_nchw):
    """Bottleneck forward. x_nchw: [N, Cin, H, W] f32 -> [N, Cin, H, W] f32."""
    N, Cin, H, W = x_nchw.shape
    HW = H * W

    width = params["w1"].shape[1]
    Cout = params["w3"].shape[1]
    assert Cout == Cin, "downsample=None requires inplanes == planes * expansion"

    Cp = _round_up_128(width)            # lane-pad the bottleneck width

    # Weights stay plain bf16 (BN scale applied in f32 inside the kernel).
    w1 = _pad2d_bf16(params["w1"], Cin, Cp)                     # [Cin, Cp]
    sb1 = _bn_scale_bias(params["bn1"], Cp)                     # [2, Cp]
    w2p = jnp.zeros((3, 3, Cp, Cp), jnp.bfloat16)
    w2p = w2p.at[:, :, :width, :width].set(params["w2"].astype(jnp.bfloat16))
    w2 = w2p.reshape(9 * Cp, Cp)                                # [9*Cp, Cp]
    sb2 = _bn_scale_bias(params["bn2"], Cp)                     # [2, Cp]
    w3 = _pad2d_bf16(params["w3"], Cp, Cout)                    # [Cp, Cout]
    sb3 = _bn_scale_bias(params["bn3"], Cout)                   # [2, Cout]

    # Native NCHW layout -> [N, C, H*W]: a pure reshape, no transpose / copy.
    x3 = x_nchw.reshape(N, Cin, HW).astype(jnp.float32)

    flops = 2 * N * HW * (Cin * Cp + 9 * Cp * Cp + Cp * Cout)
    bytes_accessed = (N * HW * (Cin + Cout) * 4
                      + (w1.size + w2.size + w3.size) * 2
                      + (sb1.size + sb2.size + sb3.size) * 4)

    kernel = functools.partial(_bottleneck_kernel, H=H, W=W)

    out3 = pl.pallas_call(
        kernel,
        out_shape=jax.ShapeDtypeStruct((N, Cout, HW), jnp.float32),
        grid=(N,),
        in_specs=[
            pl.BlockSpec((None, Cin, HW), lambda n: (n, 0, 0)),    # x (per image)
            pl.BlockSpec((Cin, Cp), lambda n: (0, 0)),             # w1
            pl.BlockSpec((2, Cp), lambda n: (0, 0)),               # bn1 scale/bias
            pl.BlockSpec((9 * Cp, Cp), lambda n: (0, 0)),          # w2 (im2col)
            pl.BlockSpec((2, Cp), lambda n: (0, 0)),               # bn2 scale/bias
            pl.BlockSpec((Cp, Cout), lambda n: (0, 0)),            # w3
            pl.BlockSpec((2, Cout), lambda n: (0, 0)),             # bn3 scale/bias
        ],
        out_specs=pl.BlockSpec((None, Cout, HW), lambda n: (n, 0, 0)),
        compiler_params=pltpu.CompilerParams(dimension_semantics=("parallel",)),
        cost_estimate=pl.CostEstimate(flops=flops, transcendentals=0,
                                      bytes_accessed=bytes_accessed),
    )(x3, w1, sb1, w2, sb2, w3, sb3)

    return out3.reshape(N, Cout, H, W)


# ----------------------------------------------------------------------------
# Parameter construction (shapes match the PyTorch module; kaiming-style init,
# BatchNorm at its fresh-init statistics).
# ----------------------------------------------------------------------------
def make_params(key, inplanes, planes, base_width=64, groups=1):
    width = int(planes * (base_width / 64.0)) * groups
    out_ch = planes * EXPANSION
    ks = jax.random.split(key, 3)

    def kaiming(k, shape, fan_out):
        return ((2.0 / fan_out) ** 0.5) * jax.random.normal(k, shape, jnp.float32)

    def bn_params(c):
        return dict(gamma=jnp.ones((c,), jnp.float32),
                    beta=jnp.zeros((c,), jnp.float32),
                    mean=jnp.zeros((c,), jnp.float32),
                    var=jnp.ones((c,), jnp.float32))

    return {
        # stored channel-last / HWIO so the kernel matmuls are direct
        "w1": kaiming(ks[0], (inplanes, width), width * 1 * 1),
        "bn1": bn_params(width),
        "w2": kaiming(ks[1], (3, 3, width, width), width * 3 * 3),
        "bn2": bn_params(width),
        "w3": kaiming(ks[2], (width, out_ch), out_ch * 1 * 1),
        "bn3": bn_params(out_ch),
    }


# ----------------------------------------------------------------------------
# Pure-JAX reference (f32) used as a correctness check.
# ----------------------------------------------------------------------------
def _reference_forward(params, x_nchw):
    def bn(x, p):
        scale = p["gamma"] / jnp.sqrt(p["var"] + BN_EPS)
        bias = p["beta"] - p["mean"] * scale
        return x * scale[None, :, None, None] + bias[None, :, None, None]

    def conv(x, w_oihw, padding):
        return jax.lax.conv_general_dilated(
            x, w_oihw, window_strides=(1, 1), padding=padding,
            dimension_numbers=("NCHW", "OIHW", "NCHW"))

    w1 = params["w1"].T[:, :, None, None]                 # [width, Cin, 1, 1]
    w2 = jnp.transpose(params["w2"], (3, 2, 0, 1))        # [Cout, Cin, 3, 3]
    w3 = params["w3"].T[:, :, None, None]                 # [Cout, width, 1, 1]

    out = jax.nn.relu(bn(conv(x_nchw, w1, "VALID"), params["bn1"]))
    out = jax.nn.relu(bn(conv(out, w2, ((1, 1), (1, 1))), params["bn2"]))
    out = bn(conv(out, w3, "VALID"), params["bn3"])
    return jax.nn.relu(out + x_nchw)


if __name__ == "__main__":
    key = jax.random.PRNGKey(0)
    k_x, k_p = jax.random.split(key)

    # Small but TPU-friendly Bottleneck config: no-downsample requires
    # inplanes == planes * 4.  inplanes/Cout = 128 keeps loads/stores lane-dense.
    N, H, W = 2, 16, 16
    inplanes, planes = 128, 32                      # width = 32, output = 128

    x = jax.random.normal(k_x, (N, inplanes, H, W), jnp.float32)
    params = make_params(k_p, inplanes, planes)

    fwd = jax.jit(bottleneck_forward)
    out = fwd(params, x)
    jax.block_until_ready(out)

    assert out.shape == (N, inplanes, H, W), out.shape
    assert bool(jnp.all(out >= 0.0))                # final ReLU

    # Correctness vs. a pure-JAX f32 reference (bf16 MXU inputs -> loose tol).
    ref = jax.jit(_reference_forward)(params, x)
    jax.block_until_ready(ref)
    err = float(jnp.max(jnp.abs(out - ref)))
    scale = float(jnp.max(jnp.abs(ref))) + 1e-6
    assert err <= 0.05 * scale + 0.05, (err, scale)

    print("KERNEL_OK")
</pallas_src>

<mosaic_0001>
module attributes {stable_mosaic.version = 11 : i64} {
  func.func @_bottleneck_kernel(%arg0: i32, %arg1: memref<1x128x256xf32, #tpu.memory_space<vmem>>, %arg2: memref<128x128xbf16, #tpu.memory_space<vmem>>, %arg3: memref<2x128xf32, #tpu.memory_space<vmem>>, %arg4: memref<1152x128xbf16, #tpu.memory_space<vmem>>, %arg5: memref<2x128xf32, #tpu.memory_space<vmem>>, %arg6: memref<128x128xbf16, #tpu.memory_space<vmem>>, %arg7: memref<2x128xf32, #tpu.memory_space<vmem>>, %arg8: memref<1x128x256xf32, #tpu.memory_space<vmem>>) attributes {dimension_semantics = [#tpu.dimension_semantics<parallel>], iteration_bounds = array<i64: 2>, scalar_prefetch = 0 : i64, scratch_operands = 0 : i64, tpu.core_type = #tpu.core_type<tc>, window_params = [{transform_indices = @transform_0, window_bounds = array<i64: 1, 128, 256>}, {pipeline_mode = #tpu.pipeline_mode<synchronous>, transform_indices = @transform_1, window_bounds = array<i64: 128, 128>}, {pipeline_mode = #tpu.pipeline_mode<synchronous>, transform_indices = @transform_2, window_bounds = array<i64: 2, 128>}, {pipeline_mode = #tpu.pipeline_mode<synchronous>, transform_indices = @transform_3, window_bounds = array<i64: 1152, 128>}, {pipeline_mode = #tpu.pipeline_mode<synchronous>, transform_indices = @transform_4, window_bounds = array<i64: 2, 128>}, {pipeline_mode = #tpu.pipeline_mode<synchronous>, transform_indices = @transform_5, window_bounds = array<i64: 128, 128>}, {pipeline_mode = #tpu.pipeline_mode<synchronous>, transform_indices = @transform_6, window_bounds = array<i64: 2, 128>}, {transform_indices = @transform_7, window_bounds = array<i64: 1, 128, 256>}]} {
    %c0 = arith.constant 0 : index
    %c0_0 = arith.constant 0 : index
    %c0_1 = arith.constant 0 : index
    %0 = vector.load %arg1[%c0, %c0_0, %c0_1] : memref<1x128x256xf32, #tpu.memory_space<vmem>>, vector<1x128x256xf32>
    %1 = vector.shape_cast %0 : vector<1x128x256xf32> to vector<128x256xf32>
    %2 = tpu.transpose %1, [1, 0] : vector<128x256xf32> -> vector<256x128xf32>
    %3 = arith.truncf %2 : vector<256x128xf32> to vector<256x128xbf16>
    %c0_2 = arith.constant 0 : index
    %c0_3 = arith.constant 0 : index
    %4 = vector.load %arg2[%c0_2, %c0_3] : memref<128x128xbf16, #tpu.memory_space<vmem>>, vector<128x128xbf16>
    %cst = arith.constant dense<0.000000e+00> : vector<256x128xf32>
    %5 = tpu.matmul %3, %4, %cst {dimension_numbers = #tpu.dot_dimension_numbers<[1], [0], [0], [1], [0, 0, 1, 1], [], []>} : vector<256x128xbf16>, vector<128x128xbf16>, vector<256x128xf32> -> vector<256x128xf32>
    %c0_4 = arith.constant 0 : index
    %c0_5 = arith.constant 0 : index
    %6 = vector.load %arg3[%c0_4, %c0_5] : memref<2x128xf32, #tpu.memory_space<vmem>>, vector<1x128xf32>
    %7 = vector.broadcast %6 : vector<1x128xf32> to vector<256x128xf32>
    %8 = arith.mulf %5, %7 : vector<256x128xf32>
    %c1 = arith.constant 1 : index
    %c0_6 = arith.constant 0 : index
    %9 = vector.load %arg3[%c1, %c0_6] : memref<2x128xf32, #tpu.memory_space<vmem>>, vector<1x128xf32>
    %10 = vector.broadcast %9 : vector<1x128xf32> to vector<256x128xf32>
    %11 = arith.addf %8, %10 : vector<256x128xf32>
    %cst_7 = arith.constant 0.000000e+00 : f32
    %12 = vector.broadcast %cst_7 : f32 to vector<256x128xf32>
    %13 = arith.maximumf %11, %12 : vector<256x128xf32>
    %cst_8 = arith.constant 0.000000e+00 : f32
    %14 = vector.broadcast %cst_8 : f32 to vector<17x128xf32>
    %15 = tpu.concatenate %14, %13, %14 in 0 : vector<17x128xf32>, vector<256x128xf32>, vector<17x128xf32> -> vector<290x128xf32>
    %16 = tpu.iota {dimensions = array<i32: 0>} : vector<256x1xi32>
    %c16_i32 = arith.constant 16 : i32
    %c0_i32 = arith.constant 0 : i32
    %17 = arith.cmpi eq, %c16_i32, %c0_i32 : i32
    %c1_i32 = arith.constant 1 : i32
    %18 = arith.select %17, %c1_i32, %c16_i32 : i32
    %19 = vector.broadcast %18 : i32 to vector<256x1xi32>
    %20 = arith.remsi %16, %19 : vector<256x1xi32>
    %c0_i32_9 = arith.constant 0 : i32
    %21 = vector.broadcast %c0_i32_9 : i32 to vector<256x1xi32>
    %22 = arith.cmpi ne, %20, %21 : vector<256x1xi32>
    %c0_i32_10 = arith.constant 0 : i32
    %23 = vector.broadcast %c0_i32_10 : i32 to vector<256x1xi32>
    %24 = arith.cmpi slt, %20, %23 : vector<256x1xi32>
    %c0_i32_11 = arith.constant 0 : i32
    %25 = arith.cmpi slt, %18, %c0_i32_11 : i32
    %26 = vector.broadcast %25 : i1 to vector<256x1xi1>
    %27 = vector.broadcast %26 : vector<256x1xi1> to vector<256x1xi1>
    %28 = arith.xori %24, %27 : vector<256x1xi1>
    %29 = arith.andi %28, %22 : vector<256x1xi1>
    %30 = vector.broadcast %18 : i32 to vector<256x1xi32>
    %31 = arith.addi %20, %30 : vector<256x1xi32>
    %32 = arith.select %29, %31, %20 : vector<256x1xi1>, vector<256x1xi32>
    %c0_i32_12 = arith.constant 0 : i32
    %33 = vector.broadcast %c0_i32_12 : i32 to vector<256x1xi32>
    %34 = arith.cmpi sgt, %32, %33 : vector<256x1xi32>
    %c15_i32 = arith.constant 15 : i32
    %35 = vector.broadcast %c15_i32 : i32 to vector<256x1xi32>
    %36 = arith.cmpi slt, %32, %35 : vector<256x1xi32>
    %37 = vector.extract_strided_slice %15 {offsets = [0, 0], sizes = [256, 128], strides = [1, 1]} : vector<290x128xf32> to vector<256x128xf32>
    %cst_13 = arith.constant 0.000000e+00 : f32
    %38 = vector.shape_cast %34 : vector<256x1xi1> to vector<256x1xi1>
    %39 = vector.broadcast %38 : vector<256x1xi1> to vector<256x128xi1>
    %40 = vector.broadcast %cst_13 : f32 to vector<256x128xf32>
    %41 = arith.select %39, %37, %40 : vector<256x128xi1>, vector<256x128xf32>
    %42 = arith.truncf %41 : vector<256x128xf32> to vector<256x128xbf16>
    %43 = vector.extract_strided_slice %15 {offsets = [1, 0], sizes = [256, 128], strides = [1, 1]} : vector<290x128xf32> to vector<256x128xf32>
    %44 = arith.truncf %43 : vector<256x128xf32> to vector<256x128xbf16>
    %45 = vector.extract_strided_slice %15 {offsets = [2, 0], sizes = [256, 128], strides = [1, 1]} : vector<290x128xf32> to vector<256x128xf32>
    %cst_14 = arith.constant 0.000000e+00 : f32
    %46 = vector.shape_cast %36 : vector<256x1xi1> to vector<256x1xi1>
    %47 = vector.broadcast %46 : vector<256x1xi1> to vector<256x128xi1>
    %48 = vector.broadcast %cst_14 : f32 to vector<256x128xf32>
    %49 = arith.select %47, %45, %48 : vector<256x128xi1>, vector<256x128xf32>
    %50 = arith.truncf %49 : vector<256x128xf32> to vector<256x128xbf16>
    %51 = vector.extract_strided_slice %15 {offsets = [16, 0], sizes = [256, 128], strides = [1, 1]} : vector<290x128xf32> to vector<256x128xf32>
    %cst_15 = arith.constant 0.000000e+00 : f32
    %52 = vector.shape_cast %34 : vector<256x1xi1> to vector<256x1xi1>
    %53 = vector.broadcast %52 : vector<256x1xi1> to vector<256x128xi1>
    %54 = vector.broadcast %cst_15 : f32 to vector<256x128xf32>
    %55 = arith.select %53, %51, %54 : vector<256x128xi1>, vector<256x128xf32>
    %56 = arith.truncf %55 : vector<256x128xf32> to vector<256x128xbf16>
    %57 = vector.extract_strided_slice %15 {offsets = [17, 0], sizes = [256, 128], strides = [1, 1]} : vector<290x128xf32> to vector<256x128xf32>
    %58 = arith.truncf %57 : vector<256x128xf32> to vector<256x128xbf16>
    %59 = vector.extract_strided_slice %15 {offsets = [18, 0], sizes = [256, 128], strides = [1, 1]} : vector<290x128xf32> to vector<256x128xf32>
    %cst_16 = arith.constant 0.000000e+00 : f32
    %60 = vector.shape_cast %36 : vector<256x1xi1> to vector<256x1xi1>
    %61 = vector.broadcast %60 : vector<256x1xi1> to vector<256x128xi1>
    %62 = vector.broadcast %cst_16 : f32 to vector<256x128xf32>
    %63 = arith.select %61, %59, %62 : vector<256x128xi1>, vector<256x128xf32>
    %64 = arith.truncf %63 : vector<256x128xf32> to vector<256x128xbf16>
    %65 = vector.extract_strided_slice %15 {offsets = [32, 0], sizes = [256, 128], strides = [1, 1]} : vector<290x128xf32> to vector<256x128xf32>
    %cst_17 = arith.constant 0.000000e+00 : f32
    %66 = vector.shape_cast %34 : vector<256x1xi1> to vector<256x1xi1>
    %67 = vector.broadcast %66 : vector<256x1xi1> to vector<256x128xi1>
    %68 = vector.broadcast %cst_17 : f32 to vector<256x128xf32>
    %69 = arith.select %67, %65, %68 : vector<256x128xi1>, vector<256x128xf32>
    %70 = arith.truncf %69 : vector<256x128xf32> to vector<256x128xbf16>
    %71 = vector.extract_strided_slice %15 {offsets = [33, 0], sizes = [256, 128], strides = [1, 1]} : vector<290x128xf32> to vector<256x128xf32>
    %72 = arith.truncf %71 : vector<256x128xf32> to vector<256x128xbf16>
    %73 = vector.extract_strided_slice %15 {offsets = [34, 0], sizes = [256, 128], strides = [1, 1]} : vector<290x128xf32> to vector<256x128xf32>
    %cst_18 = arith.constant 0.000000e+00 : f32
    %74 = vector.shape_cast %36 : vector<256x1xi1> to vector<256x1xi1>
    %75 = vector.broadcast %74 : vector<256x1xi1> to vector<256x128xi1>
    %76 = vector.broadcast %cst_18 : f32 to vector<256x128xf32>
    %77 = arith.select %75, %73, %76 : vector<256x128xi1>, vector<256x128xf32>
    %78 = arith.truncf %77 : vector<256x128xf32> to vector<256x128xbf16>
    %79 = tpu.concatenate %42, %44, %50, %56, %58, %64, %70, %72, %78 in 1 : vector<256x128xbf16>, vector<256x128xbf16>, vector<256x128xbf16>, vector<256x128xbf16>, vector<256x128xbf16>, vector<256x128xbf16>, vector<256x128xbf16>, vector<256x128xbf16>, vector<256x128xbf16> -> vector<256x1152xbf16>
    %c0_19 = arith.constant 0 : index
    %c0_20 = arith.constant 0 : index
    %80 = vector.load %arg4[%c0_19, %c0_20] : memref<1152x128xbf16, #tpu.memory_space<vmem>>, vector<1152x128xbf16>
    %cst_21 = arith.constant dense<0.000000e+00> : vector<256x128xf32>
    %81 = tpu.matmul %79, %80, %cst_21 {dimension_numbers = #tpu.dot_dimension_numbers<[1], [0], [0], [1], [0, 0, 1, 1], [], []>} : vector<256x1152xbf16>, vector<1152x128xbf16>, vector<256x128xf32> -> vector<256x128xf32>
    %c0_22 = arith.constant 0 : index
    %c0_23 = arith.constant 0 : index
    %82 = vector.load %arg5[%c0_22, %c0_23] : memref<2x128xf32, #tpu.memory_space<vmem>>, vector<1x128xf32>
    %83 = vector.broadcast %82 : vector<1x128xf32> to vector<256x128xf32>
    %84 = arith.mulf %81, %83 : vector<256x128xf32>
    %c1_24 = arith.constant 1 : index
    %c0_25 = arith.constant 0 : index
    %85 = vector.load %arg5[%c1_24, %c0_25] : memref<2x128xf32, #tpu.memory_space<vmem>>, vector<1x128xf32>
    %86 = vector.broadcast %85 : vector<1x128xf32> to vector<256x128xf32>
    %87 = arith.addf %84, %86 : vector<256x128xf32>
    %cst_26 = arith.constant 0.000000e+00 : f32
    %88 = vector.broadcast %cst_26 : f32 to vector<256x128xf32>
    %89 = arith.maximumf %87, %88 : vector<256x128xf32>
    %90 = arith.truncf %89 : vector<256x128xf32> to vector<256x128xbf16>
    %c0_27 = arith.constant 0 : index
    %c0_28 = arith.constant 0 : index
    %91 = vector.load %arg6[%c0_27, %c0_28] : memref<128x128xbf16, #tpu.memory_space<vmem>>, vector<128x128xbf16>
    %cst_29 = arith.constant dense<0.000000e+00> : vector<256x128xf32>
    %92 = tpu.matmul %90, %91, %cst_29 {dimension_numbers = #tpu.dot_dimension_numbers<[1], [0], [0], [1], [0, 0, 1, 1], [], []>} : vector<256x128xbf16>, vector<128x128xbf16>, vector<256x128xf32> -> vector<256x128xf32>
    %c0_30 = arith.constant 0 : index
    %c0_31 = arith.constant 0 : index
    %93 = vector.load %arg7[%c0_30, %c0_31] : memref<2x128xf32, #tpu.memory_space<vmem>>, vector<1x128xf32>
    %94 = vector.broadcast %93 : vector<1x128xf32> to vector<256x128xf32>
    %95 = arith.mulf %92, %94 : vector<256x128xf32>
    %c1_32 = arith.constant 1 : index
    %c0_33 = arith.constant 0 : index
    %96 = vector.load %arg7[%c1_32, %c0_33] : memref<2x128xf32, #tpu.memory_space<vmem>>, vector<1x128xf32>
    %97 = vector.broadcast %96 : vector<1x128xf32> to vector<256x128xf32>
    %98 = arith.addf %95, %97 : vector<256x128xf32>
    %99 = arith.addf %98, %2 : vector<256x128xf32>
    %cst_34 = arith.constant 0.000000e+00 : f32
    %100 = vector.broadcast %cst_34 : f32 to vector<256x128xf32>
    %101 = arith.maximumf %99, %100 : vector<256x128xf32>
    %102 = tpu.transpose %101, [1, 0] : vector<256x128xf32> -> vector<128x256xf32>
    %c0_35 = arith.constant 0 : index
    %c0_36 = arith.constant 0 : index
    %c0_37 = arith.constant 0 : index
    %103 = vector.load %arg8[%c0_35, %c0_36, %c0_37] : memref<1x128x256xf32, #tpu.memory_space<vmem>>, vector<1x128x256xf32>
    %104 = vector.shape_cast %103 : vector<1x128x256xf32> to vector<128x256xf32>
    %105 = vector.shape_cast %102 : vector<128x256xf32> to vector<1x128x256xf32>
    tpu.vector_store %arg8[%c0_35, %c0_36, %c0_37], %105 {strides = array<i32>} : memref<1x128x256xf32, #tpu.memory_space<vmem>>, vector<1x128x256xf32>,
    return
  }
  func.func @transform_0(%arg0: i32) -> (i32, i32, i32) {
    %c0_i32 = arith.constant 0 : i32
    %c0_i32_0 = arith.constant 0 : i32
    %c0_i32_1 = arith.constant 0 : i32
    return %arg0, %c0_i32, %c0_i32_0 : i32, i32, i32
  }
  func.func @transform_1(%arg0: i32) -> (i32, i32) {
    %c0_i32 = arith.constant 0 : i32
    %c0_i32_0 = arith.constant 0 : i32
    %c0_i32_1 = arith.constant 0 : i32
    return %c0_i32, %c0_i32_0 : i32, i32
  }
  func.func @transform_2(%arg0: i32) -> (i32, i32) {
    %c0_i32 = arith.constant 0 : i32
    %c0_i32_0 = arith.constant 0 : i32
    %c0_i32_1 = arith.constant 0 : i32
    return %c0_i32, %c0_i32_0 : i32, i32
  }
  func.func @transform_3(%arg0: i32) -> (i32, i32) {
    %c0_i32 = arith.constant 0 : i32
    %c0_i32_0 = arith.constant 0 : i32
    %c0_i32_1 = arith.constant 0 : i32
    return %c0_i32, %c0_i32_0 : i32, i32
  }
  func.func @transform_4(%arg0: i32) -> (i32, i32) {
    %c0_i32 = arith.constant 0 : i32
    %c0_i32_0 = arith.constant 0 : i32
    %c0_i32_1 = arith.constant 0 : i32
    return %c0_i32, %c0_i32_0 : i32, i32
  }
  func.func @transform_5(%arg0: i32) -> (i32, i32) {
    %c0_i32 = arith.constant 0 : i32
    %c0_i32_0 = arith.constant 0 : i32
    %c0_i32_1 = arith.constant 0 : i32
    return %c0_i32, %c0_i32_0 : i32, i32
  }
  func.func @transform_6(%arg0: i32) -> (i32, i32) {
    %c0_i32 = arith.constant 0 : i32
    %c0_i32_0 = arith.constant 0 : i32
    %c0_i32_1 = arith.constant 0 : i32
    return %c0_i32, %c0_i32_0 : i32, i32
  }
  func.func @transform_7(%arg0: i32) -> (i32, i32, i32) {
    %c0_i32 = arith.constant 0 : i32
    %c0_i32_0 = arith.constant 0 : i32
    %c0_i32_1 = arith.constant 0 : i32
    return %arg0, %c0_i32, %c0_i32_0 : i32, i32, i32
  }
}

</mosaic_0001>

<bundles_post_ra>
// kernel: bottleneck_forward.1
= control target key start
LH: loop header
LB: loop body
LE: loop exit
PB: predicated region body
PF: predicated region fallthrough
CT: control target
= control target key end

     0   :  { %s5291_s24 = smov 0   ;;  %s7302_s0 = inlined_call_operand.vmem [shape: f32[2,128,256], index: 0, kind: input, shape index: {}]   ;;  %s7303_s1 = inlined_call_operand.vmem [shape: bf16[128,128], index: 1, kind: input, shape index: {}]   ;;  %s7304_s2 = inlined_call_operand.vmem [shape: f32[2,128], index: 2, kind: input, shape index: {}]   ;;  %s7305_s3 = inlined_call_operand.vmem [shape: bf16[1152,128], index: 3, kind: input, shape index: {}]   ;;  %s7306_s4 = inlined_call_operand.vmem [shape: f32[2,128], index: 4, kind: input, shape index: {}]   ;;  %s7307_s5 = inlined_call_operand.vmem [shape: bf16[128,128], index: 5, kind: input, shape index: {}]   ;;  %s7308_s6 = inlined_call_operand.vmem [shape: f32[2,128], index: 6, kind: input, shape index: {}]   ;;  %s7309_s7 = inlined_call_operand.vmem [shape: f32[2,128,256], index: 7, kind: output, shape index: {}]  }
   0x1 LB: > { %s4067_s25 = sadd.s32 4294967295, %s5245_s24   ;;  %p4071_p0 = scmp.ge.s32.totalorder %s5245_s24, 1  ;;  %s5245_s24 = sphi %s5291_s24, %s17_s24  }
   0x2   : > { %p237_p1 = scmp.lt.s32.totalorder %s5245_s24, 3 }
   0x4   : > { %p238_p2 = pnand %p4071_p0, %p237_p1 }
   0x6   : > { %241 = sbr.rel (%p238_p2) target bundleno = 1330 (0x532), region = 48 }
   0xd   : > { %p269_p3 = scmp.lt.s32.totalorder %s4067_s25, 1  ;;  %v5151_v0 = vld [vmem:[%s7303_s1] sm:$0xff]   ;;  %v5152_v1 = vld [vmem:[%s7303_s1 + $0x8] sm:$0xff]   ;;  %v5153_v2 = vld [vmem:[%s7303_s1 + $0x10] sm:$0xff]   ;;  %vm7353_vm0 = vcmask 1040384   ;;  %vm7360_vm1 = vcmask 1045504  }
   0xe   : > { %4979 = vmatprep.subr.bf16.mxu0 %v5151_v0  ;;  %5123 = vmatprep.subr.bf16.mxu1 %v5151_v0  ;;  %v5154_v5 = vld [vmem:[%s7303_s1 + $0x18] sm:$0xff]   ;;  %v5155_v9 = vld [vmem:[%s7303_s1 + $0x20] sm:$0xff]   ;;  %v5156_v12 = vld [vmem:[%s7303_s1 + $0x28] sm:$0xff]   ;;  %vm7352_vm5 = vsmask.f32 7424  ;;  %vm7363_vm7 = vmmov 1  }
   0xf   : > { %s7737_s25 = smov (!%p269_p3, %s4067_s25), 1  ;;  %4980 = vmatpush3.bf16.msra.mxu0 %v5151_v0  ;;  %5131 = vmatpush3.bf16.msra.mxu1 %v5151_v0  ;;  %v5157_v15 = vld [vmem:[%s7303_s1 + $0x30] sm:$0xff]   ;;  %v5158_v18 = vld [vmem:[%s7303_s1 + $0x38] sm:$0xff]   ;;  %v5159_v40 = vld [vmem:[%s7305_s3 + $0xc0] sm:$0xff]  }
  0x10   : > { %s4457_s30 = sshll.u32 %s7737_s25, 8  ;;  %4981 = vmatprep.subr.bf16.mxu0 %v5152_v1  ;;  %5124 = vmatprep.subr.bf16.mxu1 %v5152_v1  ;;  %v5161_v41 = vld [vmem:[%s7305_s3 + $0x40] sm:$0xff]   ;;  %v5162_v53 = vld [vmem:[%s7305_s3 + $0xc8] sm:$0xff]   ;;  %v5166_v60 = vld [vmem:[%s7305_s3 + $0xd0] sm:$0xff]  }
  0x11   : > { %s5316_s12 = scalar_lea.vmem %s7302_s0, %s4457_s30  ;;  %v5160_v51 = vld [vmem:[%s7305_s3 + $0x80] sm:$0xff]   ;;  %v5164_v58 = vld [vmem:[%s7305_s3 + $0x88] sm:$0xff]   ;;  %v5168_v0 = vld [vmem:[%s7305_s3 + $0x90] sm:$0xff]   ;;  %s7265_s17 = scalar_lea.vmem %s7309_s7, %s4457_s30 }
  0x12   : > { %v280_v3 = vld [vmem:[%s5316_s12] sm:$0xff]  ;;  %v282_v4 = vld [vmem:[%s5316_s12 + $0x10] sm:$0xff]  ;;  %v281_v6 = vld [vmem:[%s5316_s12 + $0x8] sm:$0xff] }
  0x13   : > { %312 = vxpose.xlu0.b32.start [1/16] %v280_v3, 128  ;;  %4982 = vmatpush3.bf16.msra.mxu0 %v5152_v1  ;;  %v283_v7 = vld [vmem:[%s5316_s12 + $0x18] sm:$0xff]  ;;  %v284_v8 = vld [vmem:[%s5316_s12 + $0x20] sm:$0xff]  ;;  %v285_v10 = vld [vmem:[%s5316_s12 + $0x28] sm:$0xff] }
  0x14   : > { %4983 = vmatprep.subr.bf16.mxu0 %v5153_v2  ;;  %5132 = vmatpush3.bf16.msra.mxu1 %v5152_v1  ;;  %v286_v11 = vld [vmem:[%s5316_s12 + $0x30] sm:$0xff]  ;;  %v287_v13 = vld [vmem:[%s5316_s12 + $0x38] sm:$0xff]  ;;  %v288_v14 = vld [vmem:[%s5316_s12 + $0x40] sm:$0xff] }
  0x15   : > { %5125 = vmatprep.subr.bf16.mxu1 %v5153_v2  ;;  %344 = vxpose.xlu1.b32.start [1/16] %v281_v6, 128  ;;  %v289_v16 = vld [vmem:[%s5316_s12 + $0x48] sm:$0xff]  ;;  %v290_v17 = vld [vmem:[%s5316_s12 + $0x50] sm:$0xff]  ;;  %v291_v19 = vld [vmem:[%s5316_s12 + $0x58] sm:$0xff] }
  0x16   : > { %v292_v20 = vld [vmem:[%s5316_s12 + $0x60] sm:$0xff]  ;;  %v293_v21 = vld [vmem:[%s5316_s12 + $0x68] sm:$0xff]  ;;  %v294_v22 = vld [vmem:[%s5316_s12 + $0x70] sm:$0xff] }
  0x17   : > { %313 = vxpose.xlu0.b32.cont [2/16] %v282_v4, 128  ;;  %4984 = vmatpush3.bf16.msra.mxu0 %v5153_v2  ;;  %v295_v23 = vld [vmem:[%s5316_s12 + $0x78] sm:$0xff]  ;;  %v296_v24 = vld [vmem:[%s5316_s12 + $0x80] sm:$0xff]  ;;  %v297_v25 = vld [vmem:[%s5316_s12 + $0x88] sm:$0xff] }
  0x18   : > { %4985 = vmatprep.subr.bf16.mxu0 %v5154_v5  ;;  %5133 = vmatpush3.bf16.msra.mxu1 %v5153_v2  ;;  %v298_v26 = vld [vmem:[%s5316_s12 + $0x90] sm:$0xff]  ;;  %v299_v27 = vld [vmem:[%s5316_s12 + $0x98] sm:$0xff]  ;;  %v300_v28 = vld [vmem:[%s5316_s12 + $0xa0] sm:$0xff] }
  0x19   : > { %5126 = vmatprep.subr.bf16.mxu1 %v5154_v5  ;;  %345 = vxpose.xlu1.b32.cont [2/16] %v283_v7, 128  ;;  %v301_v29 = vld [vmem:[%s5316_s12 + $0xa8] sm:$0xff]  ;;  %v302_v30 = vld [vmem:[%s5316_s12 + $0xb0] sm:$0xff]  ;;  %v303_v31 = vld [vmem:[%s5316_s12 + $0xb8] sm:$0xff] }
  0x1a   : > { %v304_v32 = vld [vmem:[%s5316_s12 + $0xc0] sm:$0xff]  ;;  %v305_v33 = vld [vmem:[%s5316_s12 + $0xc8] sm:$0xff]  ;;  %v306_v34 = vld [vmem:[%s5316_s12 + $0xd0] sm:$0xff] }
  0x1b   : > { %314 = vxpose.xlu0.b32.cont [3/16] %v284_v8, 128  ;;  %4986 = vmatpush3.bf16.msra.mxu0 %v5154_v5  ;;  %v307_v35 = vld [vmem:[%s5316_s12 + $0xd8] sm:$0xff]  ;;  %v308_v36 = vld [vmem:[%s5316_s12 + $0xe0] sm:$0xff]  ;;  %v309_v37 = vld [vmem:[%s5316_s12 + $0xe8] sm:$0xff] }
  0x1c   : > { %4987 = vmatprep.subr.bf16.mxu0 %v5155_v9  ;;  %5134 = vmatpush3.bf16.msra.mxu1 %v5154_v5  ;;  %v310_v38 = vld [vmem:[%s5316_s12 + $0xf0] sm:$0xff]  ;;  %v311_v39 = vld [vmem:[%s5316_s12 + $0xf8] sm:$0xff]  ;;  %v5163_v55 = vld [vmem:[%s7305_s3] sm:$0xff]  }
  0x1d   : > { %5127 = vmatprep.subr.bf16.mxu1 %v5155_v9  ;;  %346 = vxpose.xlu1.b32.cont [3/16] %v285_v10, 128  ;;  %v5165_v59 = vld [vmem:[%s7305_s3 + $0x48] sm:$0xff]   ;;  %v5169_v1 = vld [vmem:[%s7305_s3 + $0x50] sm:$0xff]   ;;  %v5170_v3 = vld [vmem:[%s7305_s3 + $0xd8] sm:$0xff]  }
  0x1e   : > { %v5167_v62 = vld [vmem:[%s7305_s3 + $0x8] sm:$0xff]   ;;  %v5171_v5 = vld [vmem:[%s7305_s3 + $0x10] sm:$0xff]   ;;  %v5172_v8 = vld [vmem:[%s7305_s3 + $0x98] sm:$0xff]  }
  0x1f   : > { %315 = vxpose.xlu0.b32.cont [4/16] %v286_v11, 128  ;;  %4988 = vmatpush3.bf16.msra.mxu0 %v5155_v9 }
  0x20   : > { %4989 = vmatprep.subr.bf16.mxu0 %v5156_v12  ;;  %5135 = vmatpush3.bf16.msra.mxu1 %v5155_v9 }
  0x21   : > { %5128 = vmatprep.subr.bf16.mxu1 %v5156_v12  ;;  %347 = vxpose.xlu1.b32.cont [4/16] %v287_v13, 128 }
  0x23   : > { %316 = vxpose.xlu0.b32.cont [5/16] %v288_v14, 128  ;;  %4990 = vmatpush3.bf16.msra.mxu0 %v5156_v12 }
  0x24   : > { %4991 = vmatprep.subr.bf16.mxu0 %v5157_v15  ;;  %5136 = vmatpush3.bf16.msra.mxu1 %v5156_v12 }
  0x25   : > { %5129 = vmatprep.subr.bf16.mxu1 %v5157_v15  ;;  %348 = vxpose.xlu1.b32.cont [5/16] %v289_v16, 128 }
  0x27   : > { %317 = vxpose.xlu0.b32.cont [6/16] %v290_v17, 128  ;;  %4992 = vmatpush3.bf16.msra.mxu0 %v5157_v15 }
  0x28   : > { %4993 = vmatprep.subr.bf16.mxu0 %v5158_v18  ;;  %5137 = vmatpush3.bf16.msra.mxu1 %v5157_v15 }
  0x29   : > { %5130 = vmatprep.subr.bf16.mxu1 %v5158_v18  ;;  %349 = vxpose.xlu1.b32.cont [6/16] %v291_v19, 128 }
  0x2b   : > { %318 = vxpose.xlu0.b32.cont [7/16] %v292_v20, 128  ;;  %4994 = vmatpush3.bf16.msra.mxu0 %v5158_v18 }
  0x2c   : > { %5138 = vmatpush3.bf16.msra.mxu1 %v5158_v18  ;;  %4595 = vmatprep.subr.bf16.mxu0 %v5159_v40  ;;  %v5176_v40 = vld [vmem:[%s7305_s3 + $0xa0] sm:$0xff]  }
  0x2d   : > { %350 = vxpose.xlu1.b32.cont [7/16] %v293_v21, 128  ;;  %4483 = vmatprep.subr.bf16.mxu1 %v5161_v41  ;;  %v5175_v41 = vld [vmem:[%s7305_s3 + $0x18] sm:$0xff]  }
  0x2f   : > { %319 = vxpose.xlu0.b32.cont [8/16] %v294_v22, 128 }
  0x31   : > { %351 = vxpose.xlu1.b32.cont [8/16] %v295_v23, 128 }
  0x33   : > { %320 = vxpose.xlu0.b32.cont [9/16] %v296_v24, 128 }
  0x35   : > { %352 = vxpose.xlu1.b32.cont [9/16] %v297_v25, 128 }
  0x37   : > { %321 = vxpose.xlu0.b32.cont [10/16] %v298_v26, 128 }
  0x39   : > { %353 = vxpose.xlu1.b32.cont [10/16] %v299_v27, 128 }
  0x3b   : > { %322 = vxpose.xlu0.b32.cont [11/16] %v300_v28, 128 }
  0x3d   : > { %354 = vxpose.xlu1.b32.cont [11/16] %v301_v29, 128 }
  0x3f   : > { %323 = vxpose.xlu0.b32.cont [12/16] %v302_v30, 128 }
  0x41   : > { %355 = vxpose.xlu1.b32.cont [12/16] %v303_v31, 128 }
  0x43   : > { %324 = vxpose.xlu0.b32.cont [13/16] %v304_v32, 128 }
  0x45   : > { %356 = vxpose.xlu1.b32.cont [13/16] %v305_v33, 128 }
  0x47   : > { %325 = vxpose.xlu0.b32.cont [14/16] %v306_v34, 128 }
  0x49   : > { %357 = vxpose.xlu1.b32.cont [14/16] %v307_v35, 128 }
  0x4b   : > { %326 = vxpose.xlu0.b32.cont [15/16] %v308_v36, 128 }
  0x4d   : > { %358 = vxpose.xlu1.b32.cont [15/16] %v309_v37, 128 }
  0x4f   : > { %327 = vxpose.xlu0.b32.end [16/16] %v310_v38, 128  ;;  %v5174_v38 = vld [vmem:[%s7305_s3 + $0xe0] sm:$0xff]  }
  0x51   : > { %359 = vxpose.xlu1.b32.end [16/16] %v311_v39, 128  ;;  %v5173_v39 = vld [vmem:[%s7305_s3 + $0x58] sm:$0xff]  }
  0x93   : > { %v5371_v42 = vpop.trf.xlu0 }
  0x94   : > { %7424 = vst [vmem:[#allocation2_spill] sm:$0xff] %v5371_v42 }
  0x95   : > { %v5373_v43 = vpop.trf.xlu1 }
  0x96   : > { %7425 = vst [vmem:[#allocation3_spill] sm:$0xff] %v5373_v43 }
  0x97   : > { %v5375_v44 = vpop.trf.xlu0 }
  0x98   : > { %7426 = vst [vmem:[#allocation4_spill] sm:$0xff] %v5375_v44  ;;  %v376_v45 = vpack.c.bf16 %v5375_v44, %v5371_v42 }
  0x99   : > { %v5379_v46 = vpop.trf.xlu1 }
  0x9a   : > { %4995 = vmatprep.mubr.bf16.mxu0 %v376_v45  ;;  %7427 = vst [vmem:[#allocation5_spill] sm:$0xff] %v5379_v46  ;;  %v384_v48 = vpack.c.bf16 %v5379_v46, %v5373_v43  ;;  %v5178_v45 = vld [vmem:[%s7305_s3 + $0xe8] sm:$0xff]  }
  0x9b   : > { %v5381_v47 = vpop.trf.xlu0 }
  0x9c   : > { %7428 = vst [vmem:[#allocation6_spill] sm:$0xff] %v5381_v47  ;;  %5011 = vmatprep.mubr.bf16.mxu1 %v384_v48  ;;  %v5177_v48 = vld [vmem:[%s7305_s3 + $0x60] sm:$0xff]  }
  0x9d   : > { %v5385_v49 = vpop.trf.xlu1 }
  0x9e   : > { %7429 = vst [vmem:[#allocation7_spill] sm:$0xff] %v5385_v49 }
  0x9f   : > { %v5387_v50 = vpop.trf.xlu0 }
  0xa0   : > { %7430 = vst [vmem:[#allocation8_spill] sm:$0xff] %v5387_v50  ;;  %v377_v52 = vpack.c.bf16 %v5387_v50, %v5381_v47 }
  0xa1   : > { %v5397_v54 = vpop.trf.xlu1 }
  0xa2   : > { %4996 = vmatmul.mubr.bf16.vlgmr.msra.gmra.mrb[0].mxu0 %v377_v52  ;;  %7431 = vst [vmem:[#allocation9_spill] sm:$0xff] %v5397_v54  ;;  %v385_v57 = vpack.c.bf16 %v5397_v54, %v5385_v49  ;;  %v5179_v52 = vld [vmem:[%s7305_s3 + $0x20] sm:$0xff]   ;;  %v5193_v54 = vld [vmem:[%s7305_s3 + $0x148] sm:$0xff]  }
  0xa3   : > { %v5402_v56 = vpop.trf.xlu0  ;;  %4596 = vmatpush3.bf16.msra.mxu0 %v5160_v51  ;;  %v5180_v51 = vld [vmem:[%s7305_s3 + $0xa8] sm:$0xff]  }
  0xa4   : > { %7432 = vst [vmem:[#allocation10_spill] sm:$0xff] %v5402_v56  ;;  %4597 = vmatprep.subr.bf16.mxu0 %v5162_v53  ;;  %5012 = vmatmul.mubr.bf16.vlgmr.msra.gmra.mrb[0].mxu1 %v385_v57  ;;  %v5182_v53 = vld [vmem:[%s7305_s3 + $0xf0] sm:$0xff]  }
  0xa5   : > { %v5415_v61 = vpop.trf.xlu1  ;;  %4484 = vmatpush3.bf16.msra.mxu1 %v5163_v55  ;;  %v5181_v55 = vld [vmem:[%s7305_s3 + $0x68] sm:$0xff]   ;;  %v5184_v57 = vld [vmem:[%s7305_s3 + $0xb0] sm:$0xff]  }
  0xa6   : > { %7433 = vst [vmem:[#allocation11_spill] sm:$0xff] %v5415_v61  ;;  %4485 = vmatprep.subr.bf16.mxu1 %v5165_v59  ;;  %v5186_v59 = vld [vmem:[%s7305_s3 + $0xf8] sm:$0xff]  }
  0xa7   : > { %v5420_v63 = vpop.trf.xlu0  ;;  %4598 = vmatpush3.bf16.msra.mxu0 %v5164_v58  ;;  %v5183_v58 = vld [vmem:[%s7305_s3 + $0x28] sm:$0xff]  }
  0xa8   : > { %7434 = vst [vmem:[#allocation12_spill] sm:$0xff] %v5420_v63  ;;  %v378_v2 = vpack.c.bf16 %v5420_v63, %v5402_v56  ;;  %4599 = vmatprep.subr.bf16.mxu0 %v5166_v60  ;;  %v5185_v60 = vld [vmem:[%s7305_s3 + $0x70] sm:$0xff]  }
  0xa9   : > { %v5433_v4 = vpop.trf.xlu1  ;;  %4486 = vmatpush3.bf16.msra.mxu1 %v5167_v62  ;;  %v5188_v62 = vld [vmem:[%s7305_s3 + $0xb8] sm:$0xff]  }
  0xaa   : > { %4999 = vmatprep.mubr.bf16.mxu0 %v378_v2  ;;  %7435 = vst [vmem:[#allocation13_spill] sm:$0xff] %v5433_v4  ;;  %v386_v7 = vpack.c.bf16 %v5433_v4, %v5415_v61  ;;  %4487 = vmatprep.subr.bf16.mxu1 %v5169_v1  ;;  %v5189_v1 = vld [vmem:[%s7305_s3 + $0x78] sm:$0xff]  }
  0xab   : > { %v5438_v6 = vpop.trf.xlu0  ;;  %4600 = vmatpush3.bf16.msra.mxu0 %v5168_v0  ;;  %v5187_v0 = vld [vmem:[%s7305_s3 + $0x30] sm:$0xff]   ;;  %v5190_v2 = vld [vmem:[%s7305_s3 + $0x38] sm:$0xff]  }
  0xac   : > { %7436 = vst [vmem:[#allocation14_spill] sm:$0xff] %v5438_v6  ;;  %4601 = vmatprep.subr.bf16.mxu0 %v5170_v3  ;;  %5015 = vmatprep.mubr.bf16.mxu1 %v386_v7  ;;  %v5191_v3 = vld [vmem:[%s7305_s3 + $0x140] sm:$0xff]   ;;  %v854_v7 = vlaneseq }
  0xad   : > { %v5445_v9 = vpop.trf.xlu1  ;;  %4488 = vmatpush3.bf16.msra.mxu1 %v5171_v5  ;;  %v5203_v5 = vld [vmem:[%s7305_s3 + $0x1c0] sm:$0xff]  }
  0xae   : > { %7437 = vst [vmem:[#allocation15_spill] sm:$0xff] %v5445_v9  ;;  %4489 = vmatprep.subr.bf16.mxu1 %v5173_v39 }
  0xaf   : > { %v5447_v10 = vpop.trf.xlu0  ;;  %4602 = vmatpush3.bf16.msra.mxu0 %v5172_v8  ;;  %v5563_v8 = vshrl.u32 %v854_v7, 7 }
  0xb0   : > { %7438 = vst [vmem:[#allocation16_spill] sm:$0xff] %v5447_v10  ;;  %v379_v11 = vpack.c.bf16 %v5447_v10, %v5438_v6  ;;  %4603 = vmatprep.subr.bf16.mxu0 %v5174_v38 }
  0xb1   : > { %v5451_v12 = vpop.trf.xlu1  ;;  %4490 = vmatpush3.bf16.msra.mxu1 %v5175_v41  ;;  %v5594_v39 = vadd.s32 64, %v5563_v8  ;;  %v7310_v41 = vmov 0.0  }
  0xb2   : > { %5000 = vmatmul.mubr.bf16.gmra.mrb[4].mxu0 %v379_v11  ;;  %7439 = vst [vmem:[#allocation17_spill] sm:$0xff] %v5451_v12  ;;  %v387_v14 = vpack.c.bf16 %v5451_v12, %v5445_v9  ;;  %4491 = vmatprep.subr.bf16.mxu1 %v5177_v48  ;;  %v856_v11 = vadd.s32 8, %v5563_v8 }
  0xb3   : > { %v5453_v13 = vpop.trf.xlu0  ;;  %4604 = vmatpush3.bf16.msra.mxu0 %v5176_v40 }
  0xb4   : > { %7440 = vst [vmem:[#allocation18_spill] sm:$0xff] %v5453_v13  ;;  %5016 = vmatmul.mubr.bf16.gmra.mrb[4].mxu1 %v387_v14  ;;  %4605 = vmatprep.subr.bf16.mxu0 %v5178_v45  ;;  %v857_v14 = vadd.s32 16, %v5563_v8  ;;  %v898_v38 = vand.u32 15, %v856_v11  ;;  %v5597_v45 = vrot.slane %v7310_v41, 2  ;;  %v5206_v41 = vld [vmem:[%s7305_s3 + $0x1c8] sm:$0xff]  }
  0xb5   : > { %v5457_v15 = vpop.trf.xlu1  ;;  %4492 = vmatpush3.bf16.msra.mxu1 %v5179_v52 }
  0xb6   : > { %7441 = vst [vmem:[#allocation19_spill] sm:$0xff] %v5457_v15  ;;  %4493 = vmatprep.subr.bf16.mxu1 %v5181_v55  ;;  %7456 = vst [vmem:[#allocation34_spill] sm:$0xff] %v5597_v45  ;;  %v905_v48 = vand.u32 15, %v857_v14  ;;  %vm5617_vm3 = vcmp.lt.s32.totalorder %v898_v38, 15 }
  0xb7   : > { %v5459_v16 = vpop.trf.xlu0  ;;  %4606 = vmatpush3.bf16.msra.mxu0 %v5180_v51  ;;  %v5248_v51 = vmov 0   ;;  %vm5684_vm9 = vmpackc.low %vm5617_vm3, %vm7363_vm7 }
  0xb8   : > { %7442 = vst [vmem:[#allocation20_spill] sm:$0xff] %v5459_v16  ;;  %v380_v17 = vpack.c.bf16 %v5459_v16, %v5453_v13  ;;  %4607 = vmatprep.subr.bf16.mxu0 %v5182_v53  ;;  %v5599_v52 = vrot.slane %v5248_v51, 1  ;;  %v5602_v53 = vadd.s32 72, %v5563_v8  ;;  %vm5627_vm4 = vcmp.gt.s32.totalorder %v905_v48, 0 }
  0xb9   : > { %v5463_v18 = vpop.trf.xlu1  ;;  %4494 = vmatpush3.bf16.msra.mxu1 %v5183_v58  ;;  %vm5698_vm10 = vmpackc.low %vm7363_vm7, %vm5627_vm4 }
  0xba   : > { %5003 = vmatprep.mubr.bf16.mxu0 %v380_v17  ;;  %7443 = vst [vmem:[#allocation21_spill] sm:$0xff] %v5463_v18  ;;  %v388_v20 = vpack.c.bf16 %v5463_v18, %v5457_v15  ;;  %4495 = vmatprep.subr.bf16.mxu1 %v5185_v60  ;;  %v5568_v17 = vadd.s32 24, %v5563_v8  ;;  %7457 = vst [vmem:[#allocation35_spill] sm:$0xff] %v5599_v52  ;;  %v7505_v50 = vand.u32 15, %v5602_v53 }
  0xbb   : > { %v5465_v19 = vpop.trf.xlu0  ;;  %4608 = vmatpush3.bf16.msra.mxu0 %v5184_v57 }
  0xbc   : > { %7444 = vst [vmem:[#allocation22_spill] sm:$0xff] %v5465_v19  ;;  %5019 = vmatprep.mubr.bf16.mxu1 %v388_v20  ;;  %4609 = vmatprep.subr.bf16.mxu0 %v5186_v59  ;;  %v5571_v20 = vadd.s32 32, %v5563_v8  ;;  %v912_v58 = vand.u32 15, %v5568_v17  ;;  %v5636_v59 = vadd.s32 88, %v5563_v8 }
  0xbd   : > { %v5469_v21 = vpop.trf.xlu1  ;;  %4496 = vmatpush3.bf16.msra.mxu1 %v5187_v0 }
  0xbe   : > { %7445 = vst [vmem:[#allocation23_spill] sm:$0xff] %v5469_v21  ;;  %4497 = vmatprep.subr.bf16.mxu1 %v5189_v1  ;;  %vm5655_vm6 = vcmp.lt.s32.totalorder %v912_v58, 15 }
  0xbf   : > { %v5471_v22 = vpop.trf.xlu0  ;;  %4610 = vmatpush3.bf16.msra.mxu0 %v5188_v62  ;;  %vm5795_vm14 = vmpackc.low %vm5655_vm6, %vm7363_vm7 }
  0xc0   : > { %7446 = vst [vmem:[#allocation24_spill] sm:$0xff] %v5471_v22  ;;  %v381_v23 = vpack.c.bf16 %v5471_v22, %v5465_v19  ;;  %4819 = vmatprep.subr.bf16.mxu0 %v5203_v5  ;;  %v5250_v19 = vmov 0.0|0.0  }
  0xc1   : > { %v5475_v24 = vpop.trf.xlu1  ;;  %4498 = vmatpush3.bf16.msra.mxu1 %v5190_v2 }
  0xc2   : > { %5004 = vmatmul.mubr.bf16.gmra.mrb[8].mxu0 %v381_v23  ;;  %7447 = vst [vmem:[#allocation25_spill] sm:$0xff] %v5475_v24  ;;  %v389_v26 = vpack.c.bf16 %v5475_v24, %v5469_v21  ;;  %4707 = vmatprep.subr.bf16.mxu1 %v5191_v3  ;;  %v5576_v23 = vld [vmem:[%s7304_s2] ss:$0 sm:$0xff] }
  0xc3   : > { %v5477_v25 = vpop.trf.xlu0 }
  0xc4   : > { %7448 = vst [vmem:[#allocation26_spill] sm:$0xff] %v5477_v25  ;;  %5020 = vmatmul.mubr.bf16.gmra.mrb[8].mxu1 %v389_v26  ;;  %v891_v26 = vand.u32 15, %v5563_v8 }
  0xc5   : > { %v5481_v27 = vpop.trf.xlu1 }
  0xc6   : > { %7449 = vst [vmem:[#allocation27_spill] sm:$0xff] %v5481_v27  ;;  %vm5608_vm2 = vcmp.gt.s32.totalorder %v891_v26, 0 }
  0xc7   : > { %v5483_v28 = vpop.trf.xlu0  ;;  %vm5674_vm8 = vmpackc.low %vm7363_vm7, %vm5608_vm2 }
  0xc8   : > { %7450 = vst [vmem:[#allocation28_spill] sm:$0xff] %v5483_v28  ;;  %v382_v29 = vpack.c.bf16 %v5483_v28, %v5477_v25  ;;  %v5192_v28 = vld [vmem:[%s7305_s3 + $0x100] sm:$0xff]  }
  0xc9   : > { %v5487_v30 = vpop.trf.xlu1 }
  0xca   : > { %5007 = vmatprep.mubr.bf16.mxu0 %v382_v29  ;;  %7451 = vst [vmem:[#allocation29_spill] sm:$0xff] %v5487_v30  ;;  %v390_v32 = vpack.c.bf16 %v5487_v30, %v5481_v27  ;;  %v5580_v29 = vadd.s32 40, %v5563_v8 }
  0xcb   : > { %v5489_v31 = vpop.trf.xlu0 }
  0xcc   : > { %7452 = vst [vmem:[#allocation30_spill] sm:$0xff] %v5489_v31  ;;  %5023 = vmatprep.mubr.bf16.mxu1 %v390_v32  ;;  %v5583_v32 = vadd.s32 48, %v5563_v8  ;;  %v7476_v61 = vand.u32 15, %v5580_v29 }
  0xcd   : > { %v5493_v33 = vpop.trf.xlu1 }
  0xce   : > { %7453 = vst [vmem:[#allocation31_spill] sm:$0xff] %v5493_v33  ;;  %vm5758_vm12 = vcmp.lt.s32.totalorder %v7476_v61, 15  ;;  %v7479_v29 = vand.u32 15, %v5583_v32 }
  0xcf   : > { %v5495_v34 = vpop.trf.xlu0  ;;  %vm5877_vm3 = vmpackc.low %vm5758_vm12, %vm7363_vm7 }
  0xd0   : > { %7454 = vst [vmem:[#allocation32_spill] sm:$0xff] %v5495_v34  ;;  %v383_v35 = vpack.c.bf16 %v5495_v34, %v5489_v31  ;;  %v7473_v34 = vand.u32 15, %v5571_v20  ;;  %vm5772_vm13 = vcmp.gt.s32.totalorder %v7479_v29, 0 }
  0xd1   : > { %v5499_v36 = vpop.trf.xlu1  ;;  %vm5900_vm4 = vmpackc.low %vm7363_vm7, %vm5772_vm13 }
  0xd2   : > { %5008 = vmatmul.mubr.bf16.gmra.mrb[12].mxu0 %v383_v35  ;;  %7455 = vst [vmem:[#allocation33_spill] sm:$0xff] %v5499_v36  ;;  %v391_v37 = vpack.c.bf16 %v5499_v36, %v5493_v33  ;;  %v5586_v35 = vadd.s32 56, %v5563_v8  ;;  %vm5726_vm11 = vcmp.gt.s32.totalorder %v7473_v34, 0 }
  0xd3   : > { %vm5851_vm2 = vmpackc.low %vm7363_vm7, %vm5726_vm11  ;;  %vm5958_vm11 = vcmp.lt.s32.totalorder %v7505_v50, 15 }
  0xd4   : > { %5024 = vmatmul.mubr.bf16.gmra.mrb[12].mxu1 %v391_v37  ;;  %v5591_v37 = vld [vmem:[%s7304_s2 + $0x1] ss:$0 sm:$0xff] }
 0x175   : > { %v4997_v40 = vpop.f32.mrb[0].mxu0 }
 0x176   : > { %v624_v55 = vmul.f32 %v4997_v40, %v5576_v23  ;;  %v490_v57 = vpop.f32.mrb[1].mxu0  ;;  %v5623_v40 = vadd.s32 80, %v5563_v8 }
 0x177   : > { %v622_v60 = vmul.f32 %v5576_v23, %v490_v57  ;;  %v4998_v62 = vpop.f32.mrb[2].mxu0  ;;  %v5013_v17 = vpop.f32.mrb[0].mxu1 }
 0x178   : > { %v661_v5 = vadd.f32 %v5591_v37, %v624_v55  ;;  %v625_v7 = vmul.f32 %v4998_v62, %v5576_v23  ;;  %v493_v11 = vpop.f32.mrb[3].mxu0  ;;  %v640_v55 = vmul.f32 %v5013_v17, %v5576_v23  ;;  %v554_v38 = vpop.f32.mrb[1].mxu1 }
 0x179   : > { %v659_v51 = vadd.f32 %v5591_v37, %v622_v60  ;;  %v623_v57 = vmul.f32 %v5576_v23, %v493_v11  ;;  %v638_v26 = vmul.f32 %v5576_v23, %v554_v38  ;;  %v5014_v1 = vpop.f32.mrb[2].mxu1 }
 0x17a   : > { %v693_v3 = vmax.f32 %v661_v5, 0.0  ;;  %v662_v2 = vadd.f32 %v5591_v37, %v625_v7  ;;  %v677_v11 = vadd.f32 %v5591_v37, %v640_v55  ;;  %v641_v36 = vmul.f32 %v5014_v1, %v5576_v23  ;;  %v557_v17 = vpop.f32.mrb[3].mxu1 }
 0x17b   : > { %v691_v60 = vmax.f32 %v659_v51, 0.0  ;;  %v660_v48 = vadd.f32 %v5591_v37, %v623_v57  ;;  %v675_v62 = vadd.f32 %v5591_v37, %v638_v26  ;;  %v639_v5 = vmul.f32 %v5576_v23, %v557_v17 }
 0x17c   : > { %v694_v33 = vmax.f32 %v662_v2, 0.0  ;;  %v5644_v7 = vadd.s32 96, %v5563_v8  ;;  %v709_v27 = vmax.f32 %v677_v11, 0.0  ;;  %v678_v51 = vadd.f32 %v5591_v37, %v641_v36 }
 0x17d   : > { %v756_v38 = vrot.slane %v691_v60, 7  ;;  %v692_v30 = vmax.f32 %v660_v48, 0.0  ;;  %v759_v24 = vrot.slane %v693_v3, 7  ;;  %v707_v55 = vmax.f32 %v675_v62, 0.0  ;;  %v5194_v48 = vld [vmem:[%s7305_s3 + $0x108] sm:$0xff]  }
 0x17e   : > { %v5647_v57 = vrot.slane %v694_v33, 7  ;;  %v676_v1 = vadd.f32 %v5591_v37, %v639_v5  ;;  %v791_v21 = vrot.slane %v709_v27, 7  ;;  %v710_v17 = vmax.f32 %v678_v51, 0.0 }
 0x17f   : > { %v852_v2 = vsel %vm7353_vm0, 0.0, %v756_v38  ;;  %v757_v26 = vrot.slane %v692_v30, 7  ;;  %v5659_v33 = vrot.slane %v707_v55, 7  ;;  %v5229_v55 = vld [vmem:[%s7305_s3 + $0x230] sm:$0xff]  }
 0x180   : > { %v1530_v18 = vrot.slane %v852_v2, 2  ;;  %v5653_v60 = vsel %vm7353_vm0, %v759_v24, %v5647_v57  ;;  %v708_v36 = vmax.f32 %v676_v1, 0.0  ;;  %v5664_v27 = vrot.slane %v710_v17, 7  ;;  %v5204_v17 = vld [vmem:[%s7305_s3 + $0x180] sm:$0xff]  }
 0x181   : > { %v7320_v3 = vrot.slane %v5653_v60, 2  ;;  %v758_v62 = vsel %vm7353_vm0, %v756_v38, %v757_v26  ;;  %v760_v30 = vsel %vm7353_vm0, %v757_v26, %v759_v24 }
 0x182   : > { %v1531_v11 = vsel %vm7360_vm1, %v5597_v45, %v1530_v18  ;;  %v5669_v5 = vpack.c.bf16 %v5653_v60, %v760_v30  ;;  %v1532_v58 = vrot.slane %v758_v62, 2  ;;  %v1534_v51 = vrot.slane %v760_v30, 2 }
 0x183   : > { %v4207_v24 = vpack.c.bf16 %v1531_v11, %v5597_v45  ;;  %v5679_v38 = vpack.c.bf16 %v758_v62, %v852_v2  ;;  %v5690_v26 = vsel %vm7353_vm0, %v791_v21, %v5664_v27  ;;  %v789_v0 = vrot.slane %v708_v36, 7 }
 0x184   : > { %v7470_v2 = vmov 0  ;;  %v1892_v14 = vshll.u32 %v5669_v5, 16  ;;  %v1533_v62 = vsel %vm7360_vm1, %v1530_v18, %v1532_v58  ;;  %v1535_v30 = vsel %vm7360_vm1, %v1532_v58, %v1534_v51 }
 0x185   : > { %v7471_v2 = vsel %vm5698_vm10, 4294967295, %v7470_v2  ;;  %v5708_v36 = vsel %vm7360_vm1, %v1534_v51, %v7320_v3  ;;  %4205 = vmatprep.mubr.msk.bf16.mxu0 %vm5674_vm8, %v5679_v38  ;;  %v5001_v11 = vpop.f32.mrb[4].mxu0  ;;  %v1884_v15 = vshll.u32 %v5679_v38, 16  ;;  %v5717_v12 = vpack.c.bf16 %v1535_v30, %v1533_v62  ;;  %v5208_v30 = vld [vmem:[%s7305_s3 + $0x188] sm:$0xff]  }
 0x186   : > { %7472 = vst [vmem:[#allocation36_spill] sm:$0xff] %v7471_v2  ;;  %v628_v51 = vmul.f32 %v5001_v11, %v5576_v23  ;;  %4208 = vmatmul.mubr.msk.bf16.vlgmr.msra.gmra.mrb[16].mxu0 %vm5684_vm9, %v4207_v24  ;;  %v506_v3 = vpop.f32.mrb[5].mxu0  ;;  %v5732_v62 = vsel %vm7353_vm0, %v5659_v33, %v789_v0  ;;  %v5736_v58 = vadd.s32 104, %v5563_v8  ;;  %v1888_v24 = vshrl.u32 %v5679_v38, 16 }
 0x187   : > { %v626_v11 = vmul.f32 %v5576_v23, %v506_v3  ;;  %4211 = vmatprep.mubr.msk.bf16.mxu0 %vm5698_vm10, %v5669_v5  ;;  %v5002_v20 = vpop.f32.mrb[6].mxu0  ;;  %v1886_v34 = vrot.slane %v1884_v15, 1  ;;  %v5744_v18 = vsel %vm7353_vm0, %v789_v0, %v791_v21  ;;  %4820 = vmatpush3.bf16.msra.mxu0 %v5204_v17  ;;  %v5754_v15 = vrot.slane %v1892_v14, 1  ;;  %v5017_v17 = vpop.f32.mrb[4].mxu1 }
 0x188   : > { %v665_v31 = vadd.f32 %v5591_v37, %v628_v51  ;;  %v629_v3 = vmul.f32 %v5002_v20, %v5576_v23  ;;  %v509_v4 = vpop.f32.mrb[7].mxu0  ;;  %v5764_v0 = vpack.c.bf16 %v5690_v26, %v5744_v18  ;;  %4821 = vmatprep.subr.bf16.mxu0 %v5206_v41  ;;  %v570_v22 = vpop.f32.mrb[5].mxu1  ;;  %v5209_v41 = vld [vmem:[%s7305_s3 + $0x1d0] sm:$0xff]  }
 0x189   : > { %v663_v51 = vadd.f32 %v5591_v37, %v626_v11  ;;  %v627_v20 = vmul.f32 %v5576_v23, %v509_v4  ;;  %v1887_v14 = vsel %vm7352_vm5, %v5599_v52, %v1886_v34  ;;  %v1890_v25 = vor.u32 %v1888_v24, %v1886_v34  ;;  %v5018_v32 = vpop.f32.mrb[6].mxu1 }
 0x18a   : > { %v697_v4 = vmax.f32 %v665_v31, 0.0  ;;  %v666_v11 = vadd.f32 %v5591_v37, %v629_v3  ;;  %2658 = vmatprep.mubr.bf16.mxu1 %v1887_v14  ;;  %v644_v34 = vmul.f32 %v5017_v17, %v5576_v23  ;;  %v5785_v24 = vadd.s32 112, %v5563_v8  ;;  %v573_v17 = vpop.f32.mrb[7].mxu1 }
 0x18b   : > { %v695_v29 = vmax.f32 %v663_v51, 0.0  ;;  %v664_v49 = vadd.f32 %v5591_v37, %v627_v20  ;;  %2659 = vmatmul.mubr.bf16.vlgmr.msra.gmra.mrb[16].mxu1 %v5250_v19  ;;  %v5790_v46 = vsel %vm7352_vm5, %v1890_v25, %v5754_v15  ;;  %v7482_v31 = vmov 0  ;;  %4822 = vmatpush3.bf16.msra.mxu0 %v5208_v30  ;;  %v5210_v51 = vld [vmem:[%s7305_s3 + $0x190] sm:$0xff]   ;;  %v5211_v30 = vld [vmem:[%s7305_s3 + $0x1d8] sm:$0xff]  }
 0x18c   : > { %v7483_v31 = vsel %vm5795_vm14, 4294967295, %v7482_v31  ;;  %v642_v3 = vmul.f32 %v5576_v23, %v570_v22  ;;  %v698_v19 = vmax.f32 %v666_v11, 0.0  ;;  %4708 = vmatpush3.bf16.msra.mxu1 %v5192_v28  ;;  %2666 = vmatprep.mubr.bf16.mxu1 %v5790_v46  ;;  %v1896_v25 = vshrl.u32 %v5669_v5, 16  ;;  %v5195_v28 = vld [vmem:[%s7305_s3 + $0x150] sm:$0xff]  }
 0x18d   : > { %7484 = vst [vmem:[#allocation37_spill] sm:$0xff] %v7483_v31  ;;  %v681_v20 = vadd.f32 %v5591_v37, %v644_v34  ;;  %v645_v22 = vmul.f32 %v5018_v32, %v5576_v23  ;;  %v763_v14 = vrot.slane %v695_v29, 7  ;;  %v696_v16 = vmax.f32 %v664_v49, 0.0  ;;  %4709 = vmatprep.subr.bf16.mxu1 %v5193_v54  ;;  %4823 = vmatprep.subr.bf16.mxu0 %v5209_v41  ;;  %v5212_v41 = vld [vmem:[%s7305_s3 + $0x198] sm:$0xff]  }
 0x18e   : > { %v679_v11 = vadd.f32 %v5591_v37, %v642_v3  ;;  %v643_v43 = vmul.f32 %v5576_v23, %v573_v17  ;;  %v767_v13 = vrot.slane %v697_v4, 7  ;;  %v5818_v34 = vrot.slane %v698_v19, 7  ;;  %4214 = vmatmul.mubr.msk.bf16.gmra.mrb[20].mxu0 %vm5795_vm14, %v5717_v12 }
 0x18f   : > { %v713_v32 = vmax.f32 %v681_v20, 0.0  ;;  %v682_v49 = vadd.f32 %v5591_v37, %v645_v22  ;;  %v764_v54 = vsel %vm7353_vm0, %v5647_v57, %v763_v14  ;;  %v765_v29 = vrot.slane %v696_v16, 7  ;;  %4824 = vmatpush3.bf16.msra.mxu0 %v5210_v51 }
 0x190   : > { %v711_v10 = vmax.f32 %v679_v11, 0.0  ;;  %v680_v3 = vadd.f32 %v5591_v37, %v643_v43  ;;  %v1538_v4 = vrot.slane %v764_v54, 2  ;;  %v5832_v17 = vsel %vm7353_vm0, %v767_v13, %v5818_v34  ;;  %4710 = vmatpush3.bf16.msra.mxu1 %v5194_v48  ;;  %v5196_v43 = vld [vmem:[%s7305_s3 + $0x110] sm:$0xff]   ;;  %4825 = vmatprep.subr.bf16.mxu0 %v5211_v30  ;;  %v5197_v30 = vld [vmem:[%s7305_s3 + $0x158] sm:$0xff]  }
 0x191   : > { %v7485_v19 = vand.u32 15, %v5586_v35  ;;  %v5843_v16 = vrot.slane %v713_v32, 7  ;;  %v714_v57 = vmax.f32 %v682_v49, 0.0  ;;  %v7337_v51 = vrot.slane %v5832_v17, 2  ;;  %4711 = vmatprep.subr.bf16.mxu1 %v5195_v28 }
 0x192   : > { %v766_v22 = vsel %vm7353_vm0, %v763_v14, %v765_v29  ;;  %v768_v48 = vsel %vm7353_vm0, %v765_v29, %v767_v13  ;;  %v7488_v35 = vmov 0  ;;  %v5855_v11 = vrot.slane %v711_v10, 7  ;;  %v5213_v14 = vld [vmem:[%s7305_s3 + $0x1e0] sm:$0xff]  }
 0x193   : > { %vm5836_vm15 = vcmp.lt.s32.totalorder %v7485_v19, 15  ;;  %v7489_v35 = vsel %vm5851_vm2, 4294967295, %v7488_v35  ;;  %v5863_v32 = vpack.c.bf16 %v766_v22, %v764_v54  ;;  %v5866_v9 = vpack.c.bf16 %v5832_v17, %v768_v48  ;;  %4160 = vmatmul.mubr.msk.bf16.gmra.mrb[20].mxu1 %vm5698_vm10, %v5679_v38  ;;  %4826 = vmatpush3.bf16.msra.mxu0 %v5212_v41 }
 0x194   : > { %7490 = vst [vmem:[#allocation38_spill] sm:$0xff] %v7489_v35  ;;  %v1540_v13 = vrot.slane %v766_v22, 2  ;;  %v1542_v49 = vrot.slane %v768_v48, 2  ;;  %v7493_v10 = vrot.slane %v5653_v60, 2  ;;  %v7494_v29 = vmov 0  ;;  %v5214_v60 = vld [vmem:[%s7305_s3 + $0x1a0] sm:$0xff]   ;;  %4712 = vmatpush3.bf16.msra.mxu1 %v5196_v43  ;;  %4827 = vmatprep.subr.bf16.mxu0 %v5213_v14  ;;  %vm5997_vm13 = vmpackc.low %vm5836_vm15, %vm7363_vm7 }
 0x195   : > { %7491 = vst [vmem:[#allocation39_spill] sm:$0xff] %v5863_v32  ;;  %7492 = vst [vmem:[#allocation40_spill] sm:$0xff] %v5866_v9  ;;  %v7495_v29 = vsel %vm5877_vm3, 4294967295, %v7494_v29  ;;  %v5884_v54 = vsel %vm7353_vm0, %v5664_v27, %v5855_v11  ;;  %v5886_v19 = vrot.slane %v714_v57, 7  ;;  %v712_v22 = vmax.f32 %v680_v3, 0.0  ;;  %4217 = vmatprep.mubr.msk.bf16.mxu0 %vm5851_vm2, %v5863_v32  ;;  %v5198_v57 = vld [vmem:[%s7305_s3 + $0x118] sm:$0xff]   ;;  %4713 = vmatprep.subr.bf16.mxu1 %v5197_v30 }
 0x196   : > { %v1539_v28 = vsel %vm7360_vm1, %v7493_v10, %v1538_v4  ;;  %7496 = vst [vmem:[#allocation41_spill] sm:$0xff] %v7495_v29  ;;  %v7498_v27 = vmov 0  ;;  %v1898_v21 = vor.u32 %v1896_v25, %v5754_v15  ;;  %v1900_v3 = vshll.u32 %v5863_v32, 16  ;;  %v5199_v25 = vld [vmem:[%s7305_s3 + $0x160] sm:$0xff]   ;;  %v5216_v14 = vld [vmem:[%s7305_s3 + $0x1e8] sm:$0xff]  }
 0x197   : > { %v5895_v38 = vpack.c.bf16 %v1539_v28, %v5708_v36  ;;  %v7499_v27 = vsel %vm5900_vm4, 4294967295, %v7498_v27  ;;  %v1908_v41 = vshll.u32 %v5866_v9, 16  ;;  %v5005_v36 = vpop.f32.mrb[8].mxu0  ;;  %v1541_v48 = vsel %vm7360_vm1, %v1538_v4, %v1540_v13  ;;  %4828 = vmatpush3.bf16.msra.mxu0 %v5214_v60  ;;  %v5200_v60 = vld [vmem:[%s7305_s3 + $0x120] sm:$0xff]  }
 0x198   : > { %7500 = vst [vmem:[#allocation43_spill] sm:$0xff] %v7499_v27  ;;  %v1543_v61 = vsel %vm7360_vm1, %v1540_v13, %v1542_v49  ;;  %v5915_v10 = vsel %vm7360_vm1, %v1542_v49, %v7337_v51  ;;  %v5918_v15 = vadd.s32 120, %v5563_v8  ;;  %v632_v43 = vmul.f32 %v5005_v36, %v5576_v23  ;;  %v522_v4 = vpop.f32.mrb[9].mxu0  ;;  %4714 = vmatpush3.bf16.msra.mxu1 %v5198_v57 }
 0x199   : > { %7497 = vst [vmem:[#allocation42_spill] sm:$0xff] %v5895_v38  ;;  %4220 = vmatmul.mubr.msk.bf16.gmra.mrb[24].mxu0 %vm5877_vm3, %v5895_v38  ;;  %v1902_v13 = vrot.slane %v1900_v3, 1  ;;  %v1904_v49 = vshrl.u32 %v5863_v32, 16  ;;  %v5928_v28 = vpack.c.bf16 %v1543_v61, %v1541_v48  ;;  %v7502_v30 = vand.u32 15, %v5594_v39  ;;  %v5006_v3 = vpop.f32.mrb[10].mxu0  ;;  %v5218_v61 = vld [vmem:[%s7305_s3 + $0x1a8] sm:$0xff]   ;;  %4715 = vmatprep.subr.bf16.mxu1 %v5199_v25 }
 0x19a   : > { %v630_v36 = vmul.f32 %v5576_v23, %v522_v4  ;;  %4223 = vmatprep.mubr.msk.bf16.mxu0 %vm5900_vm4, %v5866_v9  ;;  %v1910_v6 = vrot.slane %v1908_v41, 1  ;;  %v5946_v39 = vsel %vm7353_vm0, %v5843_v16, %v5886_v19  ;;  %v797_v48 = vrot.slane %v712_v22, 7  ;;  %v525_v63 = vpop.f32.mrb[11].mxu0  ;;  %v5021_v22 = vpop.f32.mrb[8].mxu1  ;;  %4829 = vmatprep.subr.bf16.mxu0 %v5216_v14 }
 0x19b   : > { %7501 = vst [vmem:[#allocation44_spill] sm:$0xff] %v5928_v28  ;;  %vm5932_vm6 = vcmp.gt.s32.totalorder %v7502_v30, 0  ;;  %v669_v30 = vadd.f32 %v5591_v37, %v632_v43  ;;  %v633_v4 = vmul.f32 %v5006_v3, %v5576_v23  ;;  %v5954_v56 = vsel %vm7352_vm5, %v1898_v21, %v1902_v13  ;;  %4830 = vmatpush3.bf16.msra.mxu0 %v5218_v61  ;;  %v5202_v61 = vld [vmem:[%s7305_s3 + $0x128] sm:$0xff]  }
 0x19c   : > { %v1906_v41 = vor.u32 %v1904_v49, %v1902_v13  ;;  %v667_v43 = vadd.f32 %v5591_v37, %v630_v36  ;;  %v631_v3 = vmul.f32 %v5576_v23, %v525_v63  ;;  %2674 = vmatprep.mubr.bf16.mxu1 %v5954_v56  ;;  %v7508_v21 = vand.u32 15, %v5623_v40  ;;  %v586_v13 = vpop.f32.mrb[9].mxu1  ;;  %v5201_v49 = vld [vmem:[%s7305_s3 + $0x168] sm:$0xff]   ;;  %v5219_v63 = vld [vmem:[%s7305_s3 + $0x1f0] sm:$0xff]   ;;  %4716 = vmatpush3.bf16.msra.mxu1 %v5200_v60 }
 0x19d   : > { %v701_v36 = vmax.f32 %v669_v30, 0.0  ;;  %v670_v40 = vadd.f32 %v5591_v37, %v633_v4  ;;  %v5988_v50 = vsel %vm7353_vm0, %v5855_v11, %v797_v48  ;;  %v5022_v57 = vpop.f32.mrb[10].mxu1  ;;  %4163 = vmatmul.mubr.msk.bf16.gmra.mrb[24].mxu1 %vm5851_vm2, %v5669_v5  ;;  %v7511_v30 = vmov 0  ;;  %4717 = vmatprep.subr.bf16.mxu1 %v5201_v49 }
 0x19e   : > { %vm5970_vm12 = vcmp.gt.s32.totalorder %v7508_v21, 0  ;;  %v5984_v21 = vsel %vm7352_vm5, %v1906_v41, %v1910_v6  ;;  %v699_v25 = vmax.f32 %v667_v43, 0.0  ;;  %v668_v44 = vadd.f32 %v5591_v37, %v631_v3  ;;  %v589_v4 = vpop.f32.mrb[11].mxu1  ;;  %v5220_v41 = vld [vmem:[%s7305_s3 + $0x1b0] sm:$0xff]   ;;  %v5221_v3 = vld [vmem:[%s7305_s3 + $0x1f8] sm:$0xff]   ;;  %4831 = vmatprep.subr.bf16.mxu0 %v5219_v63  ;;  %vm6066_vm5 = vmpackc.low %vm7363_vm7, %vm5932_vm6 }
 0x19f   : > { %v7512_v30 = vsel %vm5997_vm13, 4294967295, %v7511_v30  ;;  %v6003_v11 = vsel %vm7353_vm0, %v797_v48, %v5843_v16  ;;  %v6007_v14 = vpack.c.bf16 %v5988_v50, %v5884_v54  ;;  %v702_v43 = vmax.f32 %v670_v40, 0.0  ;;  %2682 = vmatprep.mubr.bf16.mxu1 %v5984_v21  ;;  %v5205_v16 = vld [vmem:[%s7305_s3 + $0x170] sm:$0xff]   ;;  %4832 = vmatpush3.bf16.msra.mxu0 %v5220_v41  ;;  %v5222_v63 = vld [vmem:[%s7305_s3 + $0x1b8] sm:$0xff]   ;;  %vm6087_vm6 = vmpackc.low %vm5958_vm11, %vm7363_vm7 }
 0x1a0   : > { %7513 = vst [vmem:[#allocation45_spill] sm:$0xff] %v7512_v30  ;;  %v6015_v20 = vpack.c.bf16 %v5946_v39, %v6003_v11  ;;  %v6019_v48 = vadd.s32 128, %v5563_v8  ;;  %v771_v40 = vrot.slane %v699_v25, 7  ;;  %v700_v42 = vmax.f32 %v668_v44, 0.0  ;;  %4718 = vmatpush3.bf16.msra.mxu1 %v5202_v61  ;;  %4833 = vmatprep.subr.bf16.mxu0 %v5221_v3  ;;  %v5215_v61 = vld [vmem:[%s7305_s3 + $0x178] sm:$0xff]  }
 0x1a1   : > { %v1912_v45 = vshrl.u32 %v5866_v9, 16  ;;  %v648_v52 = vmul.f32 %v5021_v22, %v5576_v23  ;;  %v775_v60 = vrot.slane %v701_v36, 7  ;;  %v6032_v35 = vrot.slane %v702_v43, 7  ;;  %4226 = vmatmul.mubr.msk.bf16.gmra.mrb[28].mxu0 %vm5997_vm13, %v5928_v28  ;;  %4719 = vmatprep.subr.bf16.mxu1 %v5205_v16 }
 0x1a2   : > { %v646_v25 = vmul.f32 %v5576_v23, %v586_v13  ;;  %v649_v44 = vmul.f32 %v5022_v57, %v5576_v23  ;;  %v772_v22 = vsel %vm7353_vm0, %v5818_v34, %v771_v40  ;;  %v773_v49 = vrot.slane %v700_v42, 7 }
 0x1a3   : > { %v1914_v29 = vor.u32 %v1912_v45, %v1910_v6  ;;  %v685_v2 = vadd.f32 %v5591_v37, %v648_v52  ;;  %v1546_v36 = vrot.slane %v772_v22, 2  ;;  %v6047_v43 = vsel %vm7353_vm0, %v775_v60, %v6032_v35  ;;  %v5207_v45 = vld [vmem:[%s7305_s3 + $0x130] sm:$0xff]   ;;  %4834 = vmatpush3.bf16.msra.mxu0 %v5222_v63  ;;  %v5217_v63 = vld [vmem:[%s7305_s3 + $0x138] sm:$0xff]  }
 0x1a4   : > { %v7514_v13 = vand.u32 15, %v5636_v59  ;;  %v683_v42 = vadd.f32 %v5591_v37, %v646_v25  ;;  %v686_v6 = vadd.f32 %v5591_v37, %v649_v44  ;;  %v7357_v52 = vrot.slane %v6047_v43, 2  ;;  %4720 = vmatpush3.bf16.msra.mxu1 %v5207_v45 }
 0x1a5   : > { %v774_v34 = vsel %vm7353_vm0, %v771_v40, %v773_v49  ;;  %v776_v59 = vsel %vm7353_vm0, %v773_v49, %v775_v60  ;;  %v7517_v41 = vmov 0  ;;  %v717_v25 = vmax.f32 %v685_v2, 0.0  ;;  %4166 = vmatmul.mubr.msk.bf16.gmra.mrb[28].mxu1 %vm5900_vm4, %v5863_v32  ;;  %vm6101_vm0 = vmpackc.low %vm7363_vm7, %vm5970_vm12  ;;  %4721 = vmatprep.subr.bf16.mxu1 %v5215_v61  ;;  %v6137_v61 = vld [vmem:[%s7305_s3 + $0x200] sm:$0xff]  }
 0x1a6   : > { %vm6051_vm15 = vcmp.lt.s32.totalorder %v7514_v13, 15  ;;  %v7518_v41 = vsel %vm6066_vm5, 4294967295, %v7517_v41  ;;  %v6073_v3 = vpack.c.bf16 %v774_v34, %v772_v22  ;;  %v6076_v44 = vpack.c.bf16 %v6047_v43, %v776_v59 }
 0x1a7   : > { %7519 = vst [vmem:[#allocation46_spill] sm:$0xff] %v7518_v41  ;;  %v1548_v40 = vrot.slane %v774_v34, 2  ;;  %v1550_v60 = vrot.slane %v776_v59, 2  ;;  %v7520_v51 = vrot.slane %v5832_v17, 2  ;;  %v7521_v16 = vmov 0 }
 0x1a8   : > { %v7522_v16 = vsel %vm6087_vm6, 4294967295, %v7521_v16  ;;  %v715_v22 = vmax.f32 %v683_v42, 0.0  ;;  %v718_v49 = vmax.f32 %v686_v6, 0.0  ;;  %v647_v13 = vmul.f32 %v5576_v23, %v589_v4  ;;  %4229 = vmatprep.mubr.msk.bf16.mxu0 %vm6066_vm5, %v6073_v3  ;;  %4722 = vmatpush3.bf16.msra.mxu1 %v5217_v63 }
 0x1a9   : > { %v1547_v2 = vsel %vm7360_vm1, %v7520_v51, %v1546_v36  ;;  %7523 = vst [vmem:[#allocation47_spill] sm:$0xff] %v7522_v16  ;;  %v1916_v42 = vshll.u32 %v6073_v3, 16  ;;  %v1924_v6 = vshll.u32 %v6076_v44, 16  ;;  %v6107_v4 = vrot.slane %v717_v25, 7  ;;  %5027 = vmatprep.subr.bf16.mxu1 %v6137_v61 }
 0x1aa   : > { %v6096_v17 = vpack.c.bf16 %v1547_v2, %v5915_v10  ;;  %v5009_v10 = vpop.f32.mrb[12].mxu0  ;;  %v1920_v34 = vshrl.u32 %v6073_v3, 16  ;;  %v1549_v53 = vsel %vm7360_vm1, %v1546_v36, %v1548_v40  ;;  %v1551_v59 = vsel %vm7360_vm1, %v1548_v40, %v1550_v60 }
 0x1ab   : > { %v6118_v51 = vsel %vm7360_vm1, %v1550_v60, %v7357_v52  ;;  %v636_v25 = vmul.f32 %v5009_v10, %v5576_v23  ;;  %v538_v45 = vpop.f32.mrb[13].mxu0  ;;  %v1918_v2 = vrot.slane %v1916_v42, 1  ;;  %v6124_v27 = vrot.slane %v1924_v6, 1 }
 0x1ac   : > { %7524 = vst [vmem:[#allocation48_spill] sm:$0xff] %v6096_v17  ;;  %4232 = vmatmul.mubr.msk.bf16.gmra.mrb[32].mxu0 %vm6087_vm6, %v6096_v17  ;;  %v6126_v30 = vpack.c.bf16 %v1551_v59, %v1549_v53  ;;  %v7528_v36 = vand.u32 15, %v5644_v7  ;;  %v634_v60 = vmul.f32 %v5576_v23, %v538_v45  ;;  %v5010_v42 = vpop.f32.mrb[14].mxu0  ;;  %v803_v6 = vrot.slane %v715_v22, 7  ;;  %v5025_v22 = vpop.f32.mrb[12].mxu1 }
 0x1ad   : > { %4235 = vmatprep.mubr.msk.bf16.mxu0 %vm6101_vm0, %v6076_v44  ;;  %v6143_v10 = vrot.slane %v718_v49, 7  ;;  %v684_v7 = vadd.f32 %v5591_v37, %v647_v13  ;;  %v673_v53 = vadd.f32 %v5591_v37, %v636_v25  ;;  %v637_v59 = vmul.f32 %v5010_v42, %v5576_v23 }
 0x1ae   : > { %7527 = vst [vmem:[#allocation49_spill] sm:$0xff] %v6126_v30  ;;  %vm6130_vm11 = vcmp.gt.s32.totalorder %v7528_v36, 0  ;;  %v541_v36 = vpop.f32.mrb[15].mxu0  ;;  %vm7531_vm12 = vsmask.f32 7424  ;;  %v1922_v16 = vor.u32 %v1920_v34, %v1918_v2  ;;  %v7533_v45 = vand.u32 15, %v5736_v58 }
 0x1af   : > { %v6149_v52 = vsel %vm7531_vm12, %v1914_v29, %v1918_v2  ;;  %v671_v49 = vadd.f32 %v5591_v37, %v634_v60  ;;  %v635_v25 = vmul.f32 %v5576_v23, %v541_v36  ;;  %v7536_v29 = vand.u32 15, %v5785_v24  ;;  %v602_v2 = vpop.f32.mrb[13].mxu1 }
 0x1b0   : > { %7532 = vst [vmem:[#allocation50_spill] sm:$0xff] %v6149_v52  ;;  %vm6153_vm1 = vcmp.lt.s32.totalorder %v7533_v45, 15  ;;  %2690 = vmatprep.mubr.bf16.mxu1 %v6149_v52  ;;  %vm7539_vm7 = vcmask 1040384   ;;  %v705_v63 = vmax.f32 %v673_v53, 0.0  ;;  %v674_v60 = vadd.f32 %v5591_v37, %v637_v59  ;;  %v5026_v45 = vpop.f32.mrb[14].mxu1 }
 0x1b1   : > { %vm6163_vm12 = vcmp.gt.s32.totalorder %v7536_v29, 0  ;;  %v6169_v58 = vsel %vm7539_vm7, %v5886_v19, %v803_v6  ;;  %vm7540_vm6 = vsmask.f32 7424  ;;  %v703_v24 = vmax.f32 %v671_v49, 0.0  ;;  %4169 = vmatmul.mubr.msk.bf16.gmra.mrb[32].mxu1 %vm6066_vm5, %v5866_v9  ;;  %v6194_v59 = vpop.f32.mrb[15].mxu1 }
 0x1b2   : > { %v6175_v36 = vsel %vm7540_vm6, %v1922_v16, %v6124_v27  ;;  %v672_v29 = vadd.f32 %v5591_v37, %v635_v25  ;;  %vm7542_vm7 = vmmov 1   ;;  %v7543_v19 = vmov 0 }
 0x1b3   : > { %7541 = vst [vmem:[#allocation51_spill] sm:$0xff] %v6175_v36  ;;  %vm6185_vm4 = vmpackc.low %vm6051_vm15, %vm7542_vm7  ;;  %vm7546_vm6 = vcmask 1040384   ;;  %v716_v53 = vmax.f32 %v684_v7, 0.0  ;;  %v706_v49 = vmax.f32 %v674_v60, 0.0  ;;  %2698 = vmatprep.mubr.bf16.mxu1 %v6175_v36  ;;  %v1003_v25 = vand.u32 15, %v6019_v48 }
 0x1b4   : > { %v7544_v19 = vsel %vm6185_vm4, 4294967295, %v7543_v19  ;;  %v6192_v16 = vsel %vm7546_vm6, %v6107_v4, %v6143_v10  ;;  %v6199_v13 = vadd.s32 136, %v5563_v8  ;;  %v6202_v57 = vadd.s32 144, %v5563_v8  ;;  %4238 = vmatmul.mubr.msk.bf16.gmra.mrb[36].mxu0 %vm6185_vm4, %v6126_v30  ;;  %vm7550_vm5 = vmmov %vm7546_vm6 }
 0x1b5   : > { %7545 = vst [vmem:[#allocation52_spill] sm:$0xff] %v7544_v19  ;;  %v779_v42 = vrot.slane %v703_v24, 7  ;;  %v704_v41 = vmax.f32 %v672_v29, 0.0  ;;  %v1928_v9 = vshrl.u32 %v6076_v44, 16  ;;  %v805_v28 = vrot.slane %v716_v53, 7  ;;  %vm7551_vm13 = vmmov %vm7550_vm5 }
 0x1b6   : > { %v783_v52 = vrot.slane %v705_v63, 7  ;;  %v785_v7 = vrot.slane %v706_v49, 7  ;;  %v652_v60 = vmul.f32 %v5025_v22, %v5576_v23  ;;  %v7547_v48 = vrot.slane %v5744_v18, 2  ;;  %vm7552_vm4 = vmmov %vm7550_vm5 }
 0x1b7   : > { %v7548_v36 = vrot.slane %v5732_v62, 2  ;;  %vm7549_vm15 = vcmask 1045504   ;;  %v780_v24 = vsel %vm7546_vm6, %v6032_v35, %v779_v42  ;;  %v781_v29 = vrot.slane %v704_v41, 7  ;;  %vm7553_vm2 = vmmov %vm7552_vm4 }
 0x1b8   : > { %v6217_v53 = vsel %vm7550_vm5, %v803_v6, %v805_v28  ;;  %v6221_v63 = vsel %vm7551_vm13, %v805_v28, %v6107_v4  ;;  %v1554_v49 = vrot.slane %v780_v24, 2  ;;  %v786_v22 = vsel %vm7552_vm4, %v783_v52, %v785_v7  ;;  %vm7557_vm5 = vmmov %vm7553_vm2 }
 0x1b9   : > { %v1567_v32 = vsel %vm7549_vm15, %v7548_v36, %v7547_v48  ;;  %v788_v19 = vsel %vm7553_vm2, %v785_v7, %v5659_v33  ;;  %v7554_v30 = vand.u32 15, %v5918_v15  ;;  %v6234_v35 = vpack.c.bf16 %v6217_v53, %v6169_v58  ;;  %vm6243_vm2 = vmpackc.low %vm7542_vm7, %vm6130_vm11  ;;  %4172 = vmatmul.mubr.msk.bf16.gmra.mrb[36].mxu1 %vm6101_vm0, %v6073_v3 }
 0x1ba   : > { %v1560_v41 = vrot.slane %v786_v22, 2  ;;  %v1562_v6 = vrot.slane %v788_v19, 2  ;;  %v6237_v28 = vpack.c.bf16 %v5732_v62, %v788_v19  ;;  %v782_v4 = vsel %vm7557_vm5, %v779_v42, %v781_v29  ;;  %vm6261_vm11 = vmpackc.low %vm6153_vm1, %vm7542_vm7 }
 0x1bb   : > { %vm6228_vm15 = vcmp.lt.s32.totalorder %v7554_v30, 15  ;;  %v7558_v33 = vmov 0  ;;  %v784_v15 = vsel %vm7552_vm4, %v781_v29, %v783_v52  ;;  %v6248_v30 = vpack.c.bf16 %v782_v4, %v780_v24  ;;  %vm6278_vm6 = vmpackc.low %vm7542_vm7, %vm6163_vm12 }
 0x1bc   : > { %v7559_v33 = vsel %vm6243_vm2, 4294967295, %v7558_v33  ;;  %v1556_v7 = vrot.slane %v782_v4, 2  ;;  %v7560_v48 = vrot.slane %v6047_v43, 2  ;;  %vm7561_vm13 = vcmask 1045504  }
 0x1bd   : > { %v6253_v19 = vpack.c.bf16 %v786_v22, %v784_v15  ;;  %v1558_v38 = vrot.slane %v784_v15, 2  ;;  %v7562_v40 = vmov 0  ;;  %v6270_v43 = vpack.c.bf16 %v6192_v16, %v6221_v63  ;;  %4241 = vmatprep.mubr.msk.bf16.mxu0 %vm6243_vm2, %v6248_v30  ;;  %vm7567_vm1 = vmmov %vm7561_vm13 }
 0x1be   : > { %v1555_v31 = vsel %vm7561_vm13, %v7560_v48, %v1554_v49  ;;  %v7563_v40 = vsel %vm6261_vm11, 4294967295, %v7562_v40  ;;  %v1930_v42 = vor.u32 %v1928_v9, %v6124_v27  ;;  %v689_v24 = vadd.f32 %v5591_v37, %v652_v60  ;;  %vm7568_vm5 = vmmov %vm7567_vm1 }
 0x1bf   : > { %7564 = vst [vmem:[#allocation53_spill] sm:$0xff] %v7563_v40  ;;  %v6266_v52 = vpack.c.bf16 %v1555_v31, %v6118_v51  ;;  %v1932_v31 = vshll.u32 %v6248_v30, 16  ;;  %v1557_v51 = vsel %vm7567_vm1, %v1554_v49, %v1556_v7  ;;  %v1940_v29 = vshll.u32 %v6253_v19, 16  ;;  %vm7569_vm12 = vmmov %vm7567_vm1 }
 0x1c0   : > { %v1559_v22 = vsel %vm7568_vm5, %v1556_v7, %v1558_v38  ;;  %v650_v4 = vmul.f32 %v5576_v23, %v602_v2  ;;  %v653_v34 = vmul.f32 %v5026_v45, %v5576_v23  ;;  %v1936_v9 = vshrl.u32 %v6248_v30, 16  ;;  %vm7572_vm13 = vmmov %vm7567_vm1 }
 0x1c1   : > { %4244 = vmatmul.mubr.msk.bf16.gmra.mrb[40].mxu0 %vm6261_vm11, %v6266_v52  ;;  %v1934_v15 = vrot.slane %v1932_v31, 1  ;;  %v6294_v27 = vpack.c.bf16 %v1559_v22, %v1557_v51  ;;  %v1561_v49 = vsel %vm7569_vm12, %v1558_v38, %v1560_v41  ;;  %v1568_v60 = vrot.slane %v5690_v26, 2 }
 0x1c2   : > { %4247 = vmatprep.mubr.msk.bf16.mxu0 %vm6278_vm6, %v6253_v19  ;;  %v1942_v2 = vrot.slane %v1940_v29, 1  ;;  %vm6301_vm4 = vcmp.gt.s32.totalorder %v1003_v25, 0  ;;  %v1563_v7 = vsel %vm7572_vm13, %v1560_v41, %v1562_v6  ;;  %vm7573_vm1 = vsmask.f32 7424  ;;  %vm6332_vm13 = vmpackc.low %vm6228_vm15, %vm7542_vm7 }
 0x1c3   : > { %v6307_v48 = vsel %vm7573_vm1, %v1930_v42, %v1934_v15  ;;  %v1938_v31 = vor.u32 %v1936_v9, %v1934_v15  ;;  %v6309_v51 = vpack.c.bf16 %v1563_v7, %v1561_v49  ;;  %v721_v38 = vmax.f32 %v689_v24, 0.0  ;;  %vm7575_vm12 = vmmov %vm7573_vm1 }
 0x1c4   : > { %v1570_v26 = vrot.slane %v5884_v54, 2  ;;  %2706 = vmatprep.mubr.bf16.mxu1 %v6307_v48  ;;  %v1010_v22 = vand.u32 15, %v6199_v13  ;;  %v687_v25 = vadd.f32 %v5591_v37, %v650_v4  ;;  %v7574_v29 = vrot.slane %v5732_v62, 2  ;;  %vm6343_vm1 = vmpackc.low %vm7542_vm7, %vm6301_vm4 }
 0x1c5   : > { %v6319_v41 = vsel %vm7575_vm12, %v1938_v31, %v1942_v2  ;;  %v1017_v42 = vand.u32 15, %v6202_v57  ;;  %v690_v24 = vadd.f32 %v5591_v37, %v653_v34  ;;  %v1572_v54 = vrot.slane %v5988_v50, 2  ;;  %4175 = vmatmul.mubr.msk.bf16.gmra.mrb[40].mxu1 %vm6243_vm2, %v6076_v44  ;;  %vm7581_vm15 = vmmov %vm7568_vm5 }
 0x1c6   : > { %v1565_v40 = vsel %vm7568_vm5, %v1562_v6, %v7574_v29  ;;  %v7576_v62 = vmov 0  ;;  %v719_v13 = vmax.f32 %v687_v25, 0.0  ;;  %v874_v57 = vadd.s32 152, %v5563_v8  ;;  %2714 = vmatprep.mubr.bf16.mxu1 %v6319_v41 }
 0x1c7   : > { %v6322_v15 = vpack.c.bf16 %v1567_v32, %v1565_v40  ;;  %v7577_v62 = vsel %vm6332_vm13, 4294967295, %v7576_v62  ;;  %v651_v32 = vmul.f32 %v5576_v23, %v6194_v59  ;;  %v1944_v36 = vshrl.u32 %v6253_v19, 16 }
 0x1c8   : > { %v815_v6 = vrot.slane %v721_v38, 7  ;;  %v722_v40 = vmax.f32 %v690_v24, 0.0  ;;  %v7580_v4 = vrot.slane %v5744_v18, 2  ;;  %v1948_v9 = vshll.u32 %v6237_v28, 16 }
 0x1c9   : > { %v811_v23 = vrot.slane %v719_v13, 7  ;;  %v688_v59 = vadd.f32 %v5591_v37, %v651_v32  ;;  %v1571_v49 = vsel %vm7568_vm5, %v1568_v60, %v1570_v26  ;;  %v1574_v45 = vrot.slane %v6003_v11, 2  ;;  %4250 = vmatmul.mubr.msk.bf16.gmra.mrb[44].mxu0 %vm6332_vm13, %v6294_v27 }
 0x1ca   : > { %v1569_v34 = vsel %vm7581_vm15, %v7580_v4, %v1568_v60  ;;  %vm6358_vm4 = vcmp.lt.s32.totalorder %v1010_v22, 15  ;;  %v817_v18 = vrot.slane %v722_v40, 7  ;;  %4253 = vmatprep.mubr.msk.bf16.mxu0 %vm6343_vm1, %v6237_v28  ;;  %v1946_v37 = vor.u32 %v1944_v36, %v1942_v2  ;;  %vm7585_vm15 = vmmov %vm7568_vm5 }
 0x1cb   : > { %v6362_v31 = vpack.c.bf16 %v1571_v49, %v1569_v34  ;;  %vm7584_vm12 = vcmask 1040384   ;;  %v720_v11 = vmax.f32 %v688_v59, 0.0  ;;  %v1573_v38 = vsel %vm7585_vm15, %v1570_v26, %v1572_v54 }
 0x1cc   : > { %v812_v60 = vsel %vm7584_vm12, %v6143_v10, %v811_v23  ;;  %vm6370_vm5 = vcmp.gt.s32.totalorder %v1017_v42, 0  ;;  %v1024_v22 = vand.u32 15, %v874_v57  ;;  %vm7588_vm13 = vmmov %vm7584_vm12  ;;  %v875_v24 = vadd.s32 160, %v5563_v8 }
 0x1cd   : > { %v818_v29 = vsel %vm7588_vm13, %v815_v6, %v817_v18  ;;  %v1576_v13 = vrot.slane %v5946_v39, 2  ;;  %v1578_v32 = vrot.slane %v6169_v58, 2  ;;  %v1950_v2 = vrot.slane %v1948_v9, 1  ;;  %vm7589_vm12 = vmmov %vm7585_vm15  ;;  %4178 = vmatmul.mubr.msk.bf16.gmra.mrb[44].mxu1 %vm6278_vm6, %v6248_v30 }
 0x1ce   : > { %v813_v36 = vrot.slane %v720_v11, 7  ;;  %v1580_v10 = vrot.slane %v6217_v53, 2  ;;  %v1582_v40 = vrot.slane %v6221_v63, 2  ;;  %v1956_v26 = vshll.u32 %v5764_v0, 16  ;;  %vm6391_vm15 = vmpackc.low %vm6358_vm4, %vm7542_vm7 }
 0x1cf   : > { %v1575_v42 = vsel %vm7589_vm12, %v1572_v54, %v1574_v45  ;;  %vm7590_vm13 = vsmask.f32 7424  ;;  %v7591_v39 = vmov 0  ;;  %vm7593_vm2 = vcmask 1040384   ;;  %vm6406_vm12 = vmpackc.low %vm7542_vm7, %vm6370_vm5 }
 0x1d0   : > { %v6386_v57 = vsel %vm7590_vm13, %v1946_v37, %v1950_v2  ;;  %v7592_v39 = vsel %vm6391_vm15, 4294967295, %v7591_v39  ;;  %v814_v58 = vsel %vm7593_vm2, %v811_v23, %v813_v36  ;;  %vm7594_vm11 = vmmov %vm7593_vm2  ;;  %v6399_v63 = vpack.c.bf16 %v1575_v42, %v1573_v38 }
 0x1d1   : > { %v6397_v53 = vsel %vm7594_vm11, %v813_v36, %v815_v6  ;;  %v1584_v54 = vrot.slane %v6192_v16, 2  ;;  %2722 = vmatprep.mubr.bf16.mxu1 %v6386_v57  ;;  %v7595_v4 = vmov 0  ;;  %v1031_v34 = vand.u32 15, %v875_v24  ;;  %4256 = vmatmul.mubr.msk.bf16.gmra.mrb[48].mxu0 %vm6391_vm15, %v6309_v51 }
 0x1d2   : > { %v7596_v4 = vsel %vm6406_vm12, 4294967295, %v7595_v4  ;;  %v6410_v9 = vpack.c.bf16 %v814_v58, %v812_v60  ;;  %v1952_v23 = vshrl.u32 %v6237_v28, 16  ;;  %v1586_v6 = vrot.slane %v812_v60, 2  ;;  %4259 = vmatprep.mubr.msk.bf16.mxu0 %vm6406_vm12, %v5764_v0 }
 0x1d3   : > { %vm7597_vm2 = vcmask 1045504   ;;  %v1958_v16 = vrot.slane %v1956_v26, 1  ;;  %vm6418_vm4 = vcmp.lt.s32.totalorder %v1024_v22, 15  ;;  %v1588_v60 = vrot.slane %v814_v58, 2 }
 0x1d4   : > { %v1577_v59 = vsel %vm7597_vm2, %v1574_v45, %v1576_v13  ;;  %vm7598_vm11 = vmmov %vm7597_vm2  ;;  %v1954_v45 = vor.u32 %v1952_v23, %v1950_v2  ;;  %v1590_v38 = vrot.slane %v6397_v53, 2  ;;  %v876_v22 = vadd.s32 168, %v5563_v8 }
 0x1d5   : > { %v1579_v49 = vsel %vm7598_vm11, %v1576_v13, %v1578_v32  ;;  %vm7601_vm5 = vmmov %vm7597_vm2  ;;  %v877_v2 = vadd.s32 176, %v5563_v8  ;;  %v6444_v42 = vpack.c.bf16 %v818_v29, %v6397_v53  ;;  %4181 = vmatmul.mubr.msk.bf16.gmra.mrb[48].mxu1 %vm6343_vm1, %v6253_v19 }
 0x1d6   : > { %v6422_v37 = vpack.c.bf16 %v1579_v49, %v1577_v59  ;;  %v1581_v11 = vsel %vm7601_vm5, %v1578_v32, %v1580_v10  ;;  %vm7602_vm13 = vmmov %vm7597_vm2  ;;  %vm6430_vm2 = vcmp.gt.s32.totalorder %v1031_v34, 0  ;;  %v7613_v59 = vmov 0 }
 0x1d7   : > { %v1583_v25 = vsel %vm7602_vm13, %v1580_v10, %v1582_v40  ;;  %vm7605_vm11 = vmmov %vm7601_vm5  ;;  %vm7606_vm5 = vcmask 1040384   ;;  %v1723_v10 = vrot.slane %v818_v29, 2  ;;  %vm7609_vm13 = vsmask.f32 7424 }
 0x1d8   : > { %v6435_v13 = vpack.c.bf16 %v1583_v25, %v1581_v11  ;;  %v1585_v32 = vsel %vm7605_vm11, %v1582_v40, %v1584_v54  ;;  %v6439_v36 = vsel %vm7606_vm5, %v817_v18, 0.0  ;;  %vm7608_vm15 = vmmov %vm7605_vm11  ;;  %v6453_v40 = vsel %vm7609_vm13, %v1954_v45, %v1958_v16 }
 0x1d9   : > { %7607 = vst [vmem:[#allocation54_spill] sm:$0xff] %v6439_v36  ;;  %v1587_v26 = vsel %vm7608_vm15, %v1584_v54, %v1586_v6  ;;  %v7405_v58 = vrot.slane %v6439_v36, 2  ;;  %vm6458_vm11 = vmpackc.low %vm6418_vm4, %vm7542_vm7  ;;  %v7610_v18 = vmov 0  ;;  %v1960_v29 = vshrl.u32 %v5764_v0, 16  ;;  %2730 = vmatprep.mubr.bf16.mxu1 %v6453_v40 }
 0x1da   : > { %v6447_v34 = vpack.c.bf16 %v1587_v26, %v1585_v32  ;;  %v7611_v18 = vsel %vm6458_vm11, 4294967295, %v7610_v18  ;;  %v1589_v54 = vsel %vm7608_vm15, %v1586_v6, %v1588_v60  ;;  %vm7612_vm5 = vmmov %vm7608_vm15  ;;  %v1038_v49 = vand.u32 15, %v876_v22  ;;  %4262 = vmatmul.mubr.msk.bf16.gmra.mrb[52].mxu0 %vm6458_vm11, %v6322_v15 }
 0x1db   : > { %v1591_v23 = vsel %vm7612_vm5, %v1588_v60, %v1590_v38  ;;  %vm6469_vm13 = vmpackc.low %vm7542_vm7, %vm6430_vm2  ;;  %v1964_v11 = vshll.u32 %v6007_v14, 16  ;;  %v1045_v45 = vand.u32 15, %v877_v2  ;;  %v1962_v25 = vor.u32 %v1960_v29, %v1958_v16 }
 0x1dc   : > { %v7614_v59 = vsel %vm6469_vm13, 4294967295, %v7613_v59  ;;  %v6473_v7 = vpack.c.bf16 %v1591_v23, %v1589_v54  ;;  %vm7615_vm4 = vmmov %vm7612_vm5  ;;  %4265 = vmatprep.mubr.msk.bf16.mxu0 %vm6469_vm13, %v6007_v14  ;;  %vm1324_vm2 = vcmp.lt.s32.totalorder %v1038_v49, 15  ;;  %v878_v22 = vadd.s32 184, %v5563_v8 }
 0x1dd   : > { %v1724_v6 = vsel %vm7615_vm4, %v1590_v38, %v1723_v10  ;;  %vm7616_vm15 = vmmov %vm7615_vm4  ;;  %v1966_v32 = vrot.slane %v1964_v11, 1  ;;  %vm1293_vm5 = vcmp.gt.s32.totalorder %v1045_v45, 0  ;;  %v879_v2 = vadd.s32 192, %v5563_v8  ;;  %4184 = vmatmul.mubr.msk.bf16.gmra.mrb[52].mxu1 %vm6406_vm12, %v6237_v28 }
 0x1de   : > { %v1726_v60 = vsel %vm7616_vm15, %v1723_v10, %v7405_v58  ;;  %vm7618_vm4 = vsmask.f32 7424  ;;  %vm6497_vm15 = vmpackc.low %vm1324_vm2, %vm7542_vm7  ;;  %v7619_v26 = vmov 0  ;;  %v1968_v16 = vshrl.u32 %v6007_v14, 16 }
 0x1df   : > { %v6486_v24 = vpack.c.bf16 %v1726_v60, %v1724_v6  ;;  %v6494_v38 = vsel %vm7618_vm4, %v1962_v25, %v1966_v32  ;;  %v7620_v26 = vsel %vm6497_vm15, 4294967295, %v7619_v26  ;;  %v1972_v10 = vshll.u32 %v6015_v20, 16  ;;  %vm6505_vm11 = vmpackc.low %vm7542_vm7, %vm1293_vm5 }
 0x1e0   : > { %2738 = vmatprep.mubr.bf16.mxu1 %v6494_v38  ;;  %v7621_v29 = vmov 0  ;;  %v1052_v54 = vand.u32 15, %v878_v22  ;;  %v1059_v23 = vand.u32 15, %v879_v2  ;;  %v1970_v49 = vor.u32 %v1968_v16, %v1966_v32 }
 0x1e1   : > { %7617 = vst [vmem:[#allocation55_spill] sm:$0xff] %v6486_v24  ;;  %v7622_v29 = vsel %vm6505_vm11, 4294967295, %v7621_v29  ;;  %v1974_v11 = vrot.slane %v1972_v10, 1  ;;  %v880_v45 = vadd.s32 200, %v5563_v8  ;;  %v881_v6 = vadd.s32 208, %v5563_v8 }
 0x1e2   : > { %7623 = vst [vmem:[#allocation56_spill] sm:$0xff] %v7622_v29  ;;  %4268 = vmatmul.mubr.msk.bf16.gmra.mrb[56].mxu0 %vm6497_vm15, %v6362_v31  ;;  %vm1326_vm2 = vcmp.lt.s32.totalorder %v1052_v54, 15  ;;  %vm1295_vm4 = vcmp.gt.s32.totalorder %v1059_v23, 0  ;;  %vm7624_vm5 = vsmask.f32 7424  ;;  %v7625_v25 = vmov 0 }
 0x1e3   : > { %4271 = vmatprep.mubr.msk.bf16.mxu0 %vm6505_vm11, %v6015_v20  ;;  %v6521_v60 = vsel %vm7624_vm5, %v1970_v49, %v1974_v11  ;;  %vm6524_vm15 = vmpackc.low %vm1326_vm2, %vm7542_vm7  ;;  %v1976_v22 = vshrl.u32 %v6015_v20, 16  ;;  %v7628_v32 = vmov 0  ;;  %v1066_v2 = vand.u32 15, %v880_v45 }
 0x1e4   : > { %v7626_v25 = vsel %vm6524_vm15, 4294967295, %v7625_v25  ;;  %vm6531_vm12 = vmpackc.low %vm7542_vm7, %vm1295_vm4  ;;  %v1980_v16 = vshll.u32 %v6234_v35, 16  ;;  %v1073_v10 = vand.u32 15, %v881_v6  ;;  %v882_v23 = vadd.s32 216, %v5563_v8 }
 0x1e5   : > { %4187 = vmatmul.mubr.msk.bf16.gmra.mrb[56].mxu1 %vm6469_vm13, %v5764_v0  ;;  %7627 = vst [vmem:[#allocation57_spill] sm:$0xff] %v7626_v25  ;;  %v7629_v32 = vsel %vm6531_vm12, 4294967295, %v7628_v32  ;;  %v1978_v54 = vor.u32 %v1976_v22, %v1974_v11  ;;  %vm1328_vm2 = vcmp.lt.s32.totalorder %v1066_v2, 15  ;;  %v883_v58 = vadd.s32 224, %v5563_v8 }
 0x1e6   : > { %2746 = vmatprep.mubr.bf16.mxu1 %v6521_v60  ;;  %7630 = vst [vmem:[#allocation58_spill] sm:$0xff] %v7629_v32  ;;  %v1982_v49 = vrot.slane %v1980_v16, 1  ;;  %vm1297_vm4 = vcmp.gt.s32.totalorder %v1073_v10, 0  ;;  %v7631_v6 = vmov 0  ;;  %v1984_v11 = vshrl.u32 %v6234_v35, 16 }
 0x1e7   : > { %v1988_v22 = vshll.u32 %v6270_v43, 16  ;;  %vm6559_vm13 = vmpackc.low %vm7542_vm7, %vm1297_vm4  ;;  %v1080_v16 = vand.u32 15, %v882_v23  ;;  %v1087_v10 = vand.u32 15, %v883_v58  ;;  %v884_v36 = vadd.s32 232, %v5563_v8 }
 0x1e8   : > { %v6548_v45 = vsel %vm7624_vm5, %v1978_v54, %v1982_v49  ;;  %v1986_v54 = vor.u32 %v1984_v11, %v1982_v49  ;;  %v885_v29 = vadd.s32 240, %v5563_v8  ;;  %vm7636_vm4 = vsmask.f32 7424 }
 0x1e9   : > { %v1990_v24 = vrot.slane %v1988_v22, 1  ;;  %vm1299_vm5 = vcmp.gt.s32.totalorder %v1087_v10, 0  ;;  %v7637_v23 = vmov 0  ;;  %v1992_v49 = vshrl.u32 %v6270_v43, 16  ;;  %v7682_v17 = vld [vmem:[#allocation56_spill] sm:$0xff] }
 0x1ea   : > { %4274 = vmatmul.mubr.msk.bf16.gmra.mrb[60].mxu0 %vm6524_vm15, %v6399_v63  ;;  %vm6551_vm15 = vmpackc.low %vm1328_vm2, %vm7542_vm7  ;;  %vm1330_vm2 = vcmp.lt.s32.totalorder %v1080_v16, 15  ;;  %v1094_v22 = vand.u32 15, %v884_v36  ;;  %v1996_v16 = vshll.u32 %v6410_v9, 16  ;;  %v1101_v10 = vand.u32 15, %v885_v29 }
 0x1eb   : > { %4277 = vmatprep.mubr.msk.bf16.mxu0 %vm6531_vm12, %v6234_v35  ;;  %v7632_v6 = vsel %vm6551_vm15, 4294967295, %v7631_v6  ;;  %v6575_v58 = vsel %vm7636_vm4, %v1986_v54, %v1990_v24  ;;  %v1994_v54 = vor.u32 %v1992_v49, %v1990_v24  ;;  %v1460_v32 = vpack.c.bf16 %v6397_v53, %v6397_v53 }
 0x1ec   : > { %7633 = vst [vmem:[#allocation59_spill] sm:$0xff] %v7632_v6  ;;  %v886_v6 = vadd.s32 248, %v5563_v8  ;;  %v1998_v25 = vrot.slane %v1996_v16, 1  ;;  %v2000_v24 = vshrl.u32 %v6410_v9, 16 }
 0x1ed   : > { %4190 = vmatmul.mubr.msk.bf16.gmra.mrb[60].mxu1 %vm6505_vm11, %v6007_v14  ;;  %vm6585_vm11 = vmpackc.low %vm7542_vm7, %vm1299_vm5  ;;  %vm1301_vm5 = vcmp.gt.s32.totalorder %v1101_v10, 0  ;;  %v2004_v53 = vshll.u32 %v1460_v32, 16  ;;  %v7648_v10 = vld [vmem:[#allocation42_spill] sm:$0xff] }
 0x1ee   : > { %2754 = vmatprep.mubr.bf16.mxu1 %v6548_v45  ;;  %v6603_v36 = vsel %vm7636_vm4, %v1994_v54, %v1998_v25  ;;  %v1108_v49 = vand.u32 15, %v886_v6 }
 0x1ef   : > { %v2006_v16 = vrot.slane %v2004_v53, 1 }
 0x1f2   : > { %4280 = vmatmul.mubr.msk.bf16.gmra.mrb[64].mxu0 %vm6551_vm15, %v6422_v37  ;;  %vm6578_vm15 = vmpackc.low %vm1330_vm2, %vm7542_vm7  ;;  %vm1332_vm2 = vcmp.lt.s32.totalorder %v1094_v22, 15  ;;  %v6623_v22 = vor.u32 %v2000_v24, %v1998_v25  ;;  %v5224_v25 = vld [vmem:[%s7305_s3 + $0x208] sm:$0xff]   ;;  %v7652_v24 = vld [vmem:[#allocation50_spill] sm:$0xff] }
 0x1f3   : > { %4283 = vmatprep.mubr.msk.bf16.mxu0 %vm6559_vm13, %v6270_v43  ;;  %v7638_v23 = vsel %vm6578_vm15, 4294967295, %v7637_v23 }
 0x1f5   : > { %4193 = vmatmul.mubr.msk.bf16.gmra.mrb[64].mxu1 %vm6531_vm12, %v6015_v20  ;;  %vm6613_vm12 = vmpackc.low %vm7542_vm7, %vm1301_vm5 }
 0x1f6   : > { %2762 = vmatprep.mubr.bf16.mxu1 %v6575_v58  ;;  %vm7645_vm5 = vmmov %vm7636_vm4 }
 0x1f7   : > { %v2007_v32 = vsel %vm7645_vm5, %v6623_v22, %v2006_v16  ;;  %v7655_v16 = vld [vmem:[#allocation40_spill] sm:$0xff] }
 0x1fa   : > { %4286 = vmatmul.mubr.msk.bf16.gmra.mrb[68].mxu0 %vm6578_vm15, %v6435_v13  ;;  %vm6606_vm15 = vmpackc.low %vm1332_vm2, %vm7542_vm7  ;;  %vm1334_vm2 = vcmp.lt.s32.totalorder %v1108_v49, 15  ;;  %v5227_v49 = vld [vmem:[%s7305_s3 + $0x220] sm:$0xff]  }
 0x1fb   : > { %4289 = vmatprep.mubr.msk.bf16.mxu0 %vm6585_vm11, %v6410_v9  ;;  %vm6631_vm4 = vmpackc.low %vm1334_vm2, %vm7542_vm7 }
 0x1fd   : > { %4196 = vmatmul.mubr.msk.bf16.gmra.mrb[68].mxu1 %vm6559_vm13, %v6234_v35 }
 0x1fe   : > { %2770 = vmatprep.mubr.bf16.mxu1 %v6603_v36 }
 0x202   : > { %4292 = vmatmul.mubr.msk.bf16.gmra.mrb[72].mxu0 %vm6606_vm15, %v6447_v34 }
 0x203   : > { %4295 = vmatprep.mubr.msk.bf16.mxu0 %vm6613_vm12, %v6444_v42 }
 0x205   : > { %4199 = vmatmul.mubr.msk.bf16.gmra.mrb[72].mxu1 %vm6585_vm11, %v6270_v43 }
 0x206   : > { %2778 = vmatprep.mubr.bf16.mxu1 %v2007_v32  ;;  %v7656_v32 = vld [vmem:[#allocation38_spill] sm:$0xff] }
 0x20a   : > { %4298 = vmatmul.mubr.msk.bf16.gmra.mrb[76].mxu0 %vm6631_vm4, %v6473_v7 }
 0x20b   : > { %3141 = vmatprep.mubr.bf16.mxu0 %v5954_v56 }
 0x20d   : > { %4202 = vmatmul.mubr.msk.bf16.gmra.mrb[76].mxu1 %vm6613_vm12, %v6410_v9 }
 0x20e   : > { %4301 = vmatprep.mubr.msk.bf16.mxu1 %vm5684_vm9, %v5717_v12  ;;  %v5225_v12 = vld [vmem:[%s7305_s3 + $0x210] sm:$0xff]  }
 0x212   : > { %4349 = vmatmul.mubr.msk.bf16.vlgmr.msra.gmra.mrb[80].mxu0 %vm5674_vm8, %v5669_v5  ;;  %v7650_v5 = vld [vmem:[#allocation39_spill] sm:$0xff]  ;;  %vm7657_vm8 = vnez %v7656_v32  ;;  %v7667_v32 = vld [vmem:[#allocation46_spill] sm:$0xff] }
 0x213   : > { %3149 = vmatprep.mubr.bf16.mxu0 %v5984_v21  ;;  %vm7668_vm5 = vnez %v7667_v32 }
 0x215   : > { %2981 = vmatmul.mubr.bf16.vlgmr.msra.gmra.mrb[80].mxu1 %v5790_v46  ;;  %v5226_v46 = vld [vmem:[%s7305_s3 + $0x218] sm:$0xff]  }
 0x216   : > { %5028 = vmatpush3.bf16.msra.mxu1 %v6137_v61  ;;  %4304 = vmatprep.mubr.msk.bf16.mxu1 %vm5795_vm14, %v7648_v10  ;;  %v7653_v61 = vld [vmem:[#allocation44_spill] sm:$0xff] }
 0x217   : > { %5029 = vmatprep.subr.bf16.mxu1 %v5224_v25 }
 0x21a   : > { %4352 = vmatmul.mubr.msk.bf16.gmra.mrb[84].mxu0 %vm5698_vm10, %v7650_v5  ;;  %5030 = vmatpush3.bf16.msra.mxu1 %v5224_v25  ;;  %v7658_v25 = vld [vmem:[#allocation51_spill] sm:$0xff]  ;;  %v7660_v5 = vld [vmem:[#allocation45_spill] sm:$0xff] }
 0x21b   : > { %3157 = vmatprep.mubr.bf16.mxu0 %v7652_v24  ;;  %5031 = vmatprep.subr.bf16.mxu1 %v5225_v12  ;;  %vm7661_vm10 = vnez %v7660_v5 }
 0x21d   : > { %2989 = vmatmul.mubr.bf16.gmra.mrb[84].mxu1 %v5954_v56  ;;  %v5228_v56 = vld [vmem:[%s7305_s3 + $0x228] sm:$0xff]  }
 0x21e   : > { %4307 = vmatprep.mubr.msk.bf16.mxu1 %vm5877_vm3, %v7653_v61  ;;  %5032 = vmatpush3.bf16.msra.mxu1 %v5225_v12  ;;  %v7659_v12 = vld [vmem:[#allocation48_spill] sm:$0xff] }
 0x21f   : > { %5033 = vmatprep.subr.bf16.mxu1 %v5226_v46 }
 0x222   : > { %4355 = vmatmul.mubr.msk.bf16.gmra.mrb[88].mxu0 %vm7657_vm8, %v7655_v16  ;;  %5034 = vmatpush3.bf16.msra.mxu1 %v5226_v46  ;;  %v7662_v16 = vld [vmem:[#allocation43_spill] sm:$0xff]  ;;  %v7664_v46 = vld [vmem:[#allocation49_spill] sm:$0xff] }
 0x223   : > { %3165 = vmatprep.mubr.bf16.mxu0 %v7658_v25  ;;  %5035 = vmatprep.subr.bf16.mxu1 %v5227_v49  ;;  %vm7663_vm7 = vnez %v7662_v16 }
 0x225   : > { %2997 = vmatmul.mubr.bf16.gmra.mrb[88].mxu1 %v5984_v21  ;;  %v5230_v21 = vld [vmem:[%s7305_s3 + $0x238] sm:$0xff]  }
 0x226   : > { %4310 = vmatprep.mubr.msk.bf16.mxu1 %vm7661_vm10, %v7659_v12  ;;  %5036 = vmatpush3.bf16.msra.mxu1 %v5227_v49  ;;  %v7665_v49 = vld [vmem:[#allocation47_spill] sm:$0xff] }
 0x227   : > { %5037 = vmatprep.subr.bf16.mxu1 %v5228_v56  ;;  %vm7666_vm2 = vnez %v7665_v49 }
 0x22a   : > { %4358 = vmatmul.mubr.msk.bf16.gmra.mrb[92].mxu0 %vm7663_vm7, %v6073_v3  ;;  %5038 = vmatpush3.bf16.msra.mxu1 %v5228_v56  ;;  %v7669_v3 = vld [vmem:[#allocation52_spill] sm:$0xff] }
 0x22b   : > { %3173 = vmatprep.mubr.bf16.mxu0 %v6307_v48  ;;  %5039 = vmatprep.subr.bf16.mxu1 %v5229_v55  ;;  %vm7670_vm8 = vnez %v7669_v3 }
 0x22d   : > { %3005 = vmatmul.mubr.bf16.gmra.mrb[92].mxu1 %v7652_v24  ;;  %v7671_v24 = vld [vmem:[#allocation53_spill] sm:$0xff] }
 0x22e   : > { %4313 = vmatprep.mubr.msk.bf16.mxu1 %vm7666_vm2, %v7664_v46  ;;  %5040 = vmatpush3.bf16.msra.mxu1 %v5229_v55  ;;  %vm7672_vm7 = vnez %v7671_v24  ;;  %v7684_v55 = vld [vmem:[#allocation54_spill] sm:$0xff] }
 0x22f   : > { %5041 = vmatprep.subr.bf16.mxu1 %v5230_v21 }
 0x232   : > { %4361 = vmatmul.mubr.msk.bf16.gmra.mrb[96].mxu0 %vm7668_vm5, %v6076_v44  ;;  %5042 = vmatpush3.bf16.msra.mxu1 %v5230_v21  ;;  %vm7673_vm5 = vnez %v7559_v33  ;;  %v7680_v33 = vld [vmem:[#allocation57_spill] sm:$0xff] }
 0x233   : > { %3181 = vmatprep.mubr.bf16.mxu0 %v6319_v41 }
 0x235   : > { %3013 = vmatmul.mubr.bf16.gmra.mrb[96].mxu1 %v7658_v25 }
 0x236   : > { %4316 = vmatprep.mubr.msk.bf16.mxu1 %vm7670_vm8, %v6266_v52  ;;  %vm7674_vm8 = vnez %v7577_v62 }
 0x23a   : > { %4364 = vmatmul.mubr.msk.bf16.gmra.mrb[100].mxu0 %vm6101_vm0, %v6248_v30  ;;  %vm7675_vm0 = vnez %v7592_v39 }
 0x23b   : > { %3189 = vmatprep.mubr.bf16.mxu0 %v6386_v57 }
 0x23d   : > { %3021 = vmatmul.mubr.bf16.gmra.mrb[100].mxu1 %v6307_v48 }
 0x23e   : > { %4319 = vmatprep.mubr.msk.bf16.mxu1 %vm7672_vm7, %v6294_v27 }
 0x242   : > { %4367 = vmatmul.mubr.msk.bf16.gmra.mrb[104].mxu0 %vm7673_vm5, %v6253_v19  ;;  %vm7676_vm5 = vnez %v7611_v18 }
 0x243   : > { %3197 = vmatprep.mubr.bf16.mxu0 %v6453_v40 }
 0x245   : > { %3029 = vmatmul.mubr.bf16.gmra.mrb[104].mxu1 %v6319_v41 }
 0x246   : > { %4322 = vmatprep.mubr.msk.bf16.mxu1 %vm7674_vm8, %v6309_v51 }
 0x24a   : > { %4370 = vmatmul.mubr.msk.bf16.gmra.mrb[108].mxu0 %vm6278_vm6, %v6237_v28  ;;  %vm7677_vm6 = vnez %v7596_v4 }
 0x24b   : > { %3205 = vmatprep.mubr.bf16.mxu0 %v6494_v38 }
 0x24d   : > { %3037 = vmatmul.mubr.bf16.gmra.mrb[108].mxu1 %v6386_v57 }
 0x24e   : > { %4325 = vmatprep.mubr.msk.bf16.mxu1 %vm7675_vm0, %v6322_v15  ;;  %vm7678_vm0 = vnez %v7620_v26 }
 0x252   : > { %4373 = vmatmul.mubr.msk.bf16.gmra.mrb[112].mxu0 %vm6343_vm1, %v5764_v0  ;;  %vm7679_vm1 = vnez %v7614_v59 }
 0x253   : > { %3213 = vmatprep.mubr.bf16.mxu0 %v6521_v60 }
 0x255   : > { %3045 = vmatmul.mubr.bf16.gmra.mrb[112].mxu1 %v6453_v40 }
 0x256   : > { %4328 = vmatprep.mubr.msk.bf16.mxu1 %vm7676_vm5, %v6362_v31 }
 0x259   : > { %v4611_v0 = vpop.f32.mrb[16].mxu0 }
 0x25a   : > { %4376 = vmatmul.mubr.msk.bf16.gmra.mrb[116].mxu0 %vm7677_vm6, %v6007_v14  ;;  %v4612_v44 = vpop.f32.mrb[17].mxu0  ;;  %vm7681_vm6 = vnez %v7680_v33 }
 0x25b   : > { %3221 = vmatprep.mubr.bf16.mxu0 %v6548_v45  ;;  %v4613_v47 = vadd.f32 %v4612_v44, %v4611_v0  ;;  %v4614_v28 = vpop.f32.mrb[18].mxu0  ;;  %v7686_v0 = vld [vmem:[#allocation59_spill] sm:$0xff] }
 0x25c   : > { %v4615_v14 = vpop.f32.mrb[19].mxu0 }
 0x25d   : > { %3053 = vmatmul.mubr.bf16.gmra.mrb[116].mxu1 %v6494_v38  ;;  %v4616_v30 = vadd.f32 %v4615_v14, %v4614_v28  ;;  %v7688_v28 = vld [vmem:[#allocation58_spill] sm:$0xff]  ;;  %v2029_v14 = vshrl.u32 %v6444_v42, 16 }
 0x25e   : > { %4331 = vmatprep.mubr.msk.bf16.mxu1 %vm7678_vm0, %v6399_v63  ;;  %v4499_v19 = vpop.f32.mrb[16].mxu1  ;;  %vm7683_vm0 = vnez %v7682_v17 }
 0x25f   : > { %v4500_v48 = vpop.f32.mrb[17].mxu1 }
 0x260   : > { %v4501_v41 = vadd.f32 %v4500_v48, %v4499_v19  ;;  %v4502_v50 = vpop.f32.mrb[18].mxu1 }
 0x261   : > { %v4503_v57 = vpop.f32.mrb[19].mxu1  ;;  %v4617_v4 = vpop.f32.mrb[20].mxu0 }
 0x262   : > { %4379 = vmatmul.mubr.msk.bf16.gmra.mrb[120].mxu0 %vm7679_vm1, %v6015_v20  ;;  %v2025_v20 = vshll.u32 %v6444_v42, 16  ;;  %v6760_v40 = vadd.f32 %v4613_v47, %v4501_v41  ;;  %v4504_v59 = vadd.f32 %v4503_v57, %v4502_v50  ;;  %v4618_v38 = vpop.f32.mrb[21].mxu0  ;;  %vm7689_vm1 = vnez %v7688_v28 }
 0x263   : > { %3229 = vmatprep.mubr.bf16.mxu0 %v6575_v58  ;;  %v4619_v25 = vadd.f32 %v4618_v38, %v4617_v4  ;;  %v4620_v56 = vpop.f32.mrb[22].mxu0 }
 0x264   : > { %v6767_v21 = vadd.f32 %v4616_v30, %v4504_v59  ;;  %v4621_v32 = vpop.f32.mrb[23].mxu0 }
 0x265   : > { %3061 = vmatmul.mubr.bf16.gmra.mrb[120].mxu1 %v6521_v60  ;;  %v2027_v60 = vrot.slane %v2025_v20, 1  ;;  %v4622_v44 = vadd.f32 %v4621_v32, %v4620_v56 }
 0x266   : > { %4334 = vmatprep.mubr.msk.bf16.mxu1 %vm7681_vm6, %v6422_v37  ;;  %v4505_v47 = vpop.f32.mrb[20].mxu1  ;;  %vm7690_vm6 = vsmask.f32 7424 }
 0x267   : > { %v4506_v19 = vpop.f32.mrb[21].mxu1  ;;  %v6781_v59 = vor.u32 %v2029_v14, %v2027_v60 }
 0x268   : > { %v4507_v30 = vadd.f32 %v4506_v19, %v4505_v47  ;;  %v4508_v17 = vpop.f32.mrb[22].mxu1 }
 0x269   : > { %v4509_v48 = vpop.f32.mrb[23].mxu1 }
 0x26a   : > { %4382 = vmatmul.mubr.msk.bf16.gmra.mrb[124].mxu0 %vm7683_vm0, %v6234_v35  ;;  %v7685_v35 = vmov 0.0   ;;  %vm7687_vm0 = vnez %v7686_v0  ;;  %v6779_v50 = vadd.f32 %v4619_v25, %v4507_v30  ;;  %v4510_v57 = vadd.f32 %v4509_v48, %v4508_v17  ;;  %v5231_v25 = vld [vmem:[%s7307_s5] sm:$0xff]  }
 0x26b   : > { %3237 = vmatprep.mubr.bf16.mxu0 %v6603_v36  ;;  %v6765_v16 = vpack.c.bf16 %v7685_v35, %v7684_v55  ;;  %5075 = vmatprep.subr.bf16.mxu0 %v5231_v25 }
 0x26c   : > { %v4623_v41 = vpop.f32.mrb[24].mxu0  ;;  %5076 = vmatpush3.bf16.msra.mxu0 %v5231_v25  ;;  %v1721_v25 = vpack.c.bf16 %v7684_v55, %v7684_v55 }
 0x26d   : > { %3069 = vmatmul.mubr.bf16.gmra.mrb[124].mxu1 %v6548_v45  ;;  %v2028_v45 = vsel %vm7690_vm6, %v6623_v22, %v2027_v60  ;;  %v2040_v20 = vshll.u32 %v6765_v16, 16  ;;  %v4624_v4 = vpop.f32.mrb[25].mxu0  ;;  %v6784_v22 = vadd.f32 %v4622_v44, %v4510_v57  ;;  %vm7691_vm6 = vnez %v7638_v23 }
 0x26e   : > { %4337 = vmatprep.mubr.msk.bf16.mxu1 %vm7687_vm0, %v6435_v13  ;;  %v4626_v38 = vpop.f32.mrb[26].mxu0  ;;  %v2044_v60 = vshrl.u32 %v6765_v16, 16 }
 0x26f   : > { %v4627_v56 = vpop.f32.mrb[27].mxu0  ;;  %v2042_v35 = vrot.slane %v2040_v20, 1 }
 0x270   : > { %v4628_v32 = vadd.f32 %v4627_v56, %v4626_v38  ;;  %v4511_v47 = vpop.f32.mrb[24].mxu1 }
 0x271   : > { %v4512_v44 = vpop.f32.mrb[25].mxu1 }
 0x272   : > { %4385 = vmatmul.mubr.msk.bf16.gmra.mrb[128].mxu0 %vm7689_vm1, %v6270_v43  ;;  %v4625_v43 = vadd.f32 %v4624_v4, %v4623_v41  ;;  %vm7692_vm1 = vsmask.f32 7424  ;;  %v4513_v28 = vadd.f32 %v4512_v44, %v4511_v47  ;;  %v4514_v14 = vpop.f32.mrb[26].mxu1  ;;  %v2046_v41 = vor.u32 %v2044_v60, %v2042_v35 }
 0x273   : > { %3245 = vmatprep.mubr.bf16.mxu0 %v2028_v45  ;;  %v4515_v19 = vpop.f32.mrb[27].mxu1 }
 0x274   : > { %v4629_v30 = vpop.f32.mrb[28].mxu0  ;;  %v6798_v17 = vadd.f32 %v4625_v43, %v4513_v28  ;;  %v4516_v20 = vadd.f32 %v4515_v19, %v4514_v14  ;;  %v7693_v43 = vld [vmem:[#allocation35_spill] sm:$0xff]  ;;  %v2033_v19 = vshll.u32 %v1721_v25, 16 }
 0x275   : > { %3077 = vmatmul.mubr.bf16.gmra.mrb[128].mxu1 %v6575_v58  ;;  %v2043_v58 = vsel %vm7692_vm1, %v6781_v59, %v2042_v35  ;;  %v4630_v48 = vpop.f32.mrb[29].mxu0 }
 0x276   : > { %4340 = vmatprep.mubr.msk.bf16.mxu1 %vm7691_vm6, %v6447_v34  ;;  %v4631_v2 = vadd.f32 %v4630_v48, %v4629_v30  ;;  %v6801_v57 = vadd.f32 %v4628_v32, %v4516_v20  ;;  %v7695_v48 = vld [vmem:[#allocation55_spill] sm:$0xff] }
 0x278   : > { %v4517_v56 = vpop.f32.mrb[28].mxu1 }
 0x27a   : > { %4388 = vmatmul.mubr.msk.bf16.gmra.mrb[132].mxu0 %vm6559_vm13, %v6410_v9  ;;  %v4632_v9 = vpop.f32.mrb[30].mxu0  ;;  %vm7694_vm13 = vmmov %vm7692_vm1 }
 0x27b   : > { %3253 = vmatprep.mubr.bf16.mxu0 %v2043_v58  ;;  %v4633_v4 = vpop.f32.mrb[31].mxu0  ;;  %v2047_v35 = vsel %vm7694_vm13, %v2046_v41, %v7693_v43 }
 0x27c   : > { %v4634_v38 = vadd.f32 %v4633_v4, %v4632_v9  ;;  %v5232_v9 = vld [vmem:[%s7307_s5 + $0x8] sm:$0xff]   ;;  %v2035_v4 = vrot.slane %v2033_v19, 1 }
 0x27d   : > { %3085 = vmatmul.mubr.bf16.gmra.mrb[132].mxu1 %v6603_v36  ;;  %v4518_v36 = vpop.f32.mrb[29].mxu1  ;;  %5077 = vmatprep.subr.bf16.mxu0 %v5232_v9 }
 0x27e   : > { %4343 = vmatprep.mubr.msk.bf16.mxu1 %vm6606_vm15, %v6473_v7  ;;  %v4519_v32 = vadd.f32 %v4518_v36, %v4517_v56  ;;  %v4520_v47 = vpop.f32.mrb[30].mxu1  ;;  %5078 = vmatpush3.bf16.msra.mxu0 %v5232_v9 }
 0x27f   : > { %v4521_v58 = vpop.f32.mrb[31].mxu1  ;;  %v4635_v60 = vpop.f32.mrb[32].mxu0 }
 0x280   : > { %v6813_v44 = vadd.f32 %v4631_v2, %v4519_v32  ;;  %v4522_v28 = vadd.f32 %v4521_v58, %v4520_v47  ;;  %v4636_v14 = vpop.f32.mrb[33].mxu0 }
 0x281   : > { %v4637_v30 = vadd.f32 %v4636_v14, %v4635_v60  ;;  %v4638_v11 = vpop.f32.mrb[34].mxu0 }
 0x282   : > { %4391 = vmatmul.mubr.msk.bf16.gmra.mrb[136].mxu0 %vm6585_vm11, %v6444_v42  ;;  %v6815_v42 = vadd.f32 %v4634_v38, %v4522_v28  ;;  %v4639_v20 = vpop.f32.mrb[35].mxu0  ;;  %vm7696_vm11 = vmmov %vm7692_vm1 }
 0x283   : > { %3261 = vmatprep.mubr.bf16.mxu0 %v2047_v35  ;;  %v4640_v41 = vadd.f32 %v4639_v20, %v4638_v11  ;;  %v2036_v47 = vsel %vm7696_vm11, %v6781_v59, %v2035_v4 }
 0x284   : > { %v4523_v2 = vpop.f32.mrb[32].mxu1 }
 0x285   : > { %3093 = vmatmul.mubr.bf16.gmra.mrb[136].mxu1 %v2028_v45  ;;  %v4524_v56 = vpop.f32.mrb[33].mxu1 }
 0x286   : > { %4346 = vmatprep.mubr.msk.bf16.mxu1 %vm6631_vm4, %v7695_v48  ;;  %v4525_v45 = vadd.f32 %v4524_v56, %v4523_v2  ;;  %v4526_v38 = vpop.f32.mrb[34].mxu1 }
 0x287   : > { %v4527_v43 = vpop.f32.mrb[35].mxu1  ;;  %v4641_v35 = vpop.f32.mrb[36].mxu0 }
 0x288   : > { %v6826_v25 = vadd.f32 %v4637_v30, %v4525_v45  ;;  %v4528_v36 = vadd.f32 %v4527_v43, %v4526_v38  ;;  %v4642_v32 = vpop.f32.mrb[37].mxu0  ;;  %v5233_v38 = vld [vmem:[%s7307_s5 + $0x10] sm:$0xff]  }
 0x289   : > { %v4643_v58 = vadd.f32 %v4642_v32, %v4641_v35  ;;  %v4644_v60 = vpop.f32.mrb[38].mxu0  ;;  %5079 = vmatprep.subr.bf16.mxu0 %v5233_v38 }
 0x28a   : > { %4394 = vmatmul.mubr.msk.bf16.gmra.mrb[140].mxu0 %vm6613_vm12, %v6765_v16  ;;  %v6830_v8 = vadd.f32 %v4640_v41, %v4528_v36  ;;  %v4645_v16 = vpop.f32.mrb[39].mxu0  ;;  %vm7700_vm12 = vnez %v7680_v33 }
 0x28b   : > { %v4646_v28 = vadd.f32 %v4645_v16, %v4644_v60  ;;  %5080 = vmatpush3.bf16.msra.mxu0 %v5233_v38 }
 0x28c   : > { %v4529_v14 = vpop.f32.mrb[36].mxu1 }
 0x28d   : > { %3101 = vmatmul.mubr.bf16.gmra.mrb[140].mxu1 %v2036_v47  ;;  %v4530_v19 = vpop.f32.mrb[37].mxu1 }
 0x28e   : > { %5043 = vmatprep.mubr.msk.bf16.mxu1 %vm5684_vm9, %v7648_v10  ;;  %v4531_v30 = vadd.f32 %v4530_v19, %v4529_v14  ;;  %v4532_v11 = vpop.f32.mrb[38].mxu1  ;;  %vm7697_vm9 = vnez %v7669_v3 }
 0x28f   : > { %v4533_v20 = vpop.f32.mrb[39].mxu1 }
 0x290   : > { %v6835_v2 = vadd.f32 %v4643_v58, %v4531_v30  ;;  %v4534_v59 = vadd.f32 %v4533_v20, %v4532_v11 }
 0x292   : > { %v6840_v41 = vadd.f32 %v4646_v28, %v4534_v59 }
 0x294   : > { %v4647_v9 = vpop.f32.mrb[40].mxu0 }
 0x295   : > { %v4648_v4 = vpop.f32.mrb[41].mxu0  ;;  %5044 = vmatmul.mubr.msk.bf16.vlgmr.msra.gmra.mrb[144].mxu1 %vm5795_vm14, %v7653_v61  ;;  %vm7698_vm14 = vnez %v7592_v39 }
 0x296   : > { %v4649_v56 = vadd.f32 %v4648_v4, %v4647_v9  ;;  %v4650_v45 = vpop.f32.mrb[42].mxu0  ;;  %5047 = vmatprep.mubr.msk.bf16.mxu1 %vm5877_vm3, %v7659_v12  ;;  %vm7699_vm3 = vnez %v7620_v26 }
 0x297   : > { %v4651_v1 = vpop.f32.mrb[43].mxu0 }
 0x298   : > { %v4652_v10 = vadd.f32 %v4651_v1, %v4650_v45  ;;  %v4535_v43 = vpop.f32.mrb[40].mxu1 }
 0x299   : > { %v4536_v35 = vpop.f32.mrb[41].mxu1 }
 0x29a   : > { %v4537_v36 = vadd.f32 %v4536_v35, %v4535_v43  ;;  %v4538_v32 = vpop.f32.mrb[42].mxu1 }
 0x29b   : > { %v4539_v54 = vpop.f32.mrb[43].mxu1 }
 0x29c   : > { %v4653_v61 = vpop.f32.mrb[44].mxu0  ;;  %v6848_v47 = vadd.f32 %v4649_v56, %v4537_v36  ;;  %v4540_v58 = vadd.f32 %v4539_v54, %v4538_v32 }
 0x29d   : > { %v4654_v60 = vpop.f32.mrb[45].mxu0  ;;  %5048 = vmatmul.mubr.msk.bf16.gmra.mrb[148].mxu1 %vm7661_vm10, %v7664_v46  ;;  %vm7703_vm10 = vcmask 1045504  }
 0x29e   : > { %v4655_v16 = vadd.f32 %v4654_v60, %v4653_v61  ;;  %v4656_v53 = vpop.f32.mrb[46].mxu0  ;;  %v6853_v12 = vadd.f32 %v4652_v10, %v4540_v58  ;;  %5051 = vmatprep.mubr.msk.bf16.mxu1 %vm7666_vm2, %v6266_v52  ;;  %v5234_v10 = vld [vmem:[%s7307_s5 + $0x18] sm:$0xff]  }
 0x29f   : > { %v4657_v28 = vpop.f32.mrb[47].mxu0  ;;  %5081 = vmatprep.subr.bf16.mxu0 %v5234_v10 }
 0x2a0   : > { %v4658_v14 = vadd.f32 %v4657_v28, %v4656_v53  ;;  %v4541_v19 = vpop.f32.mrb[44].mxu1  ;;  %5082 = vmatpush3.bf16.msra.mxu0 %v5234_v10 }
 0x2a1   : > { %v4542_v30 = vpop.f32.mrb[45].mxu1 }
 0x2a2   : > { %v4543_v11 = vadd.f32 %v4542_v30, %v4541_v19  ;;  %v4544_v20 = vpop.f32.mrb[46].mxu1 }
 0x2a3   : > { %v4545_v9 = vpop.f32.mrb[47].mxu1 }
 0x2a4   : > { %v4659_v59 = vpop.f32.mrb[48].mxu0  ;;  %v6858_v4 = vadd.f32 %v4655_v16, %v4543_v11  ;;  %v4546_v56 = vadd.f32 %v4545_v9, %v4544_v20 }
 0x2a5   : > { %v4660_v45 = vpop.f32.mrb[49].mxu0  ;;  %5052 = vmatmul.mubr.msk.bf16.gmra.mrb[152].mxu1 %vm7697_vm9, %v6294_v27 }
 0x2a6   : > { %v4661_v5 = vadd.f32 %v4660_v45, %v4659_v59  ;;  %v4662_v46 = vpop.f32.mrb[50].mxu0  ;;  %v6863_v1 = vadd.f32 %v4658_v14, %v4546_v56  ;;  %5055 = vmatprep.mubr.msk.bf16.mxu1 %vm7672_vm7, %v6309_v51  ;;  %v5235_v45 = vld [vmem:[%s7307_s5 + $0x20] sm:$0xff]  }
 0x2a7   : > { %v4663_v52 = vpop.f32.mrb[51].mxu0  ;;  %5083 = vmatprep.subr.bf16.mxu0 %v5235_v45 }
 0x2a8   : > { %v4664_v49 = vadd.f32 %v4663_v52, %v4662_v46  ;;  %v4547_v38 = vpop.f32.mrb[48].mxu1  ;;  %5084 = vmatpush3.bf16.msra.mxu0 %v5235_v45 }
 0x2a9   : > { %v4548_v43 = vpop.f32.mrb[49].mxu1 }
 0x2aa   : > { %v4549_v35 = vadd.f32 %v4548_v43, %v4547_v38  ;;  %v4550_v36 = vpop.f32.mrb[50].mxu1 }
 0x2ab   : > { %v4551_v3 = vpop.f32.mrb[51].mxu1 }
 0x2ac   : > { %v6871_v32 = vadd.f32 %v4661_v5, %v4549_v35  ;;  %v4552_v54 = vadd.f32 %v4551_v3, %v4550_v36 }
 0x2ad   : > { %v4665_v27 = vpop.f32.mrb[52].mxu0  ;;  %5056 = vmatmul.mubr.msk.bf16.gmra.mrb[156].mxu1 %vm7674_vm8, %v6322_v15 }
 0x2ae   : > { %v4666_v61 = vpop.f32.mrb[53].mxu0  ;;  %v6876_v51 = vadd.f32 %v4664_v49, %v4552_v54  ;;  %5059 = vmatprep.mubr.msk.bf16.mxu1 %vm7698_vm14, %v6362_v31 }
 0x2af   : > { %v4667_v58 = vadd.f32 %v4666_v61, %v4665_v27  ;;  %v4668_v24 = vpop.f32.mrb[54].mxu0 }
 0x2b0   : > { %v4669_v60 = vpop.f32.mrb[55].mxu0  ;;  %v4553_v53 = vpop.f32.mrb[52].mxu1 }
 0x2b1   : > { %v4670_v16 = vadd.f32 %v4669_v60, %v4668_v24  ;;  %v4554_v28 = vpop.f32.mrb[53].mxu1 }
 0x2b2   : > { %v4555_v14 = vadd.f32 %v4554_v28, %v4553_v53  ;;  %v4556_v19 = vpop.f32.mrb[54].mxu1 }
 0x2b3   : > { %v4557_v30 = vpop.f32.mrb[55].mxu1 }
 0x2b4   : > { %v6881_v20 = vadd.f32 %v4667_v58, %v4555_v14  ;;  %v4558_v9 = vadd.f32 %v4557_v30, %v4556_v19  ;;  %v5236_v19 = vld [vmem:[%s7307_s5 + $0x28] sm:$0xff]  }
 0x2b5   : > { %v4671_v11 = vpop.f32.mrb[56].mxu0  ;;  %5060 = vmatmul.mubr.msk.bf16.gmra.mrb[160].mxu1 %vm7676_vm5, %v6399_v63  ;;  %5085 = vmatprep.subr.bf16.mxu0 %v5236_v19 }
 0x2b6   : > { %v4672_v59 = vpop.f32.mrb[57].mxu0  ;;  %v6886_v56 = vadd.f32 %v4670_v16, %v4558_v9  ;;  %5063 = vmatprep.mubr.msk.bf16.mxu1 %vm7699_vm3, %v6422_v37  ;;  %v7702_v9 = vrot.slane %v7684_v55, 2  ;;  %5086 = vmatpush3.bf16.msra.mxu0 %v5236_v19 }
 0x2b7   : > { %v4673_v62 = vadd.f32 %v4672_v59, %v4671_v11  ;;  %v4674_v15 = vpop.f32.mrb[58].mxu0  ;;  %v7701_v11 = vld [vmem:[#allocation34_spill] sm:$0xff] }
 0x2b8   : > { %v4675_v31 = vpop.f32.mrb[59].mxu0  ;;  %v4559_v5 = vpop.f32.mrb[56].mxu1  ;;  %v1825_v59 = vsel %vm7703_vm10, %v7702_v9, %v7701_v11 }
 0x2b9   : > { %v4676_v39 = vadd.f32 %v4675_v31, %v4674_v15  ;;  %v4560_v46 = vpop.f32.mrb[57].mxu1  ;;  %v4441_v29 = vpack.c.bf16 %v7701_v11, %v1825_v59 }
 0x2ba   : > { %v4561_v52 = vadd.f32 %v4560_v46, %v4559_v5  ;;  %v4562_v49 = vpop.f32.mrb[58].mxu1 }
 0x2bb   : > { %v4563_v18 = vpop.f32.mrb[59].mxu1 }
 0x2bc   : > { %v6894_v10 = vadd.f32 %v4673_v62, %v4561_v52  ;;  %v4564_v38 = vadd.f32 %v4563_v18, %v4562_v49 }
 0x2bd   : > { %v4677_v63 = vpop.f32.mrb[60].mxu0  ;;  %5064 = vmatmul.mubr.msk.bf16.gmra.mrb[164].mxu1 %vm7700_vm12, %v6435_v13 }
 0x2be   : > { %v4678_v43 = vpop.f32.mrb[61].mxu0  ;;  %v6899_v37 = vadd.f32 %v4676_v39, %v4564_v38  ;;  %5067 = vmatprep.mubr.msk.bf16.mxu1 %vm7687_vm0, %v6447_v34 }
 0x2bf   : > { %v4679_v35 = vadd.f32 %v4678_v43, %v4677_v63  ;;  %v4680_v26 = vpop.f32.mrb[62].mxu0 }
 0x2c0   : > { %v4681_v36 = vpop.f32.mrb[63].mxu0  ;;  %v4565_v27 = vpop.f32.mrb[60].mxu1 }
 0x2c1   : > { %v4682_v3 = vadd.f32 %v4681_v36, %v4680_v26  ;;  %v4566_v54 = vpop.f32.mrb[61].mxu1 }
 0x2c2   : > { %v4567_v61 = vadd.f32 %v4566_v54, %v4565_v27  ;;  %v4568_v58 = vpop.f32.mrb[62].mxu1 }
 0x2c3   : > { %v4569_v24 = vpop.f32.mrb[63].mxu1 }
 0x2c4   : > { %v6904_v16 = vadd.f32 %v4679_v35, %v4567_v61  ;;  %v4570_v53 = vadd.f32 %v4569_v24, %v4568_v58 }
 0x2c5   : > { %v4683_v60 = vpop.f32.mrb[64].mxu0  ;;  %5068 = vmatmul.mubr.msk.bf16.gmra.mrb[168].mxu1 %vm7691_vm6, %v6473_v7 }
 0x2c6   : > { %v4684_v28 = vpop.f32.mrb[65].mxu0  ;;  %v6909_v14 = vadd.f32 %v4682_v3, %v4570_v53  ;;  %5071 = vmatprep.mubr.msk.bf16.mxu1 %vm6606_vm15, %v7695_v48 }
 0x2c7   : > { %v4685_v33 = vadd.f32 %v4684_v28, %v4683_v60  ;;  %v4686_v13 = vpop.f32.mrb[66].mxu0  ;;  %v5237_v60 = vld [vmem:[%s7307_s5 + $0x30] sm:$0xff]  }
 0x2c8   : > { %v4687_v34 = vpop.f32.mrb[67].mxu0  ;;  %v4571_v30 = vpop.f32.mrb[64].mxu1  ;;  %5087 = vmatprep.subr.bf16.mxu0 %v5237_v60 }
 0x2c9   : > { %v4688_v0 = vadd.f32 %v4687_v34, %v4686_v13  ;;  %v4572_v23 = vpop.f32.mrb[65].mxu1  ;;  %5088 = vmatpush3.bf16.msra.mxu0 %v5237_v60 }
 0x2ca   : > { %v4573_v7 = vadd.f32 %v4572_v23, %v4571_v30  ;;  %v4574_v62 = vpop.f32.mrb[66].mxu1 }
 0x2cb   : > { %v4575_v15 = vpop.f32.mrb[67].mxu1 }
 0x2cc   : > { %v6922_v48 = vadd.f32 %v4685_v33, %v4573_v7  ;;  %v4576_v39 = vadd.f32 %v4575_v15, %v4574_v62 }
 0x2cd   : > { %v4689_v31 = vpop.f32.mrb[68].mxu0  ;;  %5072 = vmatmul.mubr.msk.bf16.gmra.mrb[172].mxu1 %vm6631_vm4, %v4441_v29 }
 0x2ce   : > { %v4690_v45 = vpop.f32.mrb[69].mxu0  ;;  %v6926_v55 = vadd.f32 %v4688_v0, %v4576_v39 }
 0x2cf   : > { %v4691_v5 = vadd.f32 %v4690_v45, %v4689_v31  ;;  %v4692_v46 = vpop.f32.mrb[70].mxu0 }
 0x2d0   : > { %v4693_v52 = vpop.f32.mrb[71].mxu0  ;;  %v4577_v18 = vpop.f32.mrb[68].mxu1 }
 0x2d1   : > { %v4694_v49 = vadd.f32 %v4693_v52, %v4692_v46  ;;  %v4578_v63 = vpop.f32.mrb[69].mxu1 }
 0x2d2   : > { %v4579_v38 = vadd.f32 %v4578_v63, %v4577_v18  ;;  %v4580_v43 = vpop.f32.mrb[70].mxu1 }
 0x2d3   : > { %v4581_v35 = vpop.f32.mrb[71].mxu1 }
 0x2d4   : > { %v6928_v36 = vadd.f32 %v4691_v5, %v4579_v38  ;;  %v4582_v3 = vadd.f32 %v4581_v35, %v4580_v43  ;;  %v5238_v35 = vld [vmem:[%s7307_s5 + $0x38] sm:$0xff]  }
 0x2d5   : > { %v4695_v26 = vpop.f32.mrb[72].mxu0  ;;  %5089 = vmatprep.subr.bf16.mxu0 %v5238_v35 }
 0x2d6   : > { %v4696_v27 = vpop.f32.mrb[73].mxu0  ;;  %v6930_v58 = vadd.f32 %v4694_v49, %v4582_v3  ;;  %5090 = vmatpush3.bf16.msra.mxu0 %v5238_v35 }
 0x2d7   : > { %v4697_v54 = vadd.f32 %v4696_v27, %v4695_v26  ;;  %v4698_v61 = vpop.f32.mrb[74].mxu0 }
 0x2d8   : > { %v4699_v6 = vpop.f32.mrb[75].mxu0  ;;  %v4583_v53 = vpop.f32.mrb[72].mxu1 }
 0x2d9   : > { %v4700_v24 = vadd.f32 %v4699_v6, %v4698_v61  ;;  %v4584_v28 = vpop.f32.mrb[73].mxu1 }
 0x2da   : > { %v4585_v33 = vadd.f32 %v4584_v28, %v4583_v53  ;;  %v4586_v13 = vpop.f32.mrb[74].mxu1 }
 0x2db   : > { %v4587_v34 = vpop.f32.mrb[75].mxu1 }
 0x2dc   : > { %v6935_v19 = vadd.f32 %v4697_v54, %v4585_v33  ;;  %v4588_v30 = vadd.f32 %v4587_v34, %v4586_v13 }
 0x2dd   : > { %v4701_v0 = vpop.f32.mrb[76].mxu0 }
 0x2de   : > { %v4702_v11 = vpop.f32.mrb[77].mxu0  ;;  %v6937_v23 = vadd.f32 %v4700_v24, %v4588_v30 }
 0x2df   : > { %v4703_v9 = vadd.f32 %v4702_v11, %v4701_v0  ;;  %v4704_v59 = vpop.f32.mrb[78].mxu0 }
 0x2e0   : > { %v4705_v7 = vpop.f32.mrb[79].mxu0  ;;  %v4589_v15 = vpop.f32.mrb[76].mxu1 }
 0x2e1   : > { %v4706_v62 = vadd.f32 %v4705_v7, %v4704_v59  ;;  %v4590_v31 = vpop.f32.mrb[77].mxu1 }
 0x2e2   : > { %v4591_v29 = vadd.f32 %v4590_v31, %v4589_v15  ;;  %v4592_v39 = vpop.f32.mrb[78].mxu1 }
 0x2e3   : > { %v4593_v45 = vpop.f32.mrb[79].mxu1 }
 0x2e4   : > { %v6939_v46 = vadd.f32 %v4703_v9, %v4591_v29  ;;  %v4594_v52 = vadd.f32 %v4593_v45, %v4592_v39 }
 0x2e5   : > { %v4835_v5 = vpop.f32.mrb[80].mxu0 }
 0x2e6   : > { %v4836_v49 = vpop.f32.mrb[81].mxu0  ;;  %v6941_v38 = vadd.f32 %v4706_v62, %v4594_v52 }
 0x2e7   : > { %v4837_v18 = vadd.f32 %v4836_v49, %v4835_v5  ;;  %v4838_v63 = vpop.f32.mrb[82].mxu0 }
 0x2e8   : > { %v4839_v43 = vpop.f32.mrb[83].mxu0  ;;  %v4723_v3 = vpop.f32.mrb[80].mxu1 }
 0x2e9   : > { %v4840_v26 = vadd.f32 %v4839_v43, %v4838_v63  ;;  %v4724_v27 = vpop.f32.mrb[81].mxu1 }
 0x2ea   : > { %v4725_v54 = vadd.f32 %v4724_v27, %v4723_v3  ;;  %v4726_v61 = vpop.f32.mrb[82].mxu1 }
 0x2eb   : > { %v4727_v6 = vpop.f32.mrb[83].mxu1 }
 0x2ec   : > { %v2983_v60 = vadd.f32 %v4725_v54, %v6760_v40  ;;  %v4728_v53 = vadd.f32 %v4727_v6, %v4726_v61 }
 0x2ed   : > { %v4841_v24 = vpop.f32.mrb[84].mxu0 }
 0x2ee   : > { %v4842_v28 = vpop.f32.mrb[85].mxu0  ;;  %v2986_v34 = vadd.f32 %v4728_v53, %v6767_v21  ;;  %v6948_v30 = vadd.f32 %v4837_v18, %v2983_v60 }
 0x2ef   : > { %v4843_v33 = vadd.f32 %v4842_v28, %v4841_v24  ;;  %v4844_v13 = vpop.f32.mrb[86].mxu0 }
 0x2f0   : > { %v4845_v0 = vpop.f32.mrb[87].mxu0  ;;  %v4729_v9 = vpop.f32.mrb[84].mxu1  ;;  %v6950_v59 = vadd.f32 %v4840_v26, %v2986_v34 }
 0x2f1   : > { %v4846_v11 = vadd.f32 %v4845_v0, %v4844_v13  ;;  %v4730_v7 = vpop.f32.mrb[85].mxu1 }
 0x2f2   : > { %v4731_v62 = vadd.f32 %v4730_v7, %v4729_v9  ;;  %v4732_v15 = vpop.f32.mrb[86].mxu1 }
 0x2f3   : > { %v4733_v31 = vpop.f32.mrb[87].mxu1 }
 0x2f4   : > { %v2991_v40 = vadd.f32 %v4731_v62, %v6779_v50  ;;  %v4734_v39 = vadd.f32 %v4733_v31, %v4732_v15 }
 0x2f5   : > { %v4847_v29 = vpop.f32.mrb[88].mxu0 }
 0x2f6   : > { %v4848_v45 = vpop.f32.mrb[89].mxu0  ;;  %v2994_v21 = vadd.f32 %v4734_v39, %v6784_v22  ;;  %v6954_v18 = vadd.f32 %v4843_v33, %v2991_v40 }
 0x2f7   : > { %v4849_v5 = vadd.f32 %v4848_v45, %v4847_v29  ;;  %v4850_v52 = vpop.f32.mrb[90].mxu0 }
 0x2f8   : > { %v4851_v49 = vpop.f32.mrb[91].mxu0  ;;  %v4735_v43 = vpop.f32.mrb[88].mxu1  ;;  %v6956_v35 = vadd.f32 %v4846_v11, %v2994_v21 }
 0x2f9   : > { %v4852_v63 = vadd.f32 %v4851_v49, %v4850_v52  ;;  %v4736_v26 = vpop.f32.mrb[89].mxu1 }
 0x2fa   : > { %v4737_v3 = vadd.f32 %v4736_v26, %v4735_v43  ;;  %v4738_v27 = vpop.f32.mrb[90].mxu1 }
 0x2fb   : > { %v4739_v54 = vpop.f32.mrb[91].mxu1 }
 0x2fc   : > { %v2999_v50 = vadd.f32 %v4737_v3, %v6798_v17  ;;  %v4740_v6 = vadd.f32 %v4739_v54, %v4738_v27 }
 0x2fd   : > { %v4853_v61 = vpop.f32.mrb[92].mxu0 }
 0x2fe   : > { %v4854_v24 = vpop.f32.mrb[93].mxu0  ;;  %v3002_v22 = vadd.f32 %v4740_v6, %v6801_v57  ;;  %v6960_v33 = vadd.f32 %v4849_v5, %v2999_v50 }
 0x2ff   : > { %v4855_v60 = vadd.f32 %v4854_v24, %v4853_v61  ;;  %v4856_v53 = vpop.f32.mrb[94].mxu0 }
 0x300   : > { %v4857_v28 = vpop.f32.mrb[95].mxu0  ;;  %v4741_v34 = vpop.f32.mrb[92].mxu1  ;;  %v6962_v0 = vadd.f32 %v4852_v63, %v3002_v22 }
 0x301   : > { %v4858_v13 = vadd.f32 %v4857_v28, %v4856_v53  ;;  %v4742_v11 = vpop.f32.mrb[93].mxu1 }
 0x302   : > { %v4743_v9 = vadd.f32 %v4742_v11, %v4741_v34  ;;  %v4744_v7 = vpop.f32.mrb[94].mxu1 }
 0x303   : > { %v4745_v62 = vpop.f32.mrb[95].mxu1 }
 0x304   : > { %v3007_v17 = vadd.f32 %v4743_v9, %v6813_v44  ;;  %v4746_v31 = vadd.f32 %v4745_v62, %v4744_v7 }
 0x305   : > { %v4859_v15 = vpop.f32.mrb[96].mxu0 }
 0x306   : > { %v4860_v29 = vpop.f32.mrb[97].mxu0  ;;  %v3010_v57 = vadd.f32 %v4746_v31, %v6815_v42  ;;  %v6966_v5 = vadd.f32 %v4855_v60, %v3007_v17 }
 0x307   : > { %v4861_v40 = vadd.f32 %v4860_v29, %v4859_v15  ;;  %v4862_v39 = vpop.f32.mrb[98].mxu0 }
 0x308   : > { %v4863_v45 = vpop.f32.mrb[99].mxu0  ;;  %v4747_v21 = vpop.f32.mrb[96].mxu1  ;;  %v6968_v49 = vadd.f32 %v4858_v13, %v3010_v57 }
 0x309   : > { %v4864_v52 = vadd.f32 %v4863_v45, %v4862_v39  ;;  %v4748_v63 = vpop.f32.mrb[97].mxu1 }
 0x30a   : > { %v4749_v43 = vadd.f32 %v4748_v63, %v4747_v21  ;;  %v4750_v26 = vpop.f32.mrb[98].mxu1 }
 0x30b   : > { %v4751_v3 = vpop.f32.mrb[99].mxu1 }
 0x30c   : > { %v3015_v44 = vadd.f32 %v4749_v43, %v6826_v25  ;;  %v4752_v54 = vadd.f32 %v4751_v3, %v4750_v26 }
 0x30d   : > { %v4865_v27 = vpop.f32.mrb[100].mxu0 }
 0x30e   : > { %v4866_v61 = vpop.f32.mrb[101].mxu0  ;;  %v3018_v42 = vadd.f32 %v4752_v54, %v6830_v8  ;;  %v6972_v60 = vadd.f32 %v4861_v40, %v3015_v44 }
 0x30f   : > { %v4867_v50 = vadd.f32 %v4866_v61, %v4865_v27  ;;  %v4868_v6 = vpop.f32.mrb[102].mxu0 }
 0x310   : > { %v4869_v24 = vpop.f32.mrb[103].mxu0  ;;  %v4753_v22 = vpop.f32.mrb[100].mxu1  ;;  %v6974_v28 = vadd.f32 %v4864_v52, %v3018_v42 }
 0x311   : > { %v4870_v53 = vadd.f32 %v4869_v24, %v4868_v6  ;;  %v4754_v13 = vpop.f32.mrb[101].mxu1 }
 0x312   : > { %v4755_v34 = vadd.f32 %v4754_v13, %v4753_v22  ;;  %v4756_v11 = vpop.f32.mrb[102].mxu1 }
 0x313   : > { %v4757_v9 = vpop.f32.mrb[103].mxu1 }
 0x314   : > { %v3023_v25 = vadd.f32 %v4755_v34, %v6835_v2  ;;  %v4758_v62 = vadd.f32 %v4757_v9, %v4756_v11 }
 0x315   : > { %v4871_v7 = vpop.f32.mrb[104].mxu0 }
 0x316   : > { %v4872_v15 = vpop.f32.mrb[105].mxu0  ;;  %v3026_v8 = vadd.f32 %v4758_v62, %v6840_v41  ;;  %v6978_v40 = vadd.f32 %v4867_v50, %v3023_v25 }
 0x317   : > { %v4873_v17 = vadd.f32 %v4872_v15, %v4871_v7  ;;  %v4874_v31 = vpop.f32.mrb[106].mxu0 }
 0x318   : > { %v4875_v29 = vpop.f32.mrb[107].mxu0  ;;  %v4759_v57 = vpop.f32.mrb[104].mxu1  ;;  %v6980_v45 = vadd.f32 %v4870_v53, %v3026_v8 }
 0x319   : > { %v4876_v39 = vadd.f32 %v4875_v29, %v4874_v31  ;;  %v4760_v52 = vpop.f32.mrb[105].mxu1 }
 0x31a   : > { %v4761_v21 = vadd.f32 %v4760_v52, %v4759_v57  ;;  %v4762_v63 = vpop.f32.mrb[106].mxu1 }
 0x31b   : > { %v4763_v43 = vpop.f32.mrb[107].mxu1 }
 0x31c   : > { %v3031_v2 = vadd.f32 %v4761_v21, %v6848_v47  ;;  %v4764_v3 = vadd.f32 %v4763_v43, %v4762_v63 }
 0x31d   : > { %v4877_v26 = vpop.f32.mrb[108].mxu0 }
 0x31e   : > { %v4878_v27 = vpop.f32.mrb[109].mxu0  ;;  %v3034_v41 = vadd.f32 %v4764_v3, %v6853_v12  ;;  %v6984_v50 = vadd.f32 %v4873_v17, %v3031_v2 }
 0x31f   : > { %v4879_v44 = vadd.f32 %v4878_v27, %v4877_v26  ;;  %v4880_v54 = vpop.f32.mrb[110].mxu0 }
 0x320   : > { %v4881_v61 = vpop.f32.mrb[111].mxu0  ;;  %v4765_v42 = vpop.f32.mrb[108].mxu1  ;;  %v6986_v24 = vadd.f32 %v4876_v39, %v3034_v41 }
 0x321   : > { %v4882_v6 = vadd.f32 %v4881_v61, %v4880_v54  ;;  %v4766_v53 = vpop.f32.mrb[109].mxu1 }
 0x322   : > { %v4767_v22 = vadd.f32 %v4766_v53, %v4765_v42  ;;  %v4768_v13 = vpop.f32.mrb[110].mxu1 }
 0x323   : > { %v4769_v34 = vpop.f32.mrb[111].mxu1 }
 0x324   : > { %v3039_v47 = vadd.f32 %v4767_v22, %v6858_v4  ;;  %v4770_v9 = vadd.f32 %v4769_v34, %v4768_v13 }
 0x325   : > { %v4883_v11 = vpop.f32.mrb[112].mxu0 }
 0x326   : > { %v4884_v7 = vpop.f32.mrb[113].mxu0  ;;  %v3042_v12 = vadd.f32 %v4770_v9, %v6863_v1  ;;  %v6990_v17 = vadd.f32 %v4879_v44, %v3039_v47 }
 0x327   : > { %v4885_v25 = vadd.f32 %v4884_v7, %v4883_v11  ;;  %v4886_v62 = vpop.f32.mrb[114].mxu0 }
 0x328   : > { %v4887_v15 = vpop.f32.mrb[115].mxu0  ;;  %v4771_v8 = vpop.f32.mrb[112].mxu1  ;;  %v6992_v29 = vadd.f32 %v4882_v6, %v3042_v12 }
 0x329   : > { %v4888_v31 = vadd.f32 %v4887_v15, %v4886_v62  ;;  %v4772_v39 = vpop.f32.mrb[113].mxu1 }
 0x32a   : > { %v4773_v57 = vadd.f32 %v4772_v39, %v4771_v8  ;;  %v4774_v52 = vpop.f32.mrb[114].mxu1 }
 0x32b   : > { %v4775_v21 = vpop.f32.mrb[115].mxu1 }
 0x32c   : > { %v3047_v4 = vadd.f32 %v4773_v57, %v6871_v32  ;;  %v4776_v43 = vadd.f32 %v4775_v21, %v4774_v52 }
 0x32d   : > { %v4889_v63 = vpop.f32.mrb[116].mxu0 }
 0x32e   : > { %v4890_v26 = vpop.f32.mrb[117].mxu0  ;;  %v3050_v1 = vadd.f32 %v4776_v43, %v6876_v51  ;;  %v6996_v44 = vadd.f32 %v4885_v25, %v3047_v4 }
 0x32f   : > { %v4891_v2 = vadd.f32 %v4890_v26, %v4889_v63  ;;  %v4892_v3 = vpop.f32.mrb[118].mxu0 }
 0x330   : > { %v4893_v27 = vpop.f32.mrb[119].mxu0  ;;  %v4777_v41 = vpop.f32.mrb[116].mxu1  ;;  %v6998_v61 = vadd.f32 %v4888_v31, %v3050_v1 }
 0x331   : > { %v4894_v54 = vadd.f32 %v4893_v27, %v4892_v3  ;;  %v4778_v6 = vpop.f32.mrb[117].mxu1 }
 0x332   : > { %v4779_v42 = vadd.f32 %v4778_v6, %v4777_v41  ;;  %v4780_v53 = vpop.f32.mrb[118].mxu1 }
 0x333   : > { %v4781_v22 = vpop.f32.mrb[119].mxu1 }
 0x334   : > { %v3055_v32 = vadd.f32 %v4779_v42, %v6881_v20  ;;  %v4782_v34 = vadd.f32 %v4781_v22, %v4780_v53 }
 0x335   : > { %v4895_v13 = vpop.f32.mrb[120].mxu0 }
 0x336   : > { %v4896_v11 = vpop.f32.mrb[121].mxu0  ;;  %v3058_v51 = vadd.f32 %v4782_v34, %v6886_v56  ;;  %v7002_v25 = vadd.f32 %v4891_v2, %v3055_v32 }
 0x337   : > { %v4897_v47 = vadd.f32 %v4896_v11, %v4895_v13  ;;  %v4898_v9 = vpop.f32.mrb[122].mxu0 }
 0x338   : > { %v4899_v7 = vpop.f32.mrb[123].mxu0  ;;  %v4783_v12 = vpop.f32.mrb[120].mxu1  ;;  %v7004_v15 = vadd.f32 %v4894_v54, %v3058_v51 }
 0x339   : > { %v4900_v62 = vadd.f32 %v4899_v7, %v4898_v9  ;;  %v4784_v31 = vpop.f32.mrb[121].mxu1 }
 0x33a   : > { %v4785_v8 = vadd.f32 %v4784_v31, %v4783_v12  ;;  %v4786_v39 = vpop.f32.mrb[122].mxu1 }
 0x33b   : > { %v4787_v57 = vpop.f32.mrb[123].mxu1 }
 0x33c   : > { %v3063_v20 = vadd.f32 %v4785_v8, %v6894_v10  ;;  %v4788_v21 = vadd.f32 %v4787_v57, %v4786_v39 }
 0x33d   : > { %v4901_v52 = vpop.f32.mrb[124].mxu0 }
 0x33e   : > { %v4902_v63 = vpop.f32.mrb[125].mxu0  ;;  %v3066_v56 = vadd.f32 %v4788_v21, %v6899_v37  ;;  %v7008_v2 = vadd.f32 %v4897_v47, %v3063_v20 }
 0x33f   : > { %v4903_v4 = vadd.f32 %v4902_v63, %v4901_v52  ;;  %v4904_v43 = vpop.f32.mrb[126].mxu0 }
 0x340   : > { %v4905_v26 = vpop.f32.mrb[127].mxu0  ;;  %v4789_v1 = vpop.f32.mrb[124].mxu1  ;;  %v7010_v27 = vadd.f32 %v4900_v62, %v3066_v56 }
 0x341   : > { %v4906_v3 = vadd.f32 %v4905_v26, %v4904_v43  ;;  %v4790_v54 = vpop.f32.mrb[125].mxu1 }
 0x342   : > { %v4791_v41 = vadd.f32 %v4790_v54, %v4789_v1  ;;  %v4792_v6 = vpop.f32.mrb[126].mxu1 }
 0x343   : > { %v4793_v42 = vpop.f32.mrb[127].mxu1 }
 0x344   : > { %v3071_v10 = vadd.f32 %v4791_v41, %v6904_v16  ;;  %v4794_v22 = vadd.f32 %v4793_v42, %v4792_v6 }
 0x345   : > { %v4907_v53 = vpop.f32.mrb[128].mxu0 }
 0x346   : > { %v4908_v13 = vpop.f32.mrb[129].mxu0  ;;  %v3074_v37 = vadd.f32 %v4794_v22, %v6909_v14  ;;  %v7014_v47 = vadd.f32 %v4903_v4, %v3071_v10 }
 0x347   : > { %v4909_v32 = vadd.f32 %v4908_v13, %v4907_v53  ;;  %v4910_v34 = vpop.f32.mrb[130].mxu0 }
 0x348   : > { %v4911_v11 = vpop.f32.mrb[131].mxu0  ;;  %v4795_v51 = vpop.f32.mrb[128].mxu1  ;;  %v7016_v7 = vadd.f32 %v4906_v3, %v3074_v37 }
 0x349   : > { %v4912_v9 = vadd.f32 %v4911_v11, %v4910_v34  ;;  %v4796_v62 = vpop.f32.mrb[129].mxu1 }
 0x34a   : > { %v4797_v12 = vadd.f32 %v4796_v62, %v4795_v51  ;;  %v4798_v31 = vpop.f32.mrb[130].mxu1 }
 0x34b   : > { %v4799_v8 = vpop.f32.mrb[131].mxu1 }
 0x34c   : > { %v3079_v16 = vadd.f32 %v4797_v12, %v6922_v48  ;;  %v4800_v57 = vadd.f32 %v4799_v8, %v4798_v31 }
 0x34d   : > { %v4913_v39 = vpop.f32.mrb[132].mxu0 }
 0x34e   : > { %v4914_v52 = vpop.f32.mrb[133].mxu0  ;;  %v3082_v14 = vadd.f32 %v4800_v57, %v6926_v55  ;;  %v7020_v4 = vadd.f32 %v4909_v32, %v3079_v16 }
 0x34f   : > { %v4915_v20 = vadd.f32 %v4914_v52, %v4913_v39  ;;  %v4916_v21 = vpop.f32.mrb[134].mxu0 }
 0x350   : > { %v4917_v63 = vpop.f32.mrb[135].mxu0  ;;  %v4801_v56 = vpop.f32.mrb[132].mxu1  ;;  %v7022_v26 = vadd.f32 %v4912_v9, %v3082_v14 }
 0x351   : > { %v4918_v43 = vadd.f32 %v4917_v63, %v4916_v21  ;;  %v4802_v3 = vpop.f32.mrb[133].mxu1 }
 0x352   : > { %v4803_v1 = vadd.f32 %v4802_v3, %v4801_v56  ;;  %v4804_v54 = vpop.f32.mrb[134].mxu1 }
 0x353   : > { %v4805_v41 = vpop.f32.mrb[135].mxu1 }
 0x354   : > { %v3087_v48 = vadd.f32 %v4803_v1, %v6928_v36  ;;  %v4806_v42 = vadd.f32 %v4805_v41, %v4804_v54 }
 0x355   : > { %v4919_v6 = vpop.f32.mrb[136].mxu0 }
 0x356   : > { %v4920_v53 = vpop.f32.mrb[137].mxu0  ;;  %v3090_v55 = vadd.f32 %v4806_v42, %v6930_v58  ;;  %v7026_v32 = vadd.f32 %v4915_v20, %v3087_v48 }
 0x357   : > { %v4921_v10 = vadd.f32 %v4920_v53, %v4919_v6  ;;  %v4922_v22 = vpop.f32.mrb[138].mxu0 }
 0x358   : > { %v4923_v13 = vpop.f32.mrb[139].mxu0  ;;  %v4807_v37 = vpop.f32.mrb[136].mxu1  ;;  %v7028_v11 = vadd.f32 %v4918_v43, %v3090_v55 }
 0x359   : > { %v4924_v34 = vadd.f32 %v4923_v13, %v4922_v22  ;;  %v4808_v9 = vpop.f32.mrb[137].mxu1 }
 0x35a   : > { %v4809_v51 = vadd.f32 %v4808_v9, %v4807_v37  ;;  %v4810_v62 = vpop.f32.mrb[138].mxu1 }
 0x35b   : > { %v4811_v12 = vpop.f32.mrb[139].mxu1 }
 0x35c   : > { %v3095_v36 = vadd.f32 %v4809_v51, %v6935_v19  ;;  %v4812_v8 = vadd.f32 %v4811_v12, %v4810_v62 }
 0x35d   : > { %v4925_v31 = vpop.f32.mrb[140].mxu0 }
 0x35e   : > { %v4926_v39 = vpop.f32.mrb[141].mxu0  ;;  %v3098_v58 = vadd.f32 %v4812_v8, %v6937_v23  ;;  %v7032_v20 = vadd.f32 %v4921_v10, %v3095_v36  ;;  %v7043_v23 = vld [vmem:[%s7306_s4] ss:$0 sm:$0xff] }
 0x35f   : > { %v4927_v16 = vadd.f32 %v4926_v39, %v4925_v31  ;;  %v4928_v57 = vpop.f32.mrb[142].mxu0 }
 0x360   : > { %v4929_v52 = vpop.f32.mrb[143].mxu0  ;;  %v4813_v14 = vpop.f32.mrb[140].mxu1  ;;  %v7034_v63 = vadd.f32 %v4924_v34, %v3098_v58 }
 0x361   : > { %v4930_v21 = vadd.f32 %v4929_v52, %v4928_v57  ;;  %v4814_v43 = vpop.f32.mrb[141].mxu1 }
 0x362   : > { %v4815_v56 = vadd.f32 %v4814_v43, %v4813_v14  ;;  %v4816_v3 = vpop.f32.mrb[142].mxu1 }
 0x363   : > { %v4817_v1 = vpop.f32.mrb[143].mxu1 }
 0x364   : > { %v3103_v54 = vadd.f32 %v4815_v56, %v6939_v46  ;;  %v4818_v19 = vadd.f32 %v4817_v1, %v4816_v3  ;;  %v7051_v46 = vld [vmem:[%s7306_s4 + $0x1] ss:$0 sm:$0xff] }
 0x366   : > { %v3106_v41 = vadd.f32 %v4818_v19, %v6941_v38  ;;  %v7038_v6 = vadd.f32 %v4927_v16, %v3103_v54 }
 0x368   : > { %v5045_v48 = vpop.f32.mrb[144].mxu1  ;;  %v7045_v42 = vadd.f32 %v4930_v21, %v3106_v41 }
 0x369   : > { %v3313_v53 = vadd.f32 %v5045_v48, %v6954_v18  ;;  %v3304_v10 = vpop.f32.mrb[145].mxu1 }
 0x36a   : > { %v3305_v38 = vadd.f32 %v3304_v10, %v6948_v30  ;;  %v5046_v22 = vpop.f32.mrb[146].mxu1 }
 0x36b   : > { %v3438_v55 = vmul.f32 %v7043_v23, %v3313_v53  ;;  %v3316_v13 = vadd.f32 %v5046_v22, %v6956_v35  ;;  %v3307_v34 = vpop.f32.mrb[147].mxu1 }
 0x36c   : > { %v3436_v37 = vmul.f32 %v7043_v23, %v3305_v38  ;;  %v3308_v9 = vadd.f32 %v3307_v34, %v6950_v59 }
 0x36d   : > { %v3475_v18 = vadd.f32 %v7051_v46, %v3438_v55  ;;  %v3439_v51 = vmul.f32 %v7043_v23, %v3316_v13 }
 0x36e   : > { %v3473_v62 = vadd.f32 %v7051_v46, %v3436_v37  ;;  %v3437_v12 = vmul.f32 %v7043_v23, %v3308_v9 }
 0x36f   : > { %v3476_v30 = vadd.f32 %v7051_v46, %v3439_v51  ;;  %v3507_v8 = vmax.f32 %v3475_v18, 0.0 }
 0x370   : > { %v3474_v31 = vadd.f32 %v7051_v46, %v3437_v12  ;;  %v5049_v36 = vpop.f32.mrb[148].mxu1  ;;  %v3505_v57 = vmax.f32 %v3473_v62, 0.0 }
 0x371   : > { %v3508_v35 = vmax.f32 %v3476_v30, 0.0  ;;  %v3329_v39 = vadd.f32 %v5049_v36, %v6966_v5  ;;  %v3320_v16 = vpop.f32.mrb[149].mxu1 }
 0x372   : > { %v3506_v59 = vmax.f32 %v3474_v31, 0.0  ;;  %v3321_v58 = vadd.f32 %v3320_v16, %v6960_v33  ;;  %v5050_v52 = vpop.f32.mrb[150].mxu1 }
 0x373   : > { %v3538_v21 = vpack.c.bf16 %v3508_v35, %v3507_v8  ;;  %v3442_v14 = vmul.f32 %v7043_v23, %v3329_v39  ;;  %v3332_v43 = vadd.f32 %v5050_v52, %v6968_v49  ;;  %v3323_v56 = vpop.f32.mrb[151].mxu1 }
 0x374   : > { %v3440_v3 = vmul.f32 %v7043_v23, %v3321_v58  ;;  %v3324_v1 = vadd.f32 %v3323_v56, %v6962_v0  ;;  %v3537_v54 = vpack.c.bf16 %v3506_v59, %v3505_v57 }
 0x375   : > { %v3479_v19 = vadd.f32 %v7051_v46, %v3442_v14  ;;  %v3443_v5 = vmul.f32 %v7043_v23, %v3332_v43 }
 0x376   : > { %v3477_v41 = vadd.f32 %v7051_v46, %v3440_v3  ;;  %v3441_v33 = vmul.f32 %v7043_v23, %v3324_v1  ;;  %5091 = vmatprep.mubr.bf16.mxu0 %v3537_v54 }
 0x377   : > { %v3480_v48 = vadd.f32 %v7051_v46, %v3443_v5  ;;  %5092 = vmatmul.mubr.bf16.vlgmr.msra.gmra.mrb[144].mxu0 %v3538_v21  ;;  %v3511_v10 = vmax.f32 %v3479_v19, 0.0 }
 0x378   : > { %v3478_v49 = vadd.f32 %v7051_v46, %v3441_v33  ;;  %v5053_v53 = vpop.f32.mrb[152].mxu1  ;;  %v3509_v55 = vmax.f32 %v3477_v41, 0.0 }
 0x379   : > { %v3512_v38 = vmax.f32 %v3480_v48, 0.0  ;;  %v3345_v0 = vadd.f32 %v5053_v53, %v6978_v40  ;;  %v3336_v22 = vpop.f32.mrb[153].mxu1 }
 0x37a   : > { %v3510_v13 = vmax.f32 %v3478_v49, 0.0  ;;  %v3337_v34 = vadd.f32 %v3336_v22, %v6972_v60  ;;  %v5054_v37 = vpop.f32.mrb[154].mxu1 }
 0x37b   : > { %v3446_v9 = vmul.f32 %v7043_v23, %v3345_v0  ;;  %v3348_v18 = vadd.f32 %v5054_v37, %v6980_v45  ;;  %v3339_v51 = vpop.f32.mrb[155].mxu1  ;;  %v3540_v62 = vpack.c.bf16 %v3512_v38, %v3511_v10 }
 0x37c   : > { %v3444_v12 = vmul.f32 %v7043_v23, %v3337_v34  ;;  %v3340_v30 = vadd.f32 %v3339_v51, %v6974_v28  ;;  %v3539_v31 = vpack.c.bf16 %v3510_v13, %v3509_v55 }
 0x37d   : > { %v3483_v36 = vadd.f32 %v7051_v46, %v3446_v9  ;;  %v3447_v40 = vmul.f32 %v7043_v23, %v3348_v18 }
 0x37e   : > { %v3481_v8 = vadd.f32 %v7051_v46, %v3444_v12  ;;  %v3445_v60 = vmul.f32 %v7043_v23, %v3340_v30  ;;  %5095 = vmatprep.mubr.bf16.mxu0 %v3539_v31 }
 0x37f   : > { %v3484_v35 = vadd.f32 %v7051_v46, %v3447_v40  ;;  %5096 = vmatmul.mubr.bf16.gmra.mrb[148].mxu0 %v3540_v62  ;;  %v3515_v16 = vmax.f32 %v3483_v36, 0.0 }
 0x380   : > { %v3482_v45 = vadd.f32 %v7051_v46, %v3445_v60  ;;  %v5057_v39 = vpop.f32.mrb[156].mxu1  ;;  %v3513_v58 = vmax.f32 %v3481_v8, 0.0 }
 0x381   : > { %v3516_v57 = vmax.f32 %v3484_v35, 0.0  ;;  %v3361_v28 = vadd.f32 %v5057_v39, %v6990_v17  ;;  %v3352_v59 = vpop.f32.mrb[157].mxu1 }
 0x382   : > { %v3514_v52 = vmax.f32 %v3482_v45, 0.0  ;;  %v3353_v21 = vadd.f32 %v3352_v59, %v6984_v50  ;;  %v5058_v14 = vpop.f32.mrb[158].mxu1 }
 0x383   : > { %v3450_v43 = vmul.f32 %v7043_v23, %v3361_v28  ;;  %v3364_v56 = vadd.f32 %v5058_v14, %v6992_v29  ;;  %v3355_v3 = vpop.f32.mrb[159].mxu1  ;;  %v3542_v1 = vpack.c.bf16 %v3516_v57, %v3515_v16 }
 0x384   : > { %v3448_v54 = vmul.f32 %v7043_v23, %v3353_v21  ;;  %v3356_v19 = vadd.f32 %v3355_v3, %v6986_v24  ;;  %v3541_v5 = vpack.c.bf16 %v3514_v52, %v3513_v58 }
 0x385   : > { %v3487_v41 = vadd.f32 %v7051_v46, %v3450_v43  ;;  %v3451_v17 = vmul.f32 %v7043_v23, %v3364_v56 }
 0x386   : > { %v3485_v33 = vadd.f32 %v7051_v46, %v3448_v54  ;;  %v3449_v50 = vmul.f32 %v7043_v23, %v3356_v19  ;;  %5099 = vmatprep.mubr.bf16.mxu0 %v3541_v5 }
 0x387   : > { %v3488_v48 = vadd.f32 %v7051_v46, %v3451_v17  ;;  %5100 = vmatmul.mubr.bf16.gmra.mrb[152].mxu0 %v3542_v1  ;;  %v3519_v53 = vmax.f32 %v3487_v41, 0.0 }
 0x388   : > { %v3486_v29 = vadd.f32 %v7051_v46, %v3449_v50  ;;  %v5061_v49 = vpop.f32.mrb[160].mxu1  ;;  %v3517_v0 = vmax.f32 %v3485_v33, 0.0 }
 0x389   : > { %v3520_v10 = vmax.f32 %v3488_v48, 0.0  ;;  %v3377_v24 = vadd.f32 %v5061_v49, %v7002_v25  ;;  %v3368_v38 = vpop.f32.mrb[161].mxu1 }
 0x38a   : > { %v3518_v22 = vmax.f32 %v3486_v29, 0.0  ;;  %v3369_v55 = vadd.f32 %v3368_v38, %v6996_v44  ;;  %v5062_v13 = vpop.f32.mrb[162].mxu1 }
 0x38b   : > { %v3454_v34 = vmul.f32 %v7043_v23, %v3377_v24  ;;  %v3380_v37 = vadd.f32 %v5062_v13, %v7004_v15  ;;  %v3371_v9 = vpop.f32.mrb[163].mxu1  ;;  %v3544_v18 = vpack.c.bf16 %v3520_v10, %v3519_v53 }
 0x38c   : > { %v3452_v51 = vmul.f32 %v7043_v23, %v3369_v55  ;;  %v3372_v62 = vadd.f32 %v3371_v9, %v6998_v61  ;;  %v3543_v12 = vpack.c.bf16 %v3518_v22, %v3517_v0 }
 0x38d   : > { %v3491_v30 = vadd.f32 %v7051_v46, %v3454_v34  ;;  %v3455_v25 = vmul.f32 %v7043_v23, %v3380_v37 }
 0x38e   : > { %v3489_v31 = vadd.f32 %v7051_v46, %v3452_v51  ;;  %v3453_v44 = vmul.f32 %v7043_v23, %v3372_v62  ;;  %5103 = vmatprep.mubr.bf16.mxu0 %v3543_v12 }
 0x38f   : > { %v3492_v36 = vadd.f32 %v7051_v46, %v3455_v25  ;;  %5104 = vmatmul.mubr.bf16.gmra.mrb[156].mxu0 %v3544_v18  ;;  %v3523_v8 = vmax.f32 %v3491_v30, 0.0 }
 0x390   : > { %v3490_v15 = vadd.f32 %v7051_v46, %v3453_v44  ;;  %v5065_v40 = vpop.f32.mrb[164].mxu1  ;;  %v3521_v45 = vmax.f32 %v3489_v31, 0.0 }
 0x391   : > { %v3524_v60 = vmax.f32 %v3492_v36, 0.0  ;;  %v3393_v61 = vadd.f32 %v5065_v40, %v7014_v47  ;;  %v3384_v35 = vpop.f32.mrb[165].mxu1 }
 0x392   : > { %v3522_v39 = vmax.f32 %v3490_v15, 0.0  ;;  %v3385_v16 = vadd.f32 %v3384_v35, %v7008_v2  ;;  %v5066_v57 = vpop.f32.mrb[166].mxu1 }
 0x393   : > { %v3458_v28 = vmul.f32 %v7043_v23, %v3393_v61  ;;  %v3396_v59 = vadd.f32 %v5066_v57, %v7016_v7  ;;  %v3387_v58 = vpop.f32.mrb[167].mxu1  ;;  %v3546_v52 = vpack.c.bf16 %v3524_v60, %v3523_v8 }
 0x394   : > { %v3456_v21 = vmul.f32 %v7043_v23, %v3385_v16  ;;  %v3388_v14 = vadd.f32 %v3387_v58, %v7010_v27  ;;  %v3545_v43 = vpack.c.bf16 %v3522_v39, %v3521_v45  ;;  %v7156_v58 = vld [vmem:[%s7308_s6 + $0x1] ss:$0 sm:$0xff] }
 0x395   : > { %v3495_v56 = vadd.f32 %v7051_v46, %v3458_v28  ;;  %v3459_v47 = vmul.f32 %v7043_v23, %v3396_v59  ;;  %v7151_v59 = vld [vmem:[%s7308_s6] ss:$0 sm:$0xff] }
 0x396   : > { %v3493_v3 = vadd.f32 %v7051_v46, %v3456_v21  ;;  %v3457_v2 = vmul.f32 %v7043_v23, %v3388_v14  ;;  %5107 = vmatprep.mubr.bf16.mxu0 %v3545_v43 }
 0x397   : > { %v3496_v1 = vadd.f32 %v7051_v46, %v3459_v47  ;;  %5108 = vmatmul.mubr.bf16.gmra.mrb[160].mxu0 %v3546_v52  ;;  %v3527_v19 = vmax.f32 %v3495_v56, 0.0 }
 0x398   : > { %v3494_v7 = vadd.f32 %v7051_v46, %v3457_v2  ;;  %v5069_v54 = vpop.f32.mrb[168].mxu1  ;;  %v3525_v17 = vmax.f32 %v3493_v3, 0.0  ;;  %v7704_v2 = vld [vmem:[#allocation2_spill] sm:$0xff] }
 0x399   : > { %v3528_v5 = vmax.f32 %v3496_v1, 0.0  ;;  %v3409_v27 = vadd.f32 %v5069_v54, %v7026_v32  ;;  %v3400_v41 = vpop.f32.mrb[169].mxu1 }
 0x39a   : > { %v3526_v33 = vmax.f32 %v3494_v7, 0.0  ;;  %v3401_v50 = vadd.f32 %v3400_v41, %v7020_v4  ;;  %v5070_v48 = vpop.f32.mrb[170].mxu1 }
 0x39b   : > { %v3462_v29 = vmul.f32 %v7043_v23, %v3409_v27  ;;  %v3412_v49 = vadd.f32 %v5070_v48, %v7028_v11  ;;  %v3403_v53 = vpop.f32.mrb[171].mxu1  ;;  %v3548_v10 = vpack.c.bf16 %v3528_v5, %v3527_v19  ;;  %v7705_v27 = vld [vmem:[#allocation4_spill] sm:$0xff] }
 0x39c   : > { %v3460_v24 = vmul.f32 %v7043_v23, %v3401_v50  ;;  %v3404_v38 = vadd.f32 %v3403_v53, %v7022_v26  ;;  %v3547_v0 = vpack.c.bf16 %v3526_v33, %v3525_v17  ;;  %v7706_v53 = vld [vmem:[#allocation6_spill] sm:$0xff] }
 0x39d   : > { %v3499_v22 = vadd.f32 %v7051_v46, %v3462_v29  ;;  %v3463_v32 = vmul.f32 %v7043_v23, %v3412_v49 }
 0x39e   : > { %v3497_v55 = vadd.f32 %v7051_v46, %v3460_v24  ;;  %v3461_v4 = vmul.f32 %v7043_v23, %v3404_v38  ;;  %5111 = vmatprep.mubr.bf16.mxu0 %v3547_v0 }
 0x39f   : > { %v3500_v13 = vadd.f32 %v7051_v46, %v3463_v32  ;;  %5112 = vmatmul.mubr.bf16.gmra.mrb[164].mxu0 %v3548_v10  ;;  %v3531_v37 = vmax.f32 %v3499_v22, 0.0  ;;  %v7707_v32 = vld [vmem:[#allocation8_spill] sm:$0xff] }
 0x3a0   : > { %v3498_v11 = vadd.f32 %v7051_v46, %v3461_v4  ;;  %v5073_v34 = vpop.f32.mrb[172].mxu1  ;;  %v3529_v51 = vmax.f32 %v3497_v55, 0.0 }
 0x3a1   : > { %v3532_v9 = vmax.f32 %v3500_v13, 0.0  ;;  %v3425_v26 = vadd.f32 %v5073_v34, %v7038_v6  ;;  %v3416_v18 = vpop.f32.mrb[173].mxu1 }
 0x3a2   : > { %v3530_v62 = vmax.f32 %v3498_v11, 0.0  ;;  %v3417_v12 = vadd.f32 %v3416_v18, %v7032_v20  ;;  %v5074_v30 = vpop.f32.mrb[174].mxu1 }
 0x3a3   : > { %v3466_v25 = vmul.f32 %v7043_v23, %v3425_v26  ;;  %v3428_v31 = vadd.f32 %v5074_v30, %v7045_v42  ;;  %v3419_v44 = vpop.f32.mrb[175].mxu1  ;;  %v3550_v36 = vpack.c.bf16 %v3532_v9, %v3531_v37  ;;  %v7708_v26 = vld [vmem:[#allocation10_spill] sm:$0xff] }
 0x3a4   : > { %v3464_v15 = vmul.f32 %v7043_v23, %v3417_v12  ;;  %v3420_v40 = vadd.f32 %v3419_v44, %v7034_v63  ;;  %v3549_v8 = vpack.c.bf16 %v3530_v62, %v3529_v51 }
 0x3a5   : > { %v3503_v60 = vadd.f32 %v7051_v46, %v3466_v25  ;;  %v3467_v6 = vmul.f32 %v7043_v23, %v3428_v31  ;;  %v7709_v25 = vld [vmem:[#allocation12_spill] sm:$0xff] }
 0x3a6   : > { %v3501_v61 = vadd.f32 %v7051_v46, %v3464_v15  ;;  %v3465_v20 = vmul.f32 %v7043_v23, %v3420_v40  ;;  %5115 = vmatprep.mubr.bf16.mxu0 %v3549_v8 }
 0x3a7   : > { %v3504_v35 = vadd.f32 %v7051_v46, %v3467_v6  ;;  %5116 = vmatmul.mubr.bf16.gmra.mrb[168].mxu0 %v3550_v36  ;;  %v3535_v45 = vmax.f32 %v3503_v60, 0.0  ;;  %v7710_v6 = vld [vmem:[#allocation14_spill] sm:$0xff] }
 0x3a8   : > { %v3502_v42 = vadd.f32 %v7051_v46, %v3465_v20  ;;  %v3533_v16 = vmax.f32 %v3501_v61, 0.0 }
 0x3a9   : > { %v3536_v39 = vmax.f32 %v3504_v35, 0.0  ;;  %v7711_v35 = vld [vmem:[#allocation16_spill] sm:$0xff] }
 0x3aa   : > { %v3534_v57 = vmax.f32 %v3502_v42, 0.0 }
 0x3ab   : > { %v3552_v63 = vpack.c.bf16 %v3536_v39, %v3535_v45 }
 0x3ac   : > { %v3551_v28 = vpack.c.bf16 %v3534_v57, %v3533_v16 }
 0x3ae   : > { %5119 = vmatprep.mubr.bf16.mxu0 %v3551_v28 }
 0x3af   : > { %5120 = vmatmul.mubr.bf16.gmra.mrb[172].mxu0 %v3552_v63 }
 0x44a   : > { %v5093_v23 = vpop.f32.mrb[144].mxu0 }
 0x44b   : > { %v3651_v46 = vpop.f32.mrb[145].mxu0  ;;  %v3785_v43 = vmul.f32 %v5093_v23, %v7151_v59 }
 0x44c   : > { %v3783_v52 = vmul.f32 %v7151_v59, %v3651_v46  ;;  %v5094_v21 = vpop.f32.mrb[146].mxu0 }
 0x44d   : > { %v3654_v14 = vpop.f32.mrb[147].mxu0  ;;  %v3822_v7 = vadd.f32 %v7156_v58, %v3785_v43  ;;  %v3786_v54 = vmul.f32 %v5094_v21, %v7151_v59  ;;  %v7712_v21 = vld [vmem:[#allocation18_spill] sm:$0xff] }
 0x44e   : > { %v3820_v56 = vadd.f32 %v7156_v58, %v3783_v52  ;;  %v3784_v47 = vmul.f32 %v7151_v59, %v3654_v14 }
 0x44f   : > { %v3823_v48 = vadd.f32 %v7156_v58, %v3786_v54  ;;  %v3854_v10 = vadd.f32 %v3822_v7, %v7706_v53  ;;  %v7713_v7 = vld [vmem:[#allocation3_spill] sm:$0xff] }
 0x450   : > { %v3821_v3 = vadd.f32 %v7156_v58, %v3784_v47  ;;  %v3852_v1 = vadd.f32 %v3820_v56, %v7704_v2 }
 0x451   : > { %v3886_v22 = vmax.f32 %v3854_v10, 0.0  ;;  %v3855_v55 = vadd.f32 %v3823_v48, %v7707_v32  ;;  %v7716_v32 = vld [vmem:[#allocation22_spill] sm:$0xff] }
 0x452   : > { %v5097_v19 = vpop.f32.mrb[148].mxu0  ;;  %v3884_v5 = vmax.f32 %v3852_v1, 0.0  ;;  %v3853_v41 = vadd.f32 %v3821_v3, %v7705_v27 }
 0x453   : > { %v3667_v17 = vpop.f32.mrb[149].mxu0  ;;  %v3789_v34 = vmul.f32 %v5097_v19, %v7151_v59  ;;  %v3887_v9 = vmax.f32 %v3855_v55, 0.0 }
 0x454   : > { %3916 = vxpose.xlu0.b32.start [1/16] %v3884_v5, 128  ;;  %v5098_v33 = vpop.f32.mrb[150].mxu0  ;;  %v3787_v29 = vmul.f32 %v7151_v59, %v3667_v17  ;;  %v3885_v49 = vmax.f32 %v3853_v41, 0.0 }
 0x455   : > { %v3670_v50 = vpop.f32.mrb[151].mxu0  ;;  %v3790_v51 = vmul.f32 %v5098_v33, %v7151_v59  ;;  %v3826_v62 = vadd.f32 %v7156_v58, %v3789_v34  ;;  %v7717_v34 = vld [vmem:[#allocation7_spill] sm:$0xff] }
 0x456   : > { %v3824_v24 = vadd.f32 %v7156_v58, %v3787_v29  ;;  %v3788_v38 = vmul.f32 %v7151_v59, %v3670_v50  ;;  %v7714_v50 = vld [vmem:[#allocation20_spill] sm:$0xff]  ;;  %v7715_v29 = vld [vmem:[#allocation5_spill] sm:$0xff] }
 0x457   : > { %v3827_v15 = vadd.f32 %v7156_v58, %v3790_v51  ;;  %v3858_v61 = vadd.f32 %v3826_v62, %v7710_v6  ;;  %v7719_v62 = vld [vmem:[#allocation9_spill] sm:$0xff] }
 0x458   : > { %3917 = vxpose.xlu0.b32.cont [2/16] %v3885_v49, 128  ;;  %v3825_v37 = vadd.f32 %v7156_v58, %v3788_v38  ;;  %v3856_v18 = vadd.f32 %v3824_v24, %v7708_v26 }
 0x459   : > { %v3859_v42 = vadd.f32 %v3827_v15, %v7711_v35  ;;  %v3890_v16 = vmax.f32 %v3858_v61, 0.0 }
 0x45a   : > { %v5101_v0 = vpop.f32.mrb[152].mxu0  ;;  %v3888_v30 = vmax.f32 %v3856_v18, 0.0  ;;  %v3857_v31 = vadd.f32 %v3825_v37, %v7709_v25  ;;  %v7718_v18 = vld [vmem:[#allocation24_spill] sm:$0xff] }
 0x45b   : > { %v3683_v4 = vpop.f32.mrb[153].mxu0  ;;  %v3793_v23 = vmul.f32 %v5101_v0, %v7151_v59  ;;  %v3891_v52 = vmax.f32 %v3859_v42, 0.0 }
 0x45c   : > { %3918 = vxpose.xlu0.b32.cont [3/16] %v3886_v22, 128  ;;  %v5102_v13 = vpop.f32.mrb[154].mxu0  ;;  %v3791_v40 = vmul.f32 %v7151_v59, %v3683_v4  ;;  %v3889_v60 = vmax.f32 %v3857_v31, 0.0 }
 0x45d   : > { %v3686_v11 = vpop.f32.mrb[155].mxu0  ;;  %v3794_v2 = vmul.f32 %v5102_v13, %v7151_v59  ;;  %v3830_v19 = vadd.f32 %v7156_v58, %v3793_v23 }
 0x45e   : > { %v3828_v20 = vadd.f32 %v7156_v58, %v3791_v40  ;;  %v3792_v45 = vmul.f32 %v7151_v59, %v3686_v11 }
 0x45f   : > { %v3831_v10 = vadd.f32 %v7156_v58, %v3794_v2  ;;  %v3862_v55 = vadd.f32 %v3830_v19, %v7716_v32 }
 0x460   : > { %3919 = vxpose.xlu0.b32.cont [4/16] %v3887_v9, 128  ;;  %v3860_v14 = vadd.f32 %v3828_v20, %v7712_v21  ;;  %v3829_v43 = vadd.f32 %v7156_v58, %v3792_v45  ;;  %v7720_v45 = vld [vmem:[#allocation26_spill] sm:$0xff]  ;;  %v7721_v21 = vld [vmem:[#allocation11_spill] sm:$0xff] }
 0x461   : > { %v3863_v51 = vadd.f32 %v3831_v10, %v7718_v18  ;;  %v3894_v15 = vmax.f32 %v3862_v55, 0.0  ;;  %v7726_v18 = vld [vmem:[#allocation32_spill] sm:$0xff] }
 0x462   : > { %v7178_v12 = vpop.f32.mrb[156].mxu0  ;;  %v3892_v27 = vmax.f32 %v3860_v14, 0.0  ;;  %v3861_v48 = vadd.f32 %v3829_v43, %v7714_v50 }
 0x463   : > { %v3699_v44 = vpop.f32.mrb[157].mxu0  ;;  %v3895_v42 = vmax.f32 %v3863_v51, 0.0 }
 0x464   : > { %3920 = vxpose.xlu0.b32.cont [5/16] %v3888_v30, 128  ;;  %v7181_v36 = vpop.f32.mrb[158].mxu0  ;;  %v3795_v24 = vmul.f32 %v7151_v59, %v3699_v44  ;;  %v3893_v13 = vmax.f32 %v3861_v48, 0.0 }
 0x465   : > { %v3702_v8 = vpop.f32.mrb[159].mxu0 }
 0x466   : > { %v3832_v9 = vadd.f32 %v7156_v58, %v3795_v24  ;;  %v3796_v26 = vmul.f32 %v7151_v59, %v3702_v8 }
 0x468   : > { %3921 = vxpose.xlu0.b32.cont [6/16] %v3889_v60, 128  ;;  %v3797_v60 = vmul.f32 %v7178_v12, %v7151_v59  ;;  %v3833_v8 = vadd.f32 %v7156_v58, %v3796_v26 }
 0x46a   : > { %v5109_v39 = vpop.f32.mrb[160].mxu0 }
 0x46b   : > { %v3715_v57 = vpop.f32.mrb[161].mxu0  ;;  %v3801_v56 = vmul.f32 %v5109_v39, %v7151_v59  ;;  %v3864_v39 = vadd.f32 %v3832_v9, %v7720_v45  ;;  %v7732_v45 = vld [vmem:[#allocation27_spill] sm:$0xff] }
 0x46c   : > { %v3799_v63 = vmul.f32 %v7151_v59, %v3715_v57  ;;  %3922 = vxpose.xlu0.b32.cont [7/16] %v3890_v16, 128  ;;  %v5110_v28 = vpop.f32.mrb[162].mxu0 }
 0x46d   : > { %v3718_v46 = vpop.f32.mrb[163].mxu0  ;;  %v3802_v5 = vmul.f32 %v5110_v28, %v7151_v59  ;;  %v3838_v41 = vadd.f32 %v7156_v58, %v3801_v56  ;;  %v3834_v56 = vadd.f32 %v7156_v58, %v3797_v60 }
 0x46e   : > { %v3836_v47 = vadd.f32 %v7156_v58, %v3799_v63  ;;  %v3800_v3 = vmul.f32 %v7151_v59, %v3718_v46 }
 0x46f   : > { %v3839_v0 = vadd.f32 %v7156_v58, %v3802_v5  ;;  %v3870_v37 = vadd.f32 %v3838_v41, %v7717_v34  ;;  %v3896_v5 = vmax.f32 %v3864_v39, 0.0  ;;  %v7723_v41 = vld [vmem:[#allocation13_spill] sm:$0xff] }
 0x470   : > { %v3837_v1 = vadd.f32 %v7156_v58, %v3800_v3  ;;  %3923 = vxpose.xlu0.b32.cont [8/16] %v3891_v52, 128  ;;  %v3868_v54 = vadd.f32 %v3836_v47, %v7713_v7  ;;  %v3798_v47 = vmul.f32 %v7181_v36, %v7151_v59 }
 0x471   : > { %v3871_v30 = vadd.f32 %v3839_v0, %v7719_v62  ;;  %v3902_v40 = vmax.f32 %v3870_v37, 0.0  ;;  %v7727_v62 = vld [vmem:[#allocation17_spill] sm:$0xff] }
 0x472   : > { %v5113_v17 = vpop.f32.mrb[164].mxu0  ;;  %v3900_v33 = vmax.f32 %v3868_v54, 0.0  ;;  %v3869_v49 = vadd.f32 %v3837_v1, %v7715_v29  ;;  %v7722_v1 = vld [vmem:[#allocation28_spill] sm:$0xff]  ;;  %v3835_v36 = vadd.f32 %v7156_v58, %v3798_v47 }
 0x473   : > { %v3731_v53 = vpop.f32.mrb[165].mxu0  ;;  %v3805_v16 = vmul.f32 %v5113_v17, %v7151_v59  ;;  %v3903_v28 = vmax.f32 %v3871_v30, 0.0  ;;  %v3865_v7 = vadd.f32 %v3833_v8, %v7722_v1 }
 0x474   : > { %3924 = vxpose.xlu0.b32.cont [9/16] %v3892_v27, 128  ;;  %3948 = vxpose.xlu1.b32.start [1/16] %v3900_v33, 128  ;;  %v5114_v38 = vpop.f32.mrb[166].mxu0  ;;  %v3803_v4 = vmul.f32 %v7151_v59, %v3731_v53  ;;  %v3901_v11 = vmax.f32 %v3869_v49, 0.0  ;;  %v7724_v49 = vld [vmem:[#allocation30_spill] sm:$0xff]  ;;  %v3867_v51 = vadd.f32 %v3835_v36, %v7726_v18 }
 0x475   : > { %v3734_v22 = vpop.f32.mrb[167].mxu0  ;;  %v3806_v2 = vmul.f32 %v5114_v38, %v7151_v59  ;;  %v3842_v54 = vadd.f32 %v7156_v58, %v3805_v16  ;;  %v3866_v53 = vadd.f32 %v3834_v56, %v7724_v49 }
 0x476   : > { %v3840_v25 = vadd.f32 %v7156_v58, %v3803_v4  ;;  %v3804_v31 = vmul.f32 %v7151_v59, %v3734_v22  ;;  %v3897_v22 = vmax.f32 %v3865_v7, 0.0 }
 0x477   : > { %v3843_v10 = vadd.f32 %v7156_v58, %v3806_v2  ;;  %v3898_v9 = vmax.f32 %v3866_v53, 0.0 }
 0x478   : > { %3925 = vxpose.xlu0.b32.cont [10/16] %v3893_v13, 128  ;;  %3949 = vxpose.xlu1.b32.cont [2/16] %v3901_v11, 128  ;;  %v3841_v23 = vadd.f32 %v7156_v58, %v3804_v31  ;;  %v3872_v14 = vadd.f32 %v3840_v25, %v7721_v21  ;;  %v7725_v13 = vld [vmem:[#allocation15_spill] sm:$0xff]  ;;  %v3899_v25 = vmax.f32 %v3867_v51, 0.0 }
 0x479   : > { %v3874_v11 = vadd.f32 %v3842_v54, %v7725_v13  ;;  %v3875_v30 = vadd.f32 %v3843_v10, %v7727_v62 }
 0x47a   : > { %v5117_v44 = vpop.f32.mrb[168].mxu0  ;;  %v3904_v27 = vmax.f32 %v3872_v14, 0.0  ;;  %v3873_v17 = vadd.f32 %v3841_v23, %v7723_v41  ;;  %v7734_v23 = vld [vmem:[#allocation31_spill] sm:$0xff] }
 0x47b   : > { %v3809_v6 = vmul.f32 %v5117_v44, %v7151_v59  ;;  %v3747_v61 = vpop.f32.mrb[169].mxu0  ;;  %v3906_v26 = vmax.f32 %v3874_v11, 0.0  ;;  %v3907_v31 = vmax.f32 %v3875_v30, 0.0 }
 0x47c   : > { %v3807_v20 = vmul.f32 %v7151_v59, %v3747_v61  ;;  %3926 = vxpose.xlu0.b32.cont [11/16] %v3894_v15, 128  ;;  %3950 = vxpose.xlu1.b32.cont [3/16] %v3902_v40, 128  ;;  %v5118_v35 = vpop.f32.mrb[170].mxu0  ;;  %v3905_v4 = vmax.f32 %v3873_v17, 0.0  ;;  %v7729_v40 = vld [vmem:[#allocation21_spill] sm:$0xff] }
 0x47d   : > { %v3846_v57 = vadd.f32 %v7156_v58, %v3809_v6  ;;  %v3810_v63 = vmul.f32 %v5118_v35, %v7151_v59  ;;  %v3750_v12 = vpop.f32.mrb[171].mxu0  ;;  %v7730_v6 = vld [vmem:[#allocation23_spill] sm:$0xff] }
 0x47e   : > { %v3844_v46 = vadd.f32 %v7156_v58, %v3807_v20  ;;  %v3808_v52 = vmul.f32 %v7151_v59, %v3750_v12  ;;  %v7731_v20 = vld [vmem:[#allocation25_spill] sm:$0xff] }
 0x47f   : > { %v3847_v43 = vadd.f32 %v7156_v58, %v3810_v63  ;;  %v3878_v61 = vadd.f32 %v3846_v57, %v7730_v6  ;;  %v7733_v63 = vld [vmem:[#allocation29_spill] sm:$0xff] }
 0x480   : > { %v3845_v3 = vadd.f32 %v7156_v58, %v3808_v52  ;;  %3927 = vxpose.xlu0.b32.cont [12/16] %v3895_v42, 128  ;;  %3951 = vxpose.xlu1.b32.cont [4/16] %v3903_v28, 128  ;;  %v7735_v57 = vld [vmem:[#allocation33_spill] sm:$0xff] }
 0x481   : > { %v3910_v8 = vmax.f32 %v3878_v61, 0.0  ;;  %v3879_v35 = vadd.f32 %v3847_v43, %v7731_v20 }
 0x482   : > { %v5121_v19 = vpop.f32.mrb[172].mxu0  ;;  %v3877_v60 = vadd.f32 %v3845_v3, %v7729_v40 }
 0x483   : > { %v3813_v33 = vmul.f32 %v5121_v19, %v7151_v59  ;;  %v3763_v50 = vpop.f32.mrb[173].mxu0  ;;  %v3911_v42 = vmax.f32 %v3879_v35, 0.0 }
 0x484   : > { %v3811_v48 = vmul.f32 %v7151_v59, %v3763_v50  ;;  %3928 = vxpose.xlu0.b32.cont [13/16] %v3896_v5, 128  ;;  %3952 = vxpose.xlu1.b32.cont [5/16] %v3904_v27, 128  ;;  %v5122_v29 = vpop.f32.mrb[174].mxu0 }
 0x485   : > { %v3850_v24 = vadd.f32 %v7156_v58, %v3813_v33  ;;  %v3814_v38 = vmul.f32 %v5122_v29, %v7151_v59  ;;  %v3766_v0 = vpop.f32.mrb[175].mxu0 }
 0x486   : > { %v3848_v32 = vadd.f32 %v7156_v58, %v3811_v48  ;;  %v3812_v55 = vmul.f32 %v7151_v59, %v3766_v0  ;;  %v7728_v59 = vld [vmem:[#allocation19_spill] sm:$0xff] }
 0x487   : > { %v3851_v34 = vadd.f32 %v7156_v58, %v3814_v38  ;;  %v3876_v44 = vadd.f32 %v3844_v46, %v7728_v59  ;;  %v3882_v46 = vadd.f32 %v3850_v24, %v7734_v23 }
 0x488   : > { %v3849_v37 = vadd.f32 %v7156_v58, %v3812_v55  ;;  %3929 = vxpose.xlu0.b32.cont [14/16] %v3897_v22, 128  ;;  %3953 = vxpose.xlu1.b32.cont [6/16] %v3905_v4, 128  ;;  %v3909_v58 = vmax.f32 %v3877_v60, 0.0  ;;  %v3880_v39 = vadd.f32 %v3848_v32, %v7732_v45 }
 0x489   : > { %v3908_v15 = vmax.f32 %v3876_v44, 0.0  ;;  %v3914_v52 = vmax.f32 %v3882_v46, 0.0  ;;  %v3883_v21 = vadd.f32 %v3851_v34, %v7735_v57 }
 0x48a   : > { %v3912_v16 = vmax.f32 %v3880_v39, 0.0  ;;  %v3881_v12 = vadd.f32 %v3849_v37, %v7733_v63 }
 0x48b   : > { %v3915_v14 = vmax.f32 %v3883_v21, 0.0 }
 0x48c   : > { %3930 = vxpose.xlu0.b32.cont [15/16] %v3898_v9, 128  ;;  %3954 = vxpose.xlu1.b32.cont [7/16] %v3906_v26, 128  ;;  %v3913_v28 = vmax.f32 %v3881_v12, 0.0 }
 0x490   : > { %3931 = vxpose.xlu0.b32.end [16/16] %v3899_v25, 128  ;;  %3955 = vxpose.xlu1.b32.cont [8/16] %v3907_v31, 128 }
 0x494   : > { %3956 = vxpose.xlu1.b32.cont [9/16] %v3908_v15, 128 }
 0x498   : > { %3957 = vxpose.xlu1.b32.cont [10/16] %v3909_v58, 128 }
 0x49c   : > { %3958 = vxpose.xlu1.b32.cont [11/16] %v3910_v8, 128 }
 0x4a0   : > { %3959 = vxpose.xlu1.b32.cont [12/16] %v3911_v42, 128 }
 0x4a4   : > { %3960 = vxpose.xlu1.b32.cont [13/16] %v3912_v16, 128 }
 0x4a8   : > { %3961 = vxpose.xlu1.b32.cont [14/16] %v3913_v28, 128 }
 0x4ac   : > { %3962 = vxpose.xlu1.b32.cont [15/16] %v3914_v52, 128 }
 0x4b0   : > { %3963 = vxpose.xlu1.b32.end [16/16] %v3915_v14, 128 }
 0x4d4   : > { %v3932_v43 = vpop.trf.xlu0 }
 0x4d5   : > { %3980 = vst [vmem:[%s7265_s17] sm:$0xff] %v3932_v43 }
 0x4d8   : > { %v3933_v56 = vpop.trf.xlu0 }
 0x4d9   : > { %3982 = vst [vmem:[%s7265_s17 + $0x10] sm:$0xff] %v3933_v56 }
 0x4dc   : > { %v3934_v47 = vpop.trf.xlu0 }
 0x4dd   : > { %3984 = vst [vmem:[%s7265_s17 + $0x20] sm:$0xff] %v3934_v47 }
 0x4e0   : > { %v3935_v3 = vpop.trf.xlu0 }
 0x4e1   : > { %3986 = vst [vmem:[%s7265_s17 + $0x30] sm:$0xff] %v3935_v3 }
 0x4e4   : > { %v3936_v2 = vpop.trf.xlu0 }
 0x4e5   : > { %3988 = vst [vmem:[%s7265_s17 + $0x40] sm:$0xff] %v3936_v2 }
 0x4e8   : > { %v3937_v1 = vpop.trf.xlu0 }
 0x4e9   : > { %3990 = vst [vmem:[%s7265_s17 + $0x50] sm:$0xff] %v3937_v1 }
 0x4ec   : > { %v3938_v7 = vpop.trf.xlu0 }
 0x4ed   : > { %3992 = vst [vmem:[%s7265_s17 + $0x60] sm:$0xff] %v3938_v7 }
 0x4f0   : > { %v3939_v54 = vpop.trf.xlu0 }
 0x4f1   : > { %3994 = vst [vmem:[%s7265_s17 + $0x70] sm:$0xff] %v3939_v54 }
 0x4f4   : > { %v3964_v19 = vpop.trf.xlu1  ;;  %v3940_v5 = vpop.trf.xlu0 }
 0x4f5   : > { %3981 = vst [vmem:[%s7265_s17 + $0x8] sm:$0xff] %v3964_v19  ;;  %3996 = vst [vmem:[%s7265_s17 + $0x80] sm:$0xff] %v3940_v5 }
 0x4f8   : > { %v3965_v27 = vpop.trf.xlu1  ;;  %v3941_v41 = vpop.trf.xlu0 }
 0x4f9   : > { %3983 = vst [vmem:[%s7265_s17 + $0x18] sm:$0xff] %v3965_v27  ;;  %3998 = vst [vmem:[%s7265_s17 + $0x90] sm:$0xff] %v3941_v41 }
 0x4fc   : > { %v3966_v17 = vpop.trf.xlu1  ;;  %v3942_v33 = vpop.trf.xlu0 }
 0x4fd   : > { %3985 = vst [vmem:[%s7265_s17 + $0x28] sm:$0xff] %v3966_v17  ;;  %4000 = vst [vmem:[%s7265_s17 + $0xa0] sm:$0xff] %v3942_v33 }
 0x500   : > { %v3967_v50 = vpop.trf.xlu1  ;;  %v3943_v36 = vpop.trf.xlu0 }
 0x501   : > { %3987 = vst [vmem:[%s7265_s17 + $0x38] sm:$0xff] %v3967_v50  ;;  %4002 = vst [vmem:[%s7265_s17 + $0xb0] sm:$0xff] %v3943_v36 }
 0x504   : > { %v3968_v48 = vpop.trf.xlu1  ;;  %v3944_v29 = vpop.trf.xlu0 }
 0x505   : > { %3989 = vst [vmem:[%s7265_s17 + $0x48] sm:$0xff] %v3968_v48  ;;  %4004 = vst [vmem:[%s7265_s17 + $0xc0] sm:$0xff] %v3944_v29 }
 0x508   : > { %v3969_v49 = vpop.trf.xlu1  ;;  %v3945_v53 = vpop.trf.xlu0 }
 0x509   : > { %3991 = vst [vmem:[%s7265_s17 + $0x58] sm:$0xff] %v3969_v49  ;;  %4006 = vst [vmem:[%s7265_s17 + $0xd0] sm:$0xff] %v3945_v53 }
 0x50c   : > { %v3970_v10 = vpop.trf.xlu1  ;;  %v3946_v24 = vpop.trf.xlu0 }
 0x50d   : > { %3993 = vst [vmem:[%s7265_s17 + $0x68] sm:$0xff] %v3970_v10  ;;  %4008 = vst [vmem:[%s7265_s17 + $0xe0] sm:$0xff] %v3946_v24 }
 0x510   : > { %v3971_v38 = vpop.trf.xlu1  ;;  %v3947_v0 = vpop.trf.xlu0 }
 0x511   : > { %3995 = vst [vmem:[%s7265_s17 + $0x78] sm:$0xff] %v3971_v38  ;;  %4010 = vst [vmem:[%s7265_s17 + $0xf0] sm:$0xff] %v3947_v0 }
 0x514   : > { %v3972_v22 = vpop.trf.xlu1 }
 0x515   : > { %3997 = vst [vmem:[%s7265_s17 + $0x88] sm:$0xff] %v3972_v22 }
 0x518   : > { %v3973_v32 = vpop.trf.xlu1 }
 0x519   : > { %3999 = vst [vmem:[%s7265_s17 + $0x98] sm:$0xff] %v3973_v32 }
 0x51c   : > { %v3974_v55 = vpop.trf.xlu1 }
 0x51d   : > { %4001 = vst [vmem:[%s7265_s17 + $0xa8] sm:$0xff] %v3974_v55 }
 0x520   : > { %v3975_v4 = vpop.trf.xlu1 }
 0x521   : > { %4003 = vst [vmem:[%s7265_s17 + $0xb8] sm:$0xff] %v3975_v4 }
 0x524   : > { %v3976_v13 = vpop.trf.xlu1 }
 0x525   : > { %4005 = vst [vmem:[%s7265_s17 + $0xc8] sm:$0xff] %v3976_v13 }
 0x528   : > { %v3977_v11 = vpop.trf.xlu1 }
 0x529   : > { %4007 = vst [vmem:[%s7265_s17 + $0xd8] sm:$0xff] %v3977_v11 }
 0x52c   : > { %v3978_v34 = vpop.trf.xlu1 }
 0x52d   : > { %4009 = vst [vmem:[%s7265_s17 + $0xe8] sm:$0xff] %v3978_v34 }
 0x530   : > { %v3979_v37 = vpop.trf.xlu1 }
 0x531   : > { %4011 = vst [vmem:[%s7265_s17 + $0xf8] sm:$0xff] %v3979_v37 }
 0x532 PF: > { %s17_s24 = sadd.s32 1, %s5245_s24  }
 0x533   : > { %p14_p4 = scmp.ge.s32.totalorder %s17_s24, 4  }
 0x535   :  { %16 = sbr.rel (!%p14_p4) target bundleno = 1 (0x1), region = 78 }

</bundles_post_ra>
